<compile_context>
chip_gen: v6e
topology: v6e:2x2x1
jax: 0.10.0
libtpu: 0.0.40
codegen_flags: <defaults>
</compile_context>

<pallas_src>
import functools

import jax
import jax.numpy as jnp
from jax.experimental import pallas as pl
from jax.experimental.pallas import tpu as pltpu

LANE = 128
SUB = 8


def _round_up(x, m):
    return ((x + m - 1) // m) * m


def _pad_rows(a, mult=SUB):
    m = a.shape[0]
    mp = _round_up(m, mult)
    if mp == m:
        return a
    return jnp.concatenate(
        [a, jnp.zeros((mp - m,) + a.shape[1:], a.dtype)], axis=0)


# ---------------------------------------------------------------------------
# Pallas kernels
# ---------------------------------------------------------------------------
def _matmul_bias_kernel(x_ref, w_ref, b_ref, o_ref):
    # (M, Kp) bf16 @ (Kp, 128) bf16 on the MXU, f32 accumulate, + (1,128) f32
    # bias, stored lane-dense in the requested (bf16) output dtype.
    o_ref[...] = (
        jnp.dot(x_ref[...], w_ref[...], preferred_element_type=jnp.float32)
        + b_ref[...]
    ).astype(o_ref.dtype)


def matmul_bias_slab(cols, w_kn, b_1n, out_dtype=jnp.bfloat16):
    """cols (M, Kp) bf16, w (Kp, 128) bf16, b (1, 128) f32 -> (M, 128) slab."""
    M, Kp = cols.shape
    Np = w_kn.shape[1]
    out_bytes = jnp.dtype(out_dtype).itemsize
    cost = pl.CostEstimate(
        flops=2 * M * Kp * Np,
        transcendentals=0,
        bytes_accessed=M * Kp * 2 + Kp * Np * 2 + Np * 4 + M * Np * out_bytes,
    )
    return pl.pallas_call(
        _matmul_bias_kernel,
        out_shape=jax.ShapeDtypeStruct((M, Np), out_dtype),
        grid=(1,),
        in_specs=[
            pl.BlockSpec((M, Kp), lambda i: (0, 0)),
            pl.BlockSpec((Kp, Np), lambda i: (0, 0)),
            pl.BlockSpec((1, Np), lambda i: (0, 0)),
        ],
        out_specs=pl.BlockSpec((M, Np), lambda i: (0, 0)),
        compiler_params=pltpu.CompilerParams(dimension_semantics=("arbitrary",)),
        cost_estimate=cost,
    )(cols, w_kn, b_1n)


def _mff_tail_kernel(a_ref, w2_ref, b2_ref, w3_ref, b3_ref, w22_ref, b22_ref,
                     o_ref, *, n_taps, m_out):
    """Fused convm2 (3 pyramid levels) + convm3 + conv2_2 in a single kernel.

    a_ref  : (7, NF, 128) bf16  pre-gathered level-0-grid activation slabs
    w2_ref : (3, 128, 128) bf16 convm2 per-concat-source blocks
    w3_ref : (3, 128, 128) bf16 convm3 per-concat-source blocks
    w22_ref: (n_taps, 128, 128) f32 conv2_2 per-W-tap 40x40 blocks
    All intermediates stay in vregs/VMEM; nothing touches HBM in between.
    """
    b2 = b2_ref[...]

    def convm2_at(i0, i1, i2):
        acc = jnp.dot(a_ref[i0], w2_ref[0], preferred_element_type=jnp.float32)
        acc += jnp.dot(a_ref[i1], w2_ref[1], preferred_element_type=jnp.float32)
        acc += jnp.dot(a_ref[i2], w2_ref[2], preferred_element_type=jnp.float32)
        return acc + b2

    f0 = convm2_at(0, 1, 2)      # convm2(cat(L0,  L1_0, L2_0))          @ level-0 grid
    f1_0 = convm2_at(1, 3, 4)    # nearest_0(convm2(cat(L1, L0_1, L2_1)))
    f2_0 = convm2_at(2, 5, 6)    # nearest_0(convm2(cat(L2, L1_2, L0_2)))

    F = (jnp.dot(f0.astype(jnp.bfloat16), w3_ref[0],
                 preferred_element_type=jnp.float32)
         + jnp.dot(f1_0.astype(jnp.bfloat16), w3_ref[1],
                   preferred_element_type=jnp.float32)
         + jnp.dot(f2_0.astype(jnp.bfloat16), w3_ref[2],
                   preferred_element_type=jnp.float32)
         + b3_ref[...])          # (NF, 128) f32, convm3 output (40 valid lanes)

    # conv2_2 ((1, n_taps) along W): output row r = sum_j F[r + j] @ W22[j].
    # Rows whose window crosses a (batch, image-row) boundary are garbage and
    # are discarded by the caller; they never contaminate valid rows.
    acc = jnp.zeros((m_out, LANE), jnp.float32)
    for j in range(n_taps):
        acc += jnp.dot(F[j:j + m_out, :], w22_ref[j],
                       preferred_element_type=jnp.float32)
    o_ref[...] = acc + b22_ref[...]


def mff_tail_call(a, p, m_out, n_taps):
    n_a, nf, _ = a.shape
    kernel = functools.partial(_mff_tail_kernel, n_taps=n_taps, m_out=m_out)
    cost = pl.CostEstimate(
        flops=2 * nf * LANE * LANE * 12 + 2 * m_out * LANE * LANE * n_taps,
        transcendentals=0,
        bytes_accessed=(n_a * nf * LANE * 2 + 6 * LANE * LANE * 2
                        + n_taps * LANE * LANE * 4 + 3 * LANE * 4
                        + m_out * LANE * 4),
    )
    return pl.pallas_call(
        kernel,
        out_shape=jax.ShapeDtypeStruct((m_out, LANE), jnp.float32),
        grid=(1,),
        in_specs=[
            pl.BlockSpec((n_a, nf, LANE), lambda i: (0, 0, 0)),
            pl.BlockSpec((3, LANE, LANE), lambda i: (0, 0, 0)),
            pl.BlockSpec((1, LANE), lambda i: (0, 0)),
            pl.BlockSpec((3, LANE, LANE), lambda i: (0, 0, 0)),
            pl.BlockSpec((1, LANE), lambda i: (0, 0)),
            pl.BlockSpec((n_taps, LANE, LANE), lambda i: (0, 0, 0)),
            pl.BlockSpec((1, LANE), lambda i: (0, 0)),
        ],
        out_specs=pl.BlockSpec((m_out, LANE), lambda i: (0, 0)),
        compiler_params=pltpu.CompilerParams(dimension_semantics=("arbitrary",)),
        cost_estimate=cost,
    )(a, p["convm2_blk"], p["convm2_b"], p["convm3_blk"], p["convm3_b"],
      p["conv2_2_taps"], p["conv2_2_b"])


# ---------------------------------------------------------------------------
# Parameter pre-layout (done once, outside the jitted hot path)
# ---------------------------------------------------------------------------
def _prep_bias(b):
    return jnp.zeros((1, LANE), jnp.float32).at[0, :b.shape[0]].set(
        b.astype(jnp.float32))


def _prep_conv_matmul(w, b):
    """(Cout,Cin,kh,kw) torch weight -> (Kp,128) bf16 matmul slab in tap-major
    (kh, kw, cin) K order (matches the channels-last im2col below)."""
    cout, cin, kh, kw = w.shape
    k = kh * kw * cin
    kp = _round_up(k, LANE)
    wk = jnp.transpose(w, (2, 3, 1, 0)).reshape(k, cout).astype(jnp.float32)
    w2 = jnp.zeros((kp, LANE), jnp.float32).at[:k, :cout].set(wk)
    return {"w": w2.astype(jnp.bfloat16), "b": _prep_bias(b),
            "cout": cout, "cin": cin, "kh": kh, "kw": kw}


def _prep_1x1_blocks(w, n_src, dtype=jnp.bfloat16):
    """1x1 conv (Cout, n_src*Cs, 1, 1) -> (n_src, 128, 128) per-source blocks so
    conv(cat(x_0..x_{n-1})) == sum_s x_s @ blocks[s]; the channel concat never
    has to be materialized."""
    cout, cin, _, _ = w.shape
    cs = cin // n_src
    wk = w.reshape(cout, cin).T.astype(jnp.float32)          # (cin, cout)
    blk = jnp.zeros((n_src, LANE, LANE), jnp.float32)
    for s in range(n_src):
        blk = blk.at[s, :cs, :cout].set(wk[s * cs:(s + 1) * cs])
    return blk.astype(dtype)


def _prep_wtap_blocks(w, dtype=jnp.float32):
    """(1, kw) conv (Cout,Cin,1,kw) -> (kw, 128, 128) per-W-tap blocks."""
    cout, cin, _, kw = w.shape
    taps = jnp.transpose(w[:, :, 0, :], (2, 1, 0)).astype(jnp.float32)
    blk = jnp.zeros((kw, LANE, LANE), jnp.float32)
    blk = blk.at[:, :cin, :cout].set(taps)
    return blk.astype(dtype)


def prepare_params(raw):
    return {
        "conv2_1": _prep_conv_matmul(raw["conv2_1_w"], raw["conv2_1_b"]),
        "convm1": _prep_conv_matmul(raw["convm1_w"], raw["convm1_b"]),
        "convm2_blk": _prep_1x1_blocks(raw["convm2_w"], 3),
        "convm2_b": _prep_bias(raw["convm2_b"]),
        "convm3_blk": _prep_1x1_blocks(raw["convm3_w"], 3),
        "convm3_b": _prep_bias(raw["convm3_b"]),
        "conv2_2_taps": _prep_wtap_blocks(raw["conv2_2_w"]),
        "conv2_2_b": _prep_bias(raw["conv2_2_b"]),
        "conv2_2_kw": int(raw["conv2_2_w"].shape[3]),
        "conv2_2_cout": int(raw["conv2_2_w"].shape[0]),
    }


# ---------------------------------------------------------------------------
# Stage 1: conv2_1 with AvgPool2d((100,1),(15,1)) folded in
# ---------------------------------------------------------------------------
def conv_pool_slab(x, cp, pool_kh, pool_sh):
    """conv2_1 (valid, stride 1) + AvgPool2d((pool_kh,1),(pool_sh,1)), fused.

    Both ops are linear along H, so AvgPool(Conv(x)) == Conv(u) sampled at the
    pool strides, where u is the pool_kh-windowed H-mean of x (one cumulative
    sum -> the raw input is read exactly once).  Returns the lane-dense
    (Mp, 128) bf16 output slab (rows = (b, h_pool, w) row-major, channels in
    lanes [0:Cout]) and its logical (B, Ho, Wo) shape.
    """
    B, C, H, W = x.shape
    kh, kw = cp["kh"], cp["kw"]
    Hc, Wc = H - kh + 1, W - kw + 1
    Ho = (Hc - pool_kh) // pool_sh + 1

    cs = jnp.cumsum(x.astype(jnp.float32), axis=2)
    cs = jnp.concatenate([jnp.zeros_like(cs[:, :, :1, :]), cs], axis=2)
    Hu = pool_sh * (Ho - 1) + kh
    u = (cs[:, :, pool_kh:pool_kh + Hu, :] - cs[:, :, :Hu, :]) * (1.0 / pool_kh)
    u = u.transpose(0, 2, 3, 1).astype(jnp.bfloat16)        # (B, Hu, W, C) NHWC

    kp = cp["w"].shape[0]
    taps = [u[:, dh:dh + pool_sh * (Ho - 1) + 1:pool_sh, dw:dw + Wc, :]
            for dh in range(kh) for dw in range(kw)]
    k = kh * kw * C
    if kp != k:                      # K pad folded into the same concatenate
        taps.append(jnp.zeros((B, Ho, Wc, kp - k), jnp.bfloat16))
    cols = jnp.concatenate(taps, axis=-1).reshape(B * Ho * Wc, kp)
    cols = _pad_rows(cols)
    slab = matmul_bias_slab(cols, cp["w"], cp["b"], jnp.bfloat16)
    return slab, (B, Ho, Wc)


# ---------------------------------------------------------------------------
# Stage 2: bilinear pyramid + convm1 on both scales (one merged matmul)
# ---------------------------------------------------------------------------
def bilinear_resize_cl(x, out_h, out_w):
    """Bilinear, align_corners=True, channels-last (B,H,W,C) input."""
    B, H, W, C = x.shape

    def coords(out, inp):
        s = (inp - 1) / (out - 1) if out > 1 else 0.0
        return jnp.arange(out, dtype=jnp.float32) * jnp.float32(s)

    sh, sw = coords(out_h, H), coords(out_w, W)
    h0 = jnp.clip(jnp.floor(sh).astype(jnp.int32), 0, H - 1)
    h1 = jnp.clip(h0 + 1, 0, H - 1)
    lh = sh - h0.astype(jnp.float32)
    w0 = jnp.clip(jnp.floor(sw).astype(jnp.int32), 0, W - 1)
    w1 = jnp.clip(w0 + 1, 0, W - 1)
    lw = sw - w0.astype(jnp.float32)

    xf = x.astype(jnp.float32)
    top, bot = xf[:, h0], xf[:, h1]
    rows = top * (1.0 - lh)[None, :, None, None] + bot * lh[None, :, None, None]
    left, right = rows[:, :, w0], rows[:, :, w1]
    out = left * (1.0 - lw)[None, None, :, None] + right * lw[None, None, :, None]
    return out.astype(jnp.bfloat16)


def _im2col_3x3_pad1(s, kp):
    """Channels-last 3x3/pad-1 patches, tap-major (dh,dw,cin) K order; K pad to
    kp is folded into the same concatenate (no separate pad pass)."""
    B, H, W, C = s.shape
    sp = jnp.pad(s, ((0, 0), (1, 1), (1, 1), (0, 0)))
    taps = [sp[:, dh:dh + H, dw:dw + W, :] for dh in range(3) for dw in range(3)]
    k = 9 * C
    if kp != k:
        taps.append(jnp.zeros((B, H, W, kp - k), s.dtype))
    return jnp.concatenate(taps, axis=-1).reshape(B * H * W, kp)


def mff_scales(p, l0_slab, meta0):
    """convm1 (shared weights) on both bilinear pyramid scales as a SINGLE
    merged, lane-dense Pallas matmul; returns the combined bf16 output slab."""
    B, H0, W0 = meta0
    cp = p["convm1"]
    m0 = B * H0 * W0
    l0_cl = l0_slab[:m0, :cp["cin"]].reshape(B, H0, W0, cp["cin"])
    s2 = bilinear_resize_cl(l0_cl, 35, 11)
    s3 = bilinear_resize_cl(l0_cl, 18, 7)

    kp = cp["w"].shape[0]
    cols2 = _im2col_3x3_pad1(s2, kp)
    cols3 = _im2col_3x3_pad1(s3, kp)
    m1, m2 = cols2.shape[0], cols3.shape[0]
    pad = (-(m1 + m2)) % SUB
    parts = [cols2, cols3]
    if pad:                          # M pad folded into the same concatenate
        parts.append(jnp.zeros((pad, kp), cols2.dtype))
    cols = jnp.concatenate(parts, axis=0)
    slab = matmul_bias_slab(cols, cp["w"], cp["b"], jnp.bfloat16)
    # TODO(synk): the 3x3 patch gather still materializes a small cols buffer
    # in HBM; moving the 9-tap shifted accumulation inside the kernel would
    # remove it entirely.
    return slab, (B, 35, 11), (B, 18, 7), m1


# ---------------------------------------------------------------------------
# Stage 3: cross-connection + convm2 + convm3 + conv2_2 (one fused kernel)
# ---------------------------------------------------------------------------
def _nmap(out_size, in_size):
    # PyTorch 'nearest' index map (legacy floor(i*in/out)).
    # TODO(synk): torch uses float scale; the integer form can differ by one
    # index when i*in/out is exactly integral under fp rounding.
    return (jnp.arange(out_size) * in_size) // out_size


def mff_cross_and_head(p, l0_slab, meta0, lvl_slab, meta1, meta2, m1):
    """Everything after convm1 is linear and the nearest-resizes are pure row
    gathers, so the whole cross-connection collapses onto the level-0 grid:
    seven gathered slabs A0..A6 (built with a single fancy-index gather) feed
    one fused Pallas kernel computing f0 / f1_0 / f2_0 (convm2), convm3 and
    conv2_2, with all intermediates VMEM-resident."""
    B, H0, W0 = meta0
    _, H1, W1 = meta1
    _, H2, W2 = meta2
    m0 = B * H0 * W0
    n_taps = p["conv2_2_kw"]
    m_out = _round_up(m0, SUB)
    nf = _round_up(m_out + n_taps - 1, SUB)

    n01h, n01w = _nmap(H0, H1), _nmap(W0, W1)
    n02h, n02w = _nmap(H0, H2), _nmap(W0, W2)
    n10h, n10w = _nmap(H1, H0), _nmap(W1, W0)
    n12h, n12w = _nmap(H1, H2), _nmap(W1, W2)
    n21h, n21w = _nmap(H2, H1), _nmap(W2, W1)
    n20h, n20w = _nmap(H2, H0), _nmap(W2, W0)

    off0 = 0
    off1 = l0_slab.shape[0]
    off2 = off1 + m1
    src = jnp.concatenate([l0_slab, lvl_slab], axis=0)

    def rows(off, hs, ws, hv, wv):
        pix = hv[:, None] * ws + wv[None, :]
        r = off + jnp.arange(B)[:, None, None] * (hs * ws) + pix[None]
        return r.reshape(-1)

    idx = jnp.concatenate([
        rows(off0, H0, W0, jnp.arange(H0), jnp.arange(W0)),   # A0 = L0
        rows(off1, H1, W1, n01h, n01w),                       # A1 = G(0<-1) L1
        rows(off2, H2, W2, n02h, n02w),                       # A2 = G(0<-2) L2
        rows(off0, H0, W0, n10h[n01h], n10w[n01w]),           # A3 = G(0<-1)G(1<-0) L0
        rows(off2, H2, W2, n12h[n01h], n12w[n01w]),           # A4 = G(0<-1)G(1<-2) L2
        rows(off1, H1, W1, n21h[n02h], n21w[n02w]),           # A5 = G(0<-2)G(2<-1) L1
        rows(off0, H0, W0, n20h[n02h], n20w[n02w]),           # A6 = G(0<-2)G(2<-0) L0
    ])
    a = src[idx].reshape(7, m0, LANE)
    a = jnp.pad(a, ((0, 0), (0, nf - m0), (0, 0)))

    out = mff_tail_call(a, p, m_out, n_taps)                  # (m_out, 128) f32
    wo = W0 - n_taps + 1
    cout = p["conv2_2_cout"]
    y = out[:m0].reshape(B, H0, W0, LANE)[:, :, :wo, :cout]
    return y.transpose(0, 3, 1, 2)                            # NCHW final output


# ---------------------------------------------------------------------------
# Waveguide forward
# ---------------------------------------------------------------------------
def waveguide_forward(p, x):
    # conv2_1 with AvgPool2d((100,1),(15,1)) fused in (exact, both linear in H).
    l0_slab, meta0 = conv_pool_slab(x, p["conv2_1"], pool_kh=100, pool_sh=15)
    # bilinear pyramid + convm1 on both scales (one merged Pallas matmul).
    lvl_slab, meta1, meta2, m1 = mff_scales(p, l0_slab, meta0)
    # cross-connection + convm2 + convm3 + conv2_2 in a single fused kernel.
    return mff_cross_and_head(p, l0_slab, meta0, lvl_slab, meta1, meta2, m1)


# ---------------------------------------------------------------------------
# Deterministic parameter init + driver
# ---------------------------------------------------------------------------
def init_params(key):
    ks = jax.random.split(key, 10)
    n = lambda k, s, sc: sc * jax.random.normal(k, s, dtype=jnp.float32)
    return {
        "conv2_1_w": n(ks[0], (32, 22, 5, 5), 0.05),
        "conv2_1_b": n(ks[1], (32,), 0.01),
        "convm1_w": n(ks[2], (32, 32, 3, 3), 0.05),
        "convm1_b": n(ks[3], (32,), 0.01),
        "convm2_w": n(ks[4], (32, 96, 1, 1), 0.05),
        "convm2_b": n(ks[5], (32,), 0.01),
        "convm3_w": n(ks[6], (40, 96, 1, 1), 0.05),
        "convm3_b": n(ks[7], (40,), 0.01),
        "conv2_2_w": n(ks[8], (40, 40, 1, 18), 0.05),
        "conv2_2_b": n(ks[9], (40,), 0.01),
    }


if __name__ == "__main__":
    key = jax.random.PRNGKey(0)
    k_in, k_par = jax.random.split(key)

    # Smallest shape consistent with the module:
    #  - AvgPool2d kernel (100,1) requires H-4 >= 100  -> H = 104
    #  - conv2_2 kernel (1,18) requires W-4 >= 18      -> W = 22
    x = jax.random.normal(k_in, (2, 22, 104, 22), dtype=jnp.float32)
    raw = init_params(k_par)
    params = prepare_params(raw)      # weight layout hoisted out of the hot path

    fwd = jax.jit(functools.partial(waveguide_forward, params))
    out = jax.block_until_ready(fwd(x))
    assert out.shape == (2, 40, 1, 1), out.shape
    assert out.dtype == jnp.float32
    print("KERNEL_OK")
</pallas_src>

<mosaic_0001>
module attributes {stable_mosaic.version = 11 : i64} {
  func.func @_matmul_bias_kernel(%arg0: i32, %arg1: memref<40x640xbf16, #tpu.memory_space<vmem>>, %arg2: memref<640x128xbf16, #tpu.memory_space<vmem>>, %arg3: memref<1x128xf32, #tpu.memory_space<vmem>>, %arg4: memref<40x128xbf16, #tpu.memory_space<vmem>>) attributes {dimension_semantics = [#tpu.dimension_semantics<arbitrary>], iteration_bounds = array<i64: 1>, scalar_prefetch = 0 : i64, scratch_operands = 0 : i64, tpu.core_type = #tpu.core_type<tc>, window_params = [{pipeline_mode = #tpu.pipeline_mode<synchronous>, transform_indices = @transform_0, window_bounds = array<i64: 40, 640>}, {pipeline_mode = #tpu.pipeline_mode<synchronous>, transform_indices = @transform_1, window_bounds = array<i64: 640, 128>}, {pipeline_mode = #tpu.pipeline_mode<synchronous>, transform_indices = @transform_2, window_bounds = array<i64: 1, 128>}, {pipeline_mode = #tpu.pipeline_mode<synchronous>, transform_indices = @transform_3, window_bounds = array<i64: 40, 128>}]} {
    %c0 = arith.constant 0 : index
    %c0_0 = arith.constant 0 : index
    %0 = vector.load %arg1[%c0, %c0_0] : memref<40x640xbf16, #tpu.memory_space<vmem>>, vector<40x640xbf16>
    %c0_1 = arith.constant 0 : index
    %c0_2 = arith.constant 0 : index
    %1 = vector.load %arg2[%c0_1, %c0_2] : memref<640x128xbf16, #tpu.memory_space<vmem>>, vector<640x128xbf16>
    %cst = arith.constant dense<0.000000e+00> : vector<40x128xf32>
    %2 = tpu.matmul %0, %1, %cst {dimension_numbers = #tpu.dot_dimension_numbers<[1], [0], [0], [1], [0, 0, 1, 1], [], []>} : vector<40x640xbf16>, vector<640x128xbf16>, vector<40x128xf32> -> vector<40x128xf32>
    %c0_3 = arith.constant 0 : index
    %c0_4 = arith.constant 0 : index
    %3 = vector.load %arg3[%c0_3, %c0_4] : memref<1x128xf32, #tpu.memory_space<vmem>>, vector<1x128xf32>
    %4 = vector.broadcast %3 : vector<1x128xf32> to vector<40x128xf32>
    %5 = arith.addf %2, %4 : vector<40x128xf32>
    %6 = arith.truncf %5 : vector<40x128xf32> to vector<40x128xbf16>
    %c0_5 = arith.constant 0 : index
    %c0_6 = arith.constant 0 : index
    %7 = vector.load %arg4[%c0_5, %c0_6] : memref<40x128xbf16, #tpu.memory_space<vmem>>, vector<40x128xbf16>
    tpu.vector_store %arg4[%c0_5, %c0_6], %6 {strides = array<i32>} : memref<40x128xbf16, #tpu.memory_space<vmem>>, vector<40x128xbf16>,
    return
  }
  func.func @transform_0(%arg0: i32) -> (i32, i32) {
    %c0_i32 = arith.constant 0 : i32
    %c0_i32_0 = arith.constant 0 : i32
    %c0_i32_1 = arith.constant 0 : i32
    return %c0_i32, %c0_i32_0 : i32, i32
  }
  func.func @transform_1(%arg0: i32) -> (i32, i32) {
    %c0_i32 = arith.constant 0 : i32
    %c0_i32_0 = arith.constant 0 : i32
    %c0_i32_1 = arith.constant 0 : i32
    return %c0_i32, %c0_i32_0 : i32, i32
  }
  func.func @transform_2(%arg0: i32) -> (i32, i32) {
    %c0_i32 = arith.constant 0 : i32
    %c0_i32_0 = arith.constant 0 : i32
    %c0_i32_1 = arith.constant 0 : i32
    return %c0_i32, %c0_i32_0 : i32, i32
  }
  func.func @transform_3(%arg0: i32) -> (i32, i32) {
    %c0_i32 = arith.constant 0 : i32
    %c0_i32_0 = arith.constant 0 : i32
    %c0_i32_1 = arith.constant 0 : i32
    return %c0_i32, %c0_i32_0 : i32, i32
  }
}

module attributes {stable_mosaic.version = 11 : i64} {
  func.func @_matmul_bias_kernel(%arg0: i32, %arg1: memref<1024x384xbf16, #tpu.memory_space<vmem>>, %arg2: memref<384x128xbf16, #tpu.memory_space<vmem>>, %arg3: memref<1x128xf32, #tpu.memory_space<vmem>>, %arg4: memref<1024x128xbf16, #tpu.memory_space<vmem>>) attributes {dimension_semantics = [#tpu.dimension_semantics<arbitrary>], iteration_bounds = array<i64: 1>, scalar_prefetch = 0 : i64, scratch_operands = 0 : i64, tpu.core_type = #tpu.core_type<tc>, window_params = [{pipeline_mode = #tpu.pipeline_mode<synchronous>, transform_indices = @transform_0, window_bounds = array<i64: 1024, 384>}, {pipeline_mode = #tpu.pipeline_mode<synchronous>, transform_indices = @transform_1, window_bounds = array<i64: 384, 128>}, {pipeline_mode = #tpu.pipeline_mode<synchronous>, transform_indices = @transform_2, window_bounds = array<i64: 1, 128>}, {pipeline_mode = #tpu.pipeline_mode<synchronous>, transform_indices = @transform_3, window_bounds = array<i64: 1024, 128>}]} {
    %c0 = arith.constant 0 : index
    %c0_0 = arith.constant 0 : index
    %0 = vector.load %arg1[%c0, %c0_0] : memref<1024x384xbf16, #tpu.memory_space<vmem>>, vector<1024x384xbf16>
    %c0_1 = arith.constant 0 : index
    %c0_2 = arith.constant 0 : index
    %1 = vector.load %arg2[%c0_1, %c0_2] : memref<384x128xbf16, #tpu.memory_space<vmem>>, vector<384x128xbf16>
    %cst = arith.constant dense<0.000000e+00> : vector<1024x128xf32>
    %2 = tpu.matmul %0, %1, %cst {dimension_numbers = #tpu.dot_dimension_numbers<[1], [0], [0], [1], [0, 0, 1, 1], [], []>} : vector<1024x384xbf16>, vector<384x128xbf16>, vector<1024x128xf32> -> vector<1024x128xf32>
    %c0_3 = arith.constant 0 : index
    %c0_4 = arith.constant 0 : index
    %3 = vector.load %arg3[%c0_3, %c0_4] : memref<1x128xf32, #tpu.memory_space<vmem>>, vector<1x128xf32>
    %4 = vector.broadcast %3 : vector<1x128xf32> to vector<1024x128xf32>
    %5 = arith.addf %2, %4 : vector<1024x128xf32>
    %6 = arith.truncf %5 : vector<1024x128xf32> to vector<1024x128xbf16>
    %c0_5 = arith.constant 0 : index
    %c0_6 = arith.constant 0 : index
    %7 = vector.load %arg4[%c0_5, %c0_6] : memref<1024x128xbf16, #tpu.memory_space<vmem>>, vector<1024x128xbf16>
    tpu.vector_store %arg4[%c0_5, %c0_6], %6 {strides = array<i32>} : memref<1024x128xbf16, #tpu.memory_space<vmem>>, vector<1024x128xbf16>,
    return
  }
  func.func @transform_0(%arg0: i32) -> (i32, i32) {
    %c0_i32 = arith.constant 0 : i32
    %c0_i32_0 = arith.constant 0 : i32
    %c0_i32_1 = arith.constant 0 : i32
    return %c0_i32, %c0_i32_0 : i32, i32
  }
  func.func @transform_1(%arg0: i32) -> (i32, i32) {
    %c0_i32 = arith.constant 0 : i32
    %c0_i32_0 = arith.constant 0 : i32
    %c0_i32_1 = arith.constant 0 : i32
    return %c0_i32, %c0_i32_0 : i32, i32
  }
  func.func @transform_2(%arg0: i32) -> (i32, i32) {
    %c0_i32 = arith.constant 0 : i32
    %c0_i32_0 = arith.constant 0 : i32
    %c0_i32_1 = arith.constant 0 : i32
    return %c0_i32, %c0_i32_0 : i32, i32
  }
  func.func @transform_3(%arg0: i32) -> (i32, i32) {
    %c0_i32 = arith.constant 0 : i32
    %c0_i32_0 = arith.constant 0 : i32
    %c0_i32_1 = arith.constant 0 : i32
    return %c0_i32, %c0_i32_0 : i32, i32
  }
}

module attributes {stable_mosaic.version = 11 : i64} {
  func.func @_mff_tail_kernel(%arg0: i32, %arg1: memref<7x64x128xbf16, #tpu.memory_space<vmem>>, %arg2: memref<3x128x128xbf16, #tpu.memory_space<vmem>>, %arg3: memref<1x128xf32, #tpu.memory_space<vmem>>, %arg4: memref<3x128x128xbf16, #tpu.memory_space<vmem>>, %arg5: memref<1x128xf32, #tpu.memory_space<vmem>>, %arg6: memref<18x128x128xf32, #tpu.memory_space<vmem>>, %arg7: memref<1x128xf32, #tpu.memory_space<vmem>>, %arg8: memref<40x128xf32, #tpu.memory_space<vmem>>) attributes {dimension_semantics = [#tpu.dimension_semantics<arbitrary>], iteration_bounds = array<i64: 1>, scalar_prefetch = 0 : i64, scratch_operands = 0 : i64, tpu.core_type = #tpu.core_type<tc>, window_params = [{pipeline_mode = #tpu.pipeline_mode<synchronous>, transform_indices = @transform_0, window_bounds = array<i64: 7, 64, 128>}, {pipeline_mode = #tpu.pipeline_mode<synchronous>, transform_indices = @transform_1, window_bounds = array<i64: 3, 128, 128>}, {pipeline_mode = #tpu.pipeline_mode<synchronous>, transform_indices = @transform_2, window_bounds = array<i64: 1, 128>}, {pipeline_mode = #tpu.pipeline_mode<synchronous>, transform_indices = @transform_3, window_bounds = array<i64: 3, 128, 128>}, {pipeline_mode = #tpu.pipeline_mode<synchronous>, transform_indices = @transform_4, window_bounds = array<i64: 1, 128>}, {pipeline_mode = #tpu.pipeline_mode<synchronous>, transform_indices = @transform_5, window_bounds = array<i64: 18, 128, 128>}, {pipeline_mode = #tpu.pipeline_mode<synchronous>, transform_indices = @transform_6, window_bounds = array<i64: 1, 128>}, {pipeline_mode = #tpu.pipeline_mode<synchronous>, transform_indices = @transform_7, window_bounds = array<i64: 40, 128>}]} {
    %c0 = arith.constant 0 : index
    %c0_0 = arith.constant 0 : index
    %0 = vector.load %arg3[%c0, %c0_0] : memref<1x128xf32, #tpu.memory_space<vmem>>, vector<1x128xf32>
    %c0_1 = arith.constant 0 : index
    %c0_2 = arith.constant 0 : index
    %c0_3 = arith.constant 0 : index
    %1 = vector.load %arg1[%c0_1, %c0_2, %c0_3] : memref<7x64x128xbf16, #tpu.memory_space<vmem>>, vector<1x64x128xbf16>
    %2 = vector.shape_cast %1 : vector<1x64x128xbf16> to vector<64x128xbf16>
    %c0_4 = arith.constant 0 : index
    %c0_5 = arith.constant 0 : index
    %c0_6 = arith.constant 0 : index
    %3 = vector.load %arg2[%c0_4, %c0_5, %c0_6] : memref<3x128x128xbf16, #tpu.memory_space<vmem>>, vector<1x128x128xbf16>
    %4 = vector.shape_cast %3 : vector<1x128x128xbf16> to vector<128x128xbf16>
    %cst = arith.constant dense<0.000000e+00> : vector<64x128xf32>
    %5 = tpu.matmul %2, %4, %cst {dimension_numbers = #tpu.dot_dimension_numbers<[1], [0], [0], [1], [0, 0, 1, 1], [], []>} : vector<64x128xbf16>, vector<128x128xbf16>, vector<64x128xf32> -> vector<64x128xf32>
    %c1 = arith.constant 1 : index
    %c0_7 = arith.constant 0 : index
    %c0_8 = arith.constant 0 : index
    %6 = vector.load %arg1[%c1, %c0_7, %c0_8] : memref<7x64x128xbf16, #tpu.memory_space<vmem>>, vector<1x64x128xbf16>
    %7 = vector.shape_cast %6 : vector<1x64x128xbf16> to vector<64x128xbf16>
    %c1_9 = arith.constant 1 : index
    %c0_10 = arith.constant 0 : index
    %c0_11 = arith.constant 0 : index
    %8 = vector.load %arg2[%c1_9, %c0_10, %c0_11] : memref<3x128x128xbf16, #tpu.memory_space<vmem>>, vector<1x128x128xbf16>
    %9 = vector.shape_cast %8 : vector<1x128x128xbf16> to vector<128x128xbf16>
    %cst_12 = arith.constant dense<0.000000e+00> : vector<64x128xf32>
    %10 = tpu.matmul %7, %9, %cst_12 {dimension_numbers = #tpu.dot_dimension_numbers<[1], [0], [0], [1], [0, 0, 1, 1], [], []>} : vector<64x128xbf16>, vector<128x128xbf16>, vector<64x128xf32> -> vector<64x128xf32>
    %11 = arith.addf %5, %10 : vector<64x128xf32>
    %c2 = arith.constant 2 : index
    %c0_13 = arith.constant 0 : index
    %c0_14 = arith.constant 0 : index
    %12 = vector.load %arg1[%c2, %c0_13, %c0_14] : memref<7x64x128xbf16, #tpu.memory_space<vmem>>, vector<1x64x128xbf16>
    %13 = vector.shape_cast %12 : vector<1x64x128xbf16> to vector<64x128xbf16>
    %c2_15 = arith.constant 2 : index
    %c0_16 = arith.constant 0 : index
    %c0_17 = arith.constant 0 : index
    %14 = vector.load %arg2[%c2_15, %c0_16, %c0_17] : memref<3x128x128xbf16, #tpu.memory_space<vmem>>, vector<1x128x128xbf16>
    %15 = vector.shape_cast %14 : vector<1x128x128xbf16> to vector<128x128xbf16>
    %cst_18 = arith.constant dense<0.000000e+00> : vector<64x128xf32>
    %16 = tpu.matmul %13, %15, %cst_18 {dimension_numbers = #tpu.dot_dimension_numbers<[1], [0], [0], [1], [0, 0, 1, 1], [], []>} : vector<64x128xbf16>, vector<128x128xbf16>, vector<64x128xf32> -> vector<64x128xf32>
    %17 = arith.addf %11, %16 : vector<64x128xf32>
    %18 = vector.broadcast %0 : vector<1x128xf32> to vector<64x128xf32>
    %19 = arith.addf %17, %18 : vector<64x128xf32>
    %c1_19 = arith.constant 1 : index
    %c0_20 = arith.constant 0 : index
    %c0_21 = arith.constant 0 : index
    %20 = vector.load %arg1[%c1_19, %c0_20, %c0_21] : memref<7x64x128xbf16, #tpu.memory_space<vmem>>, vector<1x64x128xbf16>
    %21 = vector.shape_cast %20 : vector<1x64x128xbf16> to vector<64x128xbf16>
    %c0_22 = arith.constant 0 : index
    %c0_23 = arith.constant 0 : index
    %c0_24 = arith.constant 0 : index
    %22 = vector.load %arg2[%c0_22, %c0_23, %c0_24] : memref<3x128x128xbf16, #tpu.memory_space<vmem>>, vector<1x128x128xbf16>
    %23 = vector.shape_cast %22 : vector<1x128x128xbf16> to vector<128x128xbf16>
    %cst_25 = arith.constant dense<0.000000e+00> : vector<64x128xf32>
    %24 = tpu.matmul %21, %23, %cst_25 {dimension_numbers = #tpu.dot_dimension_numbers<[1], [0], [0], [1], [0, 0, 1, 1], [], []>} : vector<64x128xbf16>, vector<128x128xbf16>, vector<64x128xf32> -> vector<64x128xf32>
    %c3 = arith.constant 3 : index
    %c0_26 = arith.constant 0 : index
    %c0_27 = arith.constant 0 : index
    %25 = vector.load %arg1[%c3, %c0_26, %c0_27] : memref<7x64x128xbf16, #tpu.memory_space<vmem>>, vector<1x64x128xbf16>
    %26 = vector.shape_cast %25 : vector<1x64x128xbf16> to vector<64x128xbf16>
    %c1_28 = arith.constant 1 : index
    %c0_29 = arith.constant 0 : index
    %c0_30 = arith.constant 0 : index
    %27 = vector.load %arg2[%c1_28, %c0_29, %c0_30] : memref<3x128x128xbf16, #tpu.memory_space<vmem>>, vector<1x128x128xbf16>
    %28 = vector.shape_cast %27 : vector<1x128x128xbf16> to vector<128x128xbf16>
    %cst_31 = arith.constant dense<0.000000e+00> : vector<64x128xf32>
    %29 = tpu.matmul %26, %28, %cst_31 {dimension_numbers = #tpu.dot_dimension_numbers<[1], [0], [0], [1], [0, 0, 1, 1], [], []>} : vector<64x128xbf16>, vector<128x128xbf16>, vector<64x128xf32> -> vector<64x128xf32>
    %30 = arith.addf %24, %29 : vector<64x128xf32>
    %c4 = arith.constant 4 : index
    %c0_32 = arith.constant 0 : index
    %c0_33 = arith.constant 0 : index
    %31 = vector.load %arg1[%c4, %c0_32, %c0_33] : memref<7x64x128xbf16, #tpu.memory_space<vmem>>, vector<1x64x128xbf16>
    %32 = vector.shape_cast %31 : vector<1x64x128xbf16> to vector<64x128xbf16>
    %c2_34 = arith.constant 2 : index
    %c0_35 = arith.constant 0 : index
    %c0_36 = arith.constant 0 : index
    %33 = vector.load %arg2[%c2_34, %c0_35, %c0_36] : memref<3x128x128xbf16, #tpu.memory_space<vmem>>, vector<1x128x128xbf16>
    %34 = vector.shape_cast %33 : vector<1x128x128xbf16> to vector<128x128xbf16>
    %cst_37 = arith.constant dense<0.000000e+00> : vector<64x128xf32>
    %35 = tpu.matmul %32, %34, %cst_37 {dimension_numbers = #tpu.dot_dimension_numbers<[1], [0], [0], [1], [0, 0, 1, 1], [], []>} : vector<64x128xbf16>, vector<128x128xbf16>, vector<64x128xf32> -> vector<64x128xf32>
    %36 = arith.addf %30, %35 : vector<64x128xf32>
    %37 = vector.broadcast %0 : vector<1x128xf32> to vector<64x128xf32>
    %38 = arith.addf %36, %37 : vector<64x128xf32>
    %c2_38 = arith.constant 2 : index
    %c0_39 = arith.constant 0 : index
    %c0_40 = arith.constant 0 : index
    %39 = vector.load %arg1[%c2_38, %c0_39, %c0_40] : memref<7x64x128xbf16, #tpu.memory_space<vmem>>, vector<1x64x128xbf16>
    %40 = vector.shape_cast %39 : vector<1x64x128xbf16> to vector<64x128xbf16>
    %c0_41 = arith.constant 0 : index
    %c0_42 = arith.constant 0 : index
    %c0_43 = arith.constant 0 : index
    %41 = vector.load %arg2[%c0_41, %c0_42, %c0_43] : memref<3x128x128xbf16, #tpu.memory_space<vmem>>, vector<1x128x128xbf16>
    %42 = vector.shape_cast %41 : vector<1x128x128xbf16> to vector<128x128xbf16>
    %cst_44 = arith.constant dense<0.000000e+00> : vector<64x128xf32>
    %43 = tpu.matmul %40, %42, %cst_44 {dimension_numbers = #tpu.dot_dimension_numbers<[1], [0], [0], [1], [0, 0, 1, 1], [], []>} : vector<64x128xbf16>, vector<128x128xbf16>, vector<64x128xf32> -> vector<64x128xf32>
    %c5 = arith.constant 5 : index
    %c0_45 = arith.constant 0 : index
    %c0_46 = arith.constant 0 : index
    %44 = vector.load %arg1[%c5, %c0_45, %c0_46] : memref<7x64x128xbf16, #tpu.memory_space<vmem>>, vector<1x64x128xbf16>
    %45 = vector.shape_cast %44 : vector<1x64x128xbf16> to vector<64x128xbf16>
    %c1_47 = arith.constant 1 : index
    %c0_48 = arith.constant 0 : index
    %c0_49 = arith.constant 0 : index
    %46 = vector.load %arg2[%c1_47, %c0_48, %c0_49] : memref<3x128x128xbf16, #tpu.memory_space<vmem>>, vector<1x128x128xbf16>
    %47 = vector.shape_cast %46 : vector<1x128x128xbf16> to vector<128x128xbf16>
    %cst_50 = arith.constant dense<0.000000e+00> : vector<64x128xf32>
    %48 = tpu.matmul %45, %47, %cst_50 {dimension_numbers = #tpu.dot_dimension_numbers<[1], [0], [0], [1], [0, 0, 1, 1], [], []>} : vector<64x128xbf16>, vector<128x128xbf16>, vector<64x128xf32> -> vector<64x128xf32>
    %49 = arith.addf %43, %48 : vector<64x128xf32>
    %c6 = arith.constant 6 : index
    %c0_51 = arith.constant 0 : index
    %c0_52 = arith.constant 0 : index
    %50 = vector.load %arg1[%c6, %c0_51, %c0_52] : memref<7x64x128xbf16, #tpu.memory_space<vmem>>, vector<1x64x128xbf16>
    %51 = vector.shape_cast %50 : vector<1x64x128xbf16> to vector<64x128xbf16>
    %c2_53 = arith.constant 2 : index
    %c0_54 = arith.constant 0 : index
    %c0_55 = arith.constant 0 : index
    %52 = vector.load %arg2[%c2_53, %c0_54, %c0_55] : memref<3x128x128xbf16, #tpu.memory_space<vmem>>, vector<1x128x128xbf16>
    %53 = vector.shape_cast %52 : vector<1x128x128xbf16> to vector<128x128xbf16>
    %cst_56 = arith.constant dense<0.000000e+00> : vector<64x128xf32>
    %54 = tpu.matmul %51, %53, %cst_56 {dimension_numbers = #tpu.dot_dimension_numbers<[1], [0], [0], [1], [0, 0, 1, 1], [], []>} : vector<64x128xbf16>, vector<128x128xbf16>, vector<64x128xf32> -> vector<64x128xf32>
    %55 = arith.addf %49, %54 : vector<64x128xf32>
    %56 = vector.broadcast %0 : vector<1x128xf32> to vector<64x128xf32>
    %57 = arith.addf %55, %56 : vector<64x128xf32>
    %58 = arith.truncf %19 : vector<64x128xf32> to vector<64x128xbf16>
    %c0_57 = arith.constant 0 : index
    %c0_58 = arith.constant 0 : index
    %c0_59 = arith.constant 0 : index
    %59 = vector.load %arg4[%c0_57, %c0_58, %c0_59] : memref<3x128x128xbf16, #tpu.memory_space<vmem>>, vector<1x128x128xbf16>
    %60 = vector.shape_cast %59 : vector<1x128x128xbf16> to vector<128x128xbf16>
    %cst_60 = arith.constant dense<0.000000e+00> : vector<64x128xf32>
    %61 = tpu.matmul %58, %60, %cst_60 {dimension_numbers = #tpu.dot_dimension_numbers<[1], [0], [0], [1], [0, 0, 1, 1], [], []>} : vector<64x128xbf16>, vector<128x128xbf16>, vector<64x128xf32> -> vector<64x128xf32>
    %62 = arith.truncf %38 : vector<64x128xf32> to vector<64x128xbf16>
    %c1_61 = arith.constant 1 : index
    %c0_62 = arith.constant 0 : index
    %c0_63 = arith.constant 0 : index
    %63 = vector.load %arg4[%c1_61, %c0_62, %c0_63] : memref<3x128x128xbf16, #tpu.memory_space<vmem>>, vector<1x128x128xbf16>
    %64 = vector.shape_cast %63 : vector<1x128x128xbf16> to vector<128x128xbf16>
    %cst_64 = arith.constant dense<0.000000e+00> : vector<64x128xf32>
    %65 = tpu.matmul %62, %64, %cst_64 {dimension_numbers = #tpu.dot_dimension_numbers<[1], [0], [0], [1], [0, 0, 1, 1], [], []>} : vector<64x128xbf16>, vector<128x128xbf16>, vector<64x128xf32> -> vector<64x128xf32>
    %66 = arith.addf %61, %65 : vector<64x128xf32>
    %67 = arith.truncf %57 : vector<64x128xf32> to vector<64x128xbf16>
    %c2_65 = arith.constant 2 : index
    %c0_66 = arith.constant 0 : index
    %c0_67 = arith.constant 0 : index
    %68 = vector.load %arg4[%c2_65, %c0_66, %c0_67] : memref<3x128x128xbf16, #tpu.memory_space<vmem>>, vector<1x128x128xbf16>
    %69 = vector.shape_cast %68 : vector<1x128x128xbf16> to vector<128x128xbf16>
    %cst_68 = arith.constant dense<0.000000e+00> : vector<64x128xf32>
    %70 = tpu.matmul %67, %69, %cst_68 {dimension_numbers = #tpu.dot_dimension_numbers<[1], [0], [0], [1], [0, 0, 1, 1], [], []>} : vector<64x128xbf16>, vector<128x128xbf16>, vector<64x128xf32> -> vector<64x128xf32>
    %71 = arith.addf %66, %70 : vector<64x128xf32>
    %c0_69 = arith.constant 0 : index
    %c0_70 = arith.constant 0 : index
    %72 = vector.load %arg5[%c0_69, %c0_70] : memref<1x128xf32, #tpu.memory_space<vmem>>, vector<1x128xf32>
    %73 = vector.broadcast %72 : vector<1x128xf32> to vector<64x128xf32>
    %74 = arith.addf %71, %73 : vector<64x128xf32>
    %cst_71 = arith.constant 0.000000e+00 : f32
    %75 = vector.broadcast %cst_71 : f32 to vector<40x128xf32>
    %76 = vector.extract_strided_slice %74 {offsets = [0, 0], sizes = [40, 128], strides = [1, 1]} : vector<64x128xf32> to vector<40x128xf32>
    %c0_72 = arith.constant 0 : index
    %c0_73 = arith.constant 0 : index
    %c0_74 = arith.constant 0 : index
    %77 = vector.load %arg6[%c0_72, %c0_73, %c0_74] : memref<18x128x128xf32, #tpu.memory_space<vmem>>, vector<1x128x128xf32>
    %78 = vector.shape_cast %77 : vector<1x128x128xf32> to vector<128x128xf32>
    %cst_75 = arith.constant dense<0.000000e+00> : vector<40x128xf32>
    %79 = tpu.matmul %76, %78, %cst_75 {dimension_numbers = #tpu.dot_dimension_numbers<[1], [0], [0], [1], [0, 0, 1, 1], [], []>} : vector<40x128xf32>, vector<128x128xf32>, vector<40x128xf32> -> vector<40x128xf32>
    %80 = arith.addf %75, %79 : vector<40x128xf32>
    %81 = vector.extract_strided_slice %74 {offsets = [1, 0], sizes = [40, 128], strides = [1, 1]} : vector<64x128xf32> to vector<40x128xf32>
    %c1_76 = arith.constant 1 : index
    %c0_77 = arith.constant 0 : index
    %c0_78 = arith.constant 0 : index
    %82 = vector.load %arg6[%c1_76, %c0_77, %c0_78] : memref<18x128x128xf32, #tpu.memory_space<vmem>>, vector<1x128x128xf32>
    %83 = vector.shape_cast %82 : vector<1x128x128xf32> to vector<128x128xf32>
    %cst_79 = arith.constant dense<0.000000e+00> : vector<40x128xf32>
    %84 = tpu.matmul %81, %83, %cst_79 {dimension_numbers = #tpu.dot_dimension_numbers<[1], [0], [0], [1], [0, 0, 1, 1], [], []>} : vector<40x128xf32>, vector<128x128xf32>, vector<40x128xf32> -> vector<40x128xf32>
    %85 = arith.addf %80, %84 : vector<40x128xf32>
    %86 = vector.extract_strided_slice %74 {offsets = [2, 0], sizes = [40, 128], strides = [1, 1]} : vector<64x128xf32> to vector<40x128xf32>
    %c2_80 = arith.constant 2 : index
    %c0_81 = arith.constant 0 : index
    %c0_82 = arith.constant 0 : index
    %87 = vector.load %arg6[%c2_80, %c0_81, %c0_82] : memref<18x128x128xf32, #tpu.memory_space<vmem>>, vector<1x128x128xf32>
    %88 = vector.shape_cast %87 : vector<1x128x128xf32> to vector<128x128xf32>
    %cst_83 = arith.constant dense<0.000000e+00> : vector<40x128xf32>
    %89 = tpu.matmul %86, %88, %cst_83 {dimension_numbers = #tpu.dot_dimension_numbers<[1], [0], [0], [1], [0, 0, 1, 1], [], []>} : vector<40x128xf32>, vector<128x128xf32>, vector<40x128xf32> -> vector<40x128xf32>
    %90 = arith.addf %85, %89 : vector<40x128xf32>
    %91 = vector.extract_strided_slice %74 {offsets = [3, 0], sizes = [40, 128], strides = [1, 1]} : vector<64x128xf32> to vector<40x128xf32>
    %c3_84 = arith.constant 3 : index
    %c0_85 = arith.constant 0 : index
    %c0_86 = arith.constant 0 : index
    %92 = vector.load %arg6[%c3_84, %c0_85, %c0_86] : memref<18x128x128xf32, #tpu.memory_space<vmem>>, vector<1x128x128xf32>
    %93 = vector.shape_cast %92 : vector<1x128x128xf32> to vector<128x128xf32>
    %cst_87 = arith.constant dense<0.000000e+00> : vector<40x128xf32>
    %94 = tpu.matmul %91, %93, %cst_87 {dimension_numbers = #tpu.dot_dimension_numbers<[1], [0], [0], [1], [0, 0, 1, 1], [], []>} : vector<40x128xf32>, vector<128x128xf32>, vector<40x128xf32> -> vector<40x128xf32>
    %95 = arith.addf %90, %94 : vector<40x128xf32>
    %96 = vector.extract_strided_slice %74 {offsets = [4, 0], sizes = [40, 128], strides = [1, 1]} : vector<64x128xf32> to vector<40x128xf32>
    %c4_88 = arith.constant 4 : index
    %c0_89 = arith.constant 0 : index
    %c0_90 = arith.constant 0 : index
    %97 = vector.load %arg6[%c4_88, %c0_89, %c0_90] : memref<18x128x128xf32, #tpu.memory_space<vmem>>, vector<1x128x128xf32>
    %98 = vector.shape_cast %97 : vector<1x128x128xf32> to vector<128x128xf32>
    %cst_91 = arith.constant dense<0.000000e+00> : vector<40x128xf32>
    %99 = tpu.matmul %96, %98, %cst_91 {dimension_numbers = #tpu.dot_dimension_numbers<[1], [0], [0], [1], [0, 0, 1, 1], [], []>} : vector<40x128xf32>, vector<128x128xf32>, vector<40x128xf32> -> vector<40x128xf32>
    %100 = arith.addf %95, %99 : vector<40x128xf32>
    %101 = vector.extract_strided_slice %74 {offsets = [5, 0], sizes = [40, 128], strides = [1, 1]} : vector<64x128xf32> to vector<40x128xf32>
    %c5_92 = arith.constant 5 : index
    %c0_93 = arith.constant 0 : index
    %c0_94 = arith.constant 0 : index
    %102 = vector.load %arg6[%c5_92, %c0_93, %c0_94] : memref<18x128x128xf32, #tpu.memory_space<vmem>>, vector<1x128x128xf32>
    %103 = vector.shape_cast %102 : vector<1x128x128xf32> to vector<128x128xf32>
    %cst_95 = arith.constant dense<0.000000e+00> : vector<40x128xf32>
    %104 = tpu.matmul %101, %103, %cst_95 {dimension_numbers = #tpu.dot_dimension_numbers<[1], [0], [0], [1], [0, 0, 1, 1], [], []>} : vector<40x128xf32>, vector<128x128xf32>, vector<40x128xf32> -> vector<40x128xf32>
    %105 = arith.addf %100, %104 : vector<40x128xf32>
    %106 = vector.extract_strided_slice %74 {offsets = [6, 0], sizes = [40, 128], strides = [1, 1]} : vector<64x128xf32> to vector<40x128xf32>
    %c6_96 = arith.constant 6 : index
    %c0_97 = arith.constant 0 : index
    %c0_98 = arith.constant 0 : index
    %107 = vector.load %arg6[%c6_96, %c0_97, %c0_98] : memref<18x128x128xf32, #tpu.memory_space<vmem>>, vector<1x128x128xf32>
    %108 = vector.shape_cast %107 : vector<1x128x128xf32> to vector<128x128xf32>
    %cst_99 = arith.constant dense<0.000000e+00> : vector<40x128xf32>
    %109 = tpu.matmul %106, %108, %cst_99 {dimension_numbers = #tpu.dot_dimension_numbers<[1], [0], [0], [1], [0, 0, 1, 1], [], []>} : vector<40x128xf32>, vector<128x128xf32>, vector<40x128xf32> -> vector<40x128xf32>
    %110 = arith.addf %105, %109 : vector<40x128xf32>
    %111 = vector.extract_strided_slice %74 {offsets = [7, 0], sizes = [40, 128], strides = [1, 1]} : vector<64x128xf32> to vector<40x128xf32>
    %c7 = arith.constant 7 : index
    %c0_100 = arith.constant 0 : index
    %c0_101 = arith.constant 0 : index
    %112 = vector.load %arg6[%c7, %c0_100, %c0_101] : memref<18x128x128xf32, #tpu.memory_space<vmem>>, vector<1x128x128xf32>
    %113 = vector.shape_cast %112 : vector<1x128x128xf32> to vector<128x128xf32>
    %cst_102 = arith.constant dense<0.000000e+00> : vector<40x128xf32>
    %114 = tpu.matmul %111, %113, %cst_102 {dimension_numbers = #tpu.dot_dimension_numbers<[1], [0], [0], [1], [0, 0, 1, 1], [], []>} : vector<40x128xf32>, vector<128x128xf32>, vector<40x128xf32> -> vector<40x128xf32>
    %115 = arith.addf %110, %114 : vector<40x128xf32>
    %116 = vector.extract_strided_slice %74 {offsets = [8, 0], sizes = [40, 128], strides = [1, 1]} : vector<64x128xf32> to vector<40x128xf32>
    %c8 = arith.constant 8 : index
    %c0_103 = arith.constant 0 : index
    %c0_104 = arith.constant 0 : index
    %117 = vector.load %arg6[%c8, %c0_103, %c0_104] : memref<18x128x128xf32, #tpu.memory_space<vmem>>, vector<1x128x128xf32>
    %118 = vector.shape_cast %117 : vector<1x128x128xf32> to vector<128x128xf32>
    %cst_105 = arith.constant dense<0.000000e+00> : vector<40x128xf32>
    %119 = tpu.matmul %116, %118, %cst_105 {dimension_numbers = #tpu.dot_dimension_numbers<[1], [0], [0], [1], [0, 0, 1, 1], [], []>} : vector<40x128xf32>, vector<128x128xf32>, vector<40x128xf32> -> vector<40x128xf32>
    %120 = arith.addf %115, %119 : vector<40x128xf32>
    %121 = vector.extract_strided_slice %74 {offsets = [9, 0], sizes = [40, 128], strides = [1, 1]} : vector<64x128xf32> to vector<40x128xf32>
    %c9 = arith.constant 9 : index
    %c0_106 = arith.constant 0 : index
    %c0_107 = arith.constant 0 : index
    %122 = vector.load %arg6[%c9, %c0_106, %c0_107] : memref<18x128x128xf32, #tpu.memory_space<vmem>>, vector<1x128x128xf32>
    %123 = vector.shape_cast %122 : vector<1x128x128xf32> to vector<128x128xf32>
    %cst_108 = arith.constant dense<0.000000e+00> : vector<40x128xf32>
    %124 = tpu.matmul %121, %123, %cst_108 {dimension_numbers = #tpu.dot_dimension_numbers<[1], [0], [0], [1], [0, 0, 1, 1], [], []>} : vector<40x128xf32>, vector<128x128xf32>, vector<40x128xf32> -> vector<40x128xf32>
    %125 = arith.addf %120, %124 : vector<40x128xf32>
    %126 = vector.extract_strided_slice %74 {offsets = [10, 0], sizes = [40, 128], strides = [1, 1]} : vector<64x128xf32> to vector<40x128xf32>
    %c10 = arith.constant 10 : index
    %c0_109 = arith.constant 0 : index
    %c0_110 = arith.constant 0 : index
    %127 = vector.load %arg6[%c10, %c0_109, %c0_110] : memref<18x128x128xf32, #tpu.memory_space<vmem>>, vector<1x128x128xf32>
    %128 = vector.shape_cast %127 : vector<1x128x128xf32> to vector<128x128xf32>
    %cst_111 = arith.constant dense<0.000000e+00> : vector<40x128xf32>
    %129 = tpu.matmul %126, %128, %cst_111 {dimension_numbers = #tpu.dot_dimension_numbers<[1], [0], [0], [1], [0, 0, 1, 1], [], []>} : vector<40x128xf32>, vector<128x128xf32>, vector<40x128xf32> -> vector<40x128xf32>
    %130 = arith.addf %125, %129 : vector<40x128xf32>
    %131 = vector.extract_strided_slice %74 {offsets = [11, 0], sizes = [40, 128], strides = [1, 1]} : vector<64x128xf32> to vector<40x128xf32>
    %c11 = arith.constant 11 : index
    %c0_112 = arith.constant 0 : index
    %c0_113 = arith.constant 0 : index
    %132 = vector.load %arg6[%c11, %c0_112, %c0_113] : memref<18x128x128xf32, #tpu.memory_space<vmem>>, vector<1x128x128xf32>
    %133 = vector.shape_cast %132 : vector<1x128x128xf32> to vector<128x128xf32>
    %cst_114 = arith.constant dense<0.000000e+00> : vector<40x128xf32>
    %134 = tpu.matmul %131, %133, %cst_114 {dimension_numbers = #tpu.dot_dimension_numbers<[1], [0], [0], [1], [0, 0, 1, 1], [], []>} : vector<40x128xf32>, vector<128x128xf32>, vector<40x128xf32> -> vector<40x128xf32>
    %135 = arith.addf %130, %134 : vector<40x128xf32>
    %136 = vector.extract_strided_slice %74 {offsets = [12, 0], sizes = [40, 128], strides = [1, 1]} : vector<64x128xf32> to vector<40x128xf32>
    %c12 = arith.constant 12 : index
    %c0_115 = arith.constant 0 : index
    %c0_116 = arith.constant 0 : index
    %137 = vector.load %arg6[%c12, %c0_115, %c0_116] : memref<18x128x128xf32, #tpu.memory_space<vmem>>, vector<1x128x128xf32>
    %138 = vector.shape_cast %137 : vector<1x128x128xf32> to vector<128x128xf32>
    %cst_117 = arith.constant dense<0.000000e+00> : vector<40x128xf32>
    %139 = tpu.matmul %136, %138, %cst_117 {dimension_numbers = #tpu.dot_dimension_numbers<[1], [0], [0], [1], [0, 0, 1, 1], [], []>} : vector<40x128xf32>, vector<128x128xf32>, vector<40x128xf32> -> vector<40x128xf32>
    %140 = arith.addf %135, %139 : vector<40x128xf32>
    %141 = vector.extract_strided_slice %74 {offsets = [13, 0], sizes = [40, 128], strides = [1, 1]} : vector<64x128xf32> to vector<40x128xf32>
    %c13 = arith.constant 13 : index
    %c0_118 = arith.constant 0 : index
    %c0_119 = arith.constant 0 : index
    %142 = vector.load %arg6[%c13, %c0_118, %c0_119] : memref<18x128x128xf32, #tpu.memory_space<vmem>>, vector<1x128x128xf32>
    %143 = vector.shape_cast %142 : vector<1x128x128xf32> to vector<128x128xf32>
    %cst_120 = arith.constant dense<0.000000e+00> : vector<40x128xf32>
    %144 = tpu.matmul %141, %143, %cst_120 {dimension_numbers = #tpu.dot_dimension_numbers<[1], [0], [0], [1], [0, 0, 1, 1], [], []>} : vector<40x128xf32>, vector<128x128xf32>, vector<40x128xf32> -> vector<40x128xf32>
    %145 = arith.addf %140, %144 : vector<40x128xf32>
    %146 = vector.extract_strided_slice %74 {offsets = [14, 0], sizes = [40, 128], strides = [1, 1]} : vector<64x128xf32> to vector<40x128xf32>
    %c14 = arith.constant 14 : index
    %c0_121 = arith.constant 0 : index
    %c0_122 = arith.constant 0 : index
    %147 = vector.load %arg6[%c14, %c0_121, %c0_122] : memref<18x128x128xf32, #tpu.memory_space<vmem>>, vector<1x128x128xf32>
    %148 = vector.shape_cast %147 : vector<1x128x128xf32> to vector<128x128xf32>
    %cst_123 = arith.constant dense<0.000000e+00> : vector<40x128xf32>
    %149 = tpu.matmul %146, %148, %cst_123 {dimension_numbers = #tpu.dot_dimension_numbers<[1], [0], [0], [1], [0, 0, 1, 1], [], []>} : vector<40x128xf32>, vector<128x128xf32>, vector<40x128xf32> -> vector<40x128xf32>
    %150 = arith.addf %145, %149 : vector<40x128xf32>
    %151 = vector.extract_strided_slice %74 {offsets = [15, 0], sizes = [40, 128], strides = [1, 1]} : vector<64x128xf32> to vector<40x128xf32>
    %c15 = arith.constant 15 : index
    %c0_124 = arith.constant 0 : index
    %c0_125 = arith.constant 0 : index
    %152 = vector.load %arg6[%c15, %c0_124, %c0_125] : memref<18x128x128xf32, #tpu.memory_space<vmem>>, vector<1x128x128xf32>
    %153 = vector.shape_cast %152 : vector<1x128x128xf32> to vector<128x128xf32>
    %cst_126 = arith.constant dense<0.000000e+00> : vector<40x128xf32>
    %154 = tpu.matmul %151, %153, %cst_126 {dimension_numbers = #tpu.dot_dimension_numbers<[1], [0], [0], [1], [0, 0, 1, 1], [], []>} : vector<40x128xf32>, vector<128x128xf32>, vector<40x128xf32> -> vector<40x128xf32>
    %155 = arith.addf %150, %154 : vector<40x128xf32>
    %156 = vector.extract_strided_slice %74 {offsets = [16, 0], sizes = [40, 128], strides = [1, 1]} : vector<64x128xf32> to vector<40x128xf32>
    %c16 = arith.constant 16 : index
    %c0_127 = arith.constant 0 : index
    %c0_128 = arith.constant 0 : index
    %157 = vector.load %arg6[%c16, %c0_127, %c0_128] : memref<18x128x128xf32, #tpu.memory_space<vmem>>, vector<1x128x128xf32>
    %158 = vector.shape_cast %157 : vector<1x128x128xf32> to vector<128x128xf32>
    %cst_129 = arith.constant dense<0.000000e+00> : vector<40x128xf32>
    %159 = tpu.matmul %156, %158, %cst_129 {dimension_numbers = #tpu.dot_dimension_numbers<[1], [0], [0], [1], [0, 0, 1, 1], [], []>} : vector<40x128xf32>, vector<128x128xf32>, vector<40x128xf32> -> vector<40x128xf32>
    %160 = arith.addf %155, %159 : vector<40x128xf32>
    %161 = vector.extract_strided_slice %74 {offsets = [17, 0], sizes = [40, 128], strides = [1, 1]} : vector<64x128xf32> to vector<40x128xf32>
    %c17 = arith.constant 17 : index
    %c0_130 = arith.constant 0 : index
    %c0_131 = arith.constant 0 : index
    %162 = vector.load %arg6[%c17, %c0_130, %c0_131] : memref<18x128x128xf32, #tpu.memory_space<vmem>>, vector<1x128x128xf32>
    %163 = vector.shape_cast %162 : vector<1x128x128xf32> to vector<128x128xf32>
    %cst_132 = arith.constant dense<0.000000e+00> : vector<40x128xf32>
    %164 = tpu.matmul %161, %163, %cst_132 {dimension_numbers = #tpu.dot_dimension_numbers<[1], [0], [0], [1], [0, 0, 1, 1], [], []>} : vector<40x128xf32>, vector<128x128xf32>, vector<40x128xf32> -> vector<40x128xf32>
    %165 = arith.addf %160, %164 : vector<40x128xf32>
    %c0_133 = arith.constant 0 : index
    %c0_134 = arith.constant 0 : index
    %166 = vector.load %arg7[%c0_133, %c0_134] : memref<1x128xf32, #tpu.memory_space<vmem>>, vector<1x128xf32>
    %167 = vector.broadcast %166 : vector<1x128xf32> to vector<40x128xf32>
    %168 = arith.addf %165, %167 : vector<40x128xf32>
    %c0_135 = arith.constant 0 : index
    %c0_136 = arith.constant 0 : index
    %169 = vector.load %arg8[%c0_135, %c0_136] : memref<40x128xf32, #tpu.memory_space<vmem>>, vector<40x128xf32>
    tpu.vector_store %arg8[%c0_135, %c0_136], %168 {strides = array<i32>} : memref<40x128xf32, #tpu.memory_space<vmem>>, vector<40x128xf32>,
    return
  }
  func.func @transform_0(%arg0: i32) -> (i32, i32, i32) {
    %c0_i32 = arith.constant 0 : i32
    %c0_i32_0 = arith.constant 0 : i32
    %c0_i32_1 = arith.constant 0 : i32
    %c0_i32_2 = arith.constant 0 : i32
    return %c0_i32, %c0_i32_0, %c0_i32_1 : i32, i32, i32
  }
  func.func @transform_1(%arg0: i32) -> (i32, i32, i32) {
    %c0_i32 = arith.constant 0 : i32
    %c0_i32_0 = arith.constant 0 : i32
    %c0_i32_1 = arith.constant 0 : i32
    %c0_i32_2 = arith.constant 0 : i32
    return %c0_i32, %c0_i32_0, %c0_i32_1 : i32, i32, i32
  }
  func.func @transform_2(%arg0: i32) -> (i32, i32) {
    %c0_i32 = arith.constant 0 : i32
    %c0_i32_0 = arith.constant 0 : i32
    %c0_i32_1 = arith.constant 0 : i32
    return %c0_i32, %c0_i32_0 : i32, i32
  }
  func.func @transform_3(%arg0: i32) -> (i32, i32, i32) {
    %c0_i32 = arith.constant 0 : i32
    %c0_i32_0 = arith.constant 0 : i32
    %c0_i32_1 = arith.constant 0 : i32
    %c0_i32_2 = arith.constant 0 : i32
    return %c0_i32, %c0_i32_0, %c0_i32_1 : i32, i32, i32
  }
  func.func @transform_4(%arg0: i32) -> (i32, i32) {
    %c0_i32 = arith.constant 0 : i32
    %c0_i32_0 = arith.constant 0 : i32
    %c0_i32_1 = arith.constant 0 : i32
    return %c0_i32, %c0_i32_0 : i32, i32
  }
  func.func @transform_5(%arg0: i32) -> (i32, i32, i32) {
    %c0_i32 = arith.constant 0 : i32
    %c0_i32_0 = arith.constant 0 : i32
    %c0_i32_1 = arith.constant 0 : i32
    %c0_i32_2 = arith.constant 0 : i32
    return %c0_i32, %c0_i32_0, %c0_i32_1 : i32, i32, i32
  }
  func.func @transform_6(%arg0: i32) -> (i32, i32) {
    %c0_i32 = arith.constant 0 : i32
    %c0_i32_0 = arith.constant 0 : i32
    %c0_i32_1 = arith.constant 0 : i32
    return %c0_i32, %c0_i32_0 : i32, i32
  }
  func.func @transform_7(%arg0: i32) -> (i32, i32) {
    %c0_i32 = arith.constant 0 : i32
    %c0_i32_0 = arith.constant 0 : i32
    %c0_i32_1 = arith.constant 0 : i32
    return %c0_i32, %c0_i32_0 : i32, i32
  }
}

</mosaic_0001>

<bundles_post_ra>
// kernel: waveguide_forward.3
= control target key start
LH: loop header
LB: loop body
LE: loop exit
PB: predicated region body
PF: predicated region fallthrough
CT: control target
= control target key end

     0   :  { %v886_v34 = vmov 0.0   ;;  %vm887_vm0 = vmmov 0   ;;  %s1101_s1 = inlined_call_operand.vmem [shape: bf16[640,128], index: 1, kind: input, shape index: {}]   ;;  %s1102_s0 = inlined_call_operand.vmem [shape: bf16[40,640], index: 0, kind: input, shape index: {}]   ;;  %s1103_s2 = inlined_call_operand.vmem [shape: f32[1,128], index: 2, kind: input, shape index: {}]   ;;  %s1104_s3 = inlined_call_operand.vmem [shape: bf16[40,128], index: 3, kind: output, shape index: {}]  }
   0x1   :  { %v827_v0 = vld [vmem:[%s1101_s1 + $0x78] sm:$0xff]   ;;  %v831_v4 = vld [vmem:[%s1101_s1 + $0x70] sm:$0xff]   ;;  %v835_v8 = vld [vmem:[%s1101_s1 + $0x68] sm:$0xff]  }
   0x2   :  { %v828_v1 = vld [vmem:[%s1101_s1 + $0xf8] sm:$0xff]   ;;  %702 = vmatprep.subr.bf16.mxu0 %v827_v0  ;;  %v832_v5 = vld [vmem:[%s1101_s1 + $0xf0] sm:$0xff]   ;;  %v836_v9 = vld [vmem:[%s1101_s1 + $0xe8] sm:$0xff]  }
   0x3   :  { %v829_v2 = vld [vmem:[%s1101_s1 + $0x38] sm:$0xff]   ;;  %736 = vmatprep.subr.bf16.mxu1 %v828_v1  ;;  %v833_v6 = vld [vmem:[%s1101_s1 + $0x30] sm:$0xff]   ;;  %v837_v10 = vld [vmem:[%s1101_s1 + $0x28] sm:$0xff]  }
   0x4   :  { %v830_v3 = vld [vmem:[%s1101_s1 + $0xb8] sm:$0xff]   ;;  %703 = vmatpush3.bf16.msra.mxu0 %v829_v2  ;;  %v834_v7 = vld [vmem:[%s1101_s1 + $0xb0] sm:$0xff]   ;;  %v838_v11 = vld [vmem:[%s1101_s1 + $0xa8] sm:$0xff]  }
   0x5   :  { %737 = vmatpush3.bf16.msra.mxu1 %v830_v3  ;;  %704 = vmatprep.subr.bf16.mxu0 %v831_v4  ;;  %v839_v12 = vld [vmem:[%s1101_s1 + $0x60] sm:$0xff]   ;;  %v843_v16 = vld [vmem:[%s1101_s1 + $0x58] sm:$0xff]   ;;  %v847_v20 = vld [vmem:[%s1101_s1 + $0x50] sm:$0xff]  }
   0x6   :  { %738 = vmatprep.subr.bf16.mxu1 %v832_v5  ;;  %v840_v13 = vld [vmem:[%s1101_s1 + $0xe0] sm:$0xff]   ;;  %v844_v17 = vld [vmem:[%s1101_s1 + $0xd8] sm:$0xff]   ;;  %v848_v21 = vld [vmem:[%s1101_s1 + $0xd0] sm:$0xff]  }
   0x7   :  { %v841_v14 = vld [vmem:[%s1101_s1 + $0x20] sm:$0xff]   ;;  %v845_v18 = vld [vmem:[%s1101_s1 + $0x18] sm:$0xff]   ;;  %v849_v22 = vld [vmem:[%s1101_s1 + $0x10] sm:$0xff]  }
   0x8   :  { %705 = vmatpush3.bf16.msra.mxu0 %v833_v6  ;;  %v842_v15 = vld [vmem:[%s1101_s1 + $0xa0] sm:$0xff]   ;;  %v846_v19 = vld [vmem:[%s1101_s1 + $0x98] sm:$0xff]   ;;  %v850_v23 = vld [vmem:[%s1101_s1 + $0x90] sm:$0xff]  }
   0x9   :  { %739 = vmatpush3.bf16.msra.mxu1 %v834_v7  ;;  %706 = vmatprep.subr.bf16.mxu0 %v835_v8  ;;  %v851_v24 = vld [vmem:[%s1101_s1 + $0x48] sm:$0xff]   ;;  %v855_v28 = vld [vmem:[%s1101_s1 + $0x40] sm:$0xff]   ;;  %v865_v37 = vld [vmem:[%s1101_s1 + $0x138] sm:$0xff]  }
   0xa   :  { %740 = vmatprep.subr.bf16.mxu1 %v836_v9  ;;  %v852_v25 = vld [vmem:[%s1101_s1 + $0xc8] sm:$0xff]   ;;  %v856_v29 = vld [vmem:[%s1101_s1 + $0xc0] sm:$0xff]   ;;  %v866_v38 = vld [vmem:[%s1101_s1 + $0x130] sm:$0xff]  }
   0xb   :  { %v853_v26 = vld [vmem:[%s1101_s1 + $0x8] sm:$0xff]   ;;  %v857_v30 = vld [vmem:[%s1101_s1] sm:$0xff]   ;;  %v28_v44 = vld [vmem:[%s1102_s0 + $0x58] sm:$0xff] }
   0xc   :  { %707 = vmatpush3.bf16.msra.mxu0 %v837_v10  ;;  %v854_v27 = vld [vmem:[%s1101_s1 + $0x88] sm:$0xff]   ;;  %v858_v31 = vld [vmem:[%s1101_s1 + $0x80] sm:$0xff]   ;;  %v27_v45 = vld [vmem:[%s1102_s0 + $0x50] sm:$0xff]  ;;  %v639_v46 = vcombine.high %v28_v44, %v28_v44  ;;  %v638_v51 = vcombine.low %v28_v44, %v28_v44 }
   0xd   :  { %741 = vmatpush3.bf16.msra.mxu1 %v838_v11  ;;  %708 = vmatprep.subr.bf16.mxu0 %v839_v12  ;;  %v859_v32 = vld [vmem:[%s1102_s0] ss:$20 sps:$4 sm:$0xff]   ;;  %v861_v33 = vld [vmem:[%s1102_s0 + $0x4] ss:$20 sps:$4 sm:$0xff]   ;;  %v862_v35 = vld [vmem:[%s1102_s0 + $0x8] ss:$20 sps:$4 sm:$0xff]   ;;  %v637_v47 = vcombine.high %v27_v45, %v27_v45  ;;  %v636_v49 = vcombine.low %v27_v45, %v27_v45 }
   0xe   :  { %742 = vmatprep.subr.bf16.mxu1 %v840_v13  ;;  %v864_v36 = vld [vmem:[%s1102_s0 + $0xc] ss:$20 sps:$4 sm:$0xff]   ;;  %459 = vmatprep.mubr.bf16.mxu0 %v861_v33  ;;  %v870_v40 = vld [vmem:[%s1102_s0 + $0x34] ss:$20 sps:$4 sm:$0xff]   ;;  %v873_v43 = vld [vmem:[%s1102_s0 + $0x30] ss:$20 sps:$4 sm:$0xff]  }
   0xf   :  { %515 = vmatprep.mubr.bf16.mxu1 %v864_v36  ;;  %v867_v39 = vld [vmem:[%s1102_s0 + $0x2c] ss:$20 sps:$4 sm:$0xff]   ;;  %v869_v41 = vld [vmem:[%s1102_s0 + $0x28] ss:$20 sps:$4 sm:$0xff]   ;;  %v880_v52 = vld [vmem:[%s1101_s1 + $0x110] sm:$0xff]  }
  0x10   :  { %709 = vmatpush3.bf16.msra.mxu0 %v841_v14  ;;  %v872_v42 = vld [vmem:[%s1101_s1 + $0x128] sm:$0xff]   ;;  %v874_v48 = vld [vmem:[%s1101_s1 + $0x120] sm:$0xff]   ;;  %v876_v50 = vld [vmem:[%s1101_s1 + $0x118] sm:$0xff]  }
  0x11   :  { %743 = vmatpush3.bf16.msra.mxu1 %v842_v15  ;;  %710 = vmatprep.subr.bf16.mxu0 %v843_v16  ;;  %v881_v53 = vld [vmem:[%s1101_s1 + $0x108] sm:$0xff]   ;;  %v882_v54 = vld [vmem:[%s1101_s1 + $0x100] sm:$0xff]  }
  0x12   :  { %744 = vmatprep.subr.bf16.mxu1 %v844_v17  ;;  %v883_v55 = vld [vmem:[%s1102_s0 + $0x10] ss:$20 sps:$4 sm:$0xff]   ;;  %v884_v56 = vld [vmem:[%s1102_s0 + $0x38] ss:$20 sps:$4 sm:$0xff]   ;;  %v885_v57 = vld [vmem:[%s1102_s0 + $0x60] ss:$0 sps:$4 sm:$0xff]  }
  0x14   :  { %711 = vmatpush3.bf16.msra.mxu0 %v845_v18 }
  0x15   :  { %745 = vmatpush3.bf16.msra.mxu1 %v846_v19  ;;  %712 = vmatprep.subr.bf16.mxu0 %v847_v20  ;;  %v625_v20 = vld [vmem:[%s1103_s2] ss:$0 sm:$0xff] }
  0x16   :  { %746 = vmatprep.subr.bf16.mxu1 %v848_v21 }
  0x18   :  { %713 = vmatpush3.bf16.msra.mxu0 %v849_v22 }
  0x19   :  { %747 = vmatpush3.bf16.msra.mxu1 %v850_v23  ;;  %714 = vmatprep.subr.bf16.mxu0 %v851_v24 }
  0x1a   :  { %748 = vmatprep.subr.bf16.mxu1 %v852_v25 }
  0x1c   :  { %715 = vmatpush3.bf16.msra.mxu0 %v853_v26 }
  0x1d   :  { %749 = vmatpush3.bf16.msra.mxu1 %v854_v27  ;;  %716 = vmatprep.subr.bf16.mxu0 %v855_v28 }
  0x1e   :  { %750 = vmatprep.subr.bf16.mxu1 %v856_v29 }
  0x20   :  { %717 = vmatpush3.bf16.msra.mxu0 %v857_v30 }
  0x21   :  { %751 = vmatpush3.bf16.msra.mxu1 %v858_v31  ;;  %781 = vmatprep.subr.bf16.mxu0 %v886_v34 }
  0x22   :  { %809 = vmatprep.subr.bf16.mxu1 %v886_v34 }
  0x23   :  { %460 = vmatmul.mubr.bf16.vlgmr.msra.gmra.mxu0 %v859_v32 }
  0x24   :  { %516 = vmatmul.mubr.bf16.vlgmr.msra.gmra.mxu1 %v862_v35  ;;  %782 = vmatpush3.bf16.msra.mxu0 %v865_v37 }
  0x25   :  { %817 = vmatpush3.bf16.msra.mxu1 %v865_v37  ;;  %783 = vmatprep.subr.bf16.mxu0 %v886_v34 }
  0x26   :  { %810 = vmatprep.subr.bf16.mxu1 %v886_v34  ;;  %467 = vmatprep.mubr.bf16.mxu0 %v867_v39 }
  0x27   :  { %523 = vmatprep.mubr.bf16.mxu1 %v870_v40 }
  0x28   :  { %784 = vmatpush3.bf16.msra.mxu0 %v866_v38 }
  0x29   :  { %818 = vmatpush3.bf16.msra.mxu1 %v866_v38  ;;  %785 = vmatprep.subr.bf16.mxu0 %v886_v34 }
  0x2a   :  { %811 = vmatprep.subr.bf16.mxu1 %v886_v34 }
  0x2b   :  { %468 = vmatmul.mubr.bf16.gmra.mxu0 %v869_v41 }
  0x2c   :  { %786 = vmatpush3.bf16.msra.mxu0 %v872_v42  ;;  %524 = vmatmul.mubr.bf16.gmra.mxu1 %v873_v43 }
  0x2d   :  { %819 = vmatpush3.bf16.msra.mxu1 %v872_v42  ;;  %787 = vmatprep.subr.bf16.mxu0 %v886_v34 }
  0x2e   :  { %812 = vmatprep.subr.bf16.mxu1 %v886_v34  ;;  %531 = vmatprep.mubr.bf16.mxu1 %v639_v46 }
  0x2f   :  { %475 = vmatprep.mubr.bf16.mxu0 %v637_v47 }
  0x30   :  { %788 = vmatpush3.bf16.msra.mxu0 %v874_v48 }
  0x31   :  { %820 = vmatpush3.bf16.msra.mxu1 %v874_v48  ;;  %789 = vmatprep.subr.bf16.mxu0 %v886_v34 }
  0x32   :  { %813 = vmatprep.subr.bf16.mxu1 %v886_v34 }
  0x33   :  { %476 = vmatmul.mubr.bf16.gmra.mxu0 %v636_v49 }
  0x34   :  { %790 = vmatpush3.bf16.msra.mxu0 %v876_v50  ;;  %532 = vmatmul.mubr.bf16.gmra.mxu1 %v638_v51 }
  0x35   :  { %821 = vmatpush3.bf16.msra.mxu1 %v876_v50  ;;  %791 = vmatprep.subr.bf16.mxu0 %v886_v34 }
  0x36   :  { %814 = vmatprep.subr.bf16.mxu1 %v886_v34  ;;  %797 = vmatprep.mubr.msk.bf16.mxu0 %vm887_vm0, %v886_v34 }
  0x37   :  { %801 = vmatprep.mubr.msk.bf16.mxu1 %vm887_vm0, %v886_v34 }
  0x38   :  { %792 = vmatpush3.bf16.msra.mxu0 %v880_v52 }
  0x39   :  { %822 = vmatpush3.bf16.msra.mxu1 %v880_v52  ;;  %793 = vmatprep.subr.bf16.mxu0 %v886_v34 }
  0x3a   :  { %815 = vmatprep.subr.bf16.mxu1 %v886_v34 }
  0x3c   :  { %794 = vmatpush3.bf16.msra.mxu0 %v881_v53 }
  0x3d   :  { %823 = vmatpush3.bf16.msra.mxu1 %v881_v53  ;;  %795 = vmatprep.subr.bf16.mxu0 %v886_v34 }
  0x3e   :  { %816 = vmatprep.subr.bf16.mxu1 %v886_v34 }
  0x40   :  { %796 = vmatpush3.bf16.msra.mxu0 %v882_v54 }
  0x41   :  { %824 = vmatpush3.bf16.msra.mxu1 %v882_v54 }
  0x43   :  { %798 = vmatmul.mubr.bf16.vlgmr.msra.gmra.mxu0 %v883_v55 }
  0x44   :  { %802 = vmatmul.mubr.bf16.vlgmr.msra.gmra.mxu1 %v884_v56 }
  0x45   :  { %805 = vmatprep.mubr.msk.bf16.mxu1 %vm887_vm0, %v886_v34 }
  0x4c   :  { %806 = vmatmul.mubr.bf16.gmra.mxu1 %v885_v57 }
  0xe3   :  { %v718_v58 = vpop.f32.mrf.mxu0 }
  0xe4   :  { %v752_v59 = vpop.f32.mrf.mxu1 }
  0xe5   :  { %v719_v60 = vpop.f32.mrf.mxu0 }
  0xe6   :  { %v753_v61 = vpop.f32.mrf.mxu1  ;;  %v720_v18 = vadd.f32 %v719_v60, %v718_v58 }
  0xe7   :  { %v721_v62 = vpop.f32.mrf.mxu0  ;;  %v754_v31 = vadd.f32 %v753_v61, %v752_v59 }
  0xe8   :  { %v755_v63 = vpop.f32.mrf.mxu1  ;;  %v462_v23 = vadd.f32 %v720_v18, %v625_v20 }
  0xe9   :  { %v722_v0 = vpop.f32.mrf.mxu0 }
  0xea   :  { %v756_v1 = vpop.f32.mrf.mxu1  ;;  %v723_v19 = vadd.f32 %v722_v0, %v721_v62  ;;  %v518_v35 = vadd.f32 %v754_v31, %v462_v23 }
  0xeb   :  { %v724_v2 = vpop.f32.mrf.mxu0  ;;  %v757_v32 = vadd.f32 %v756_v1, %v755_v63 }
  0xec   :  { %v758_v3 = vpop.f32.mrf.mxu1  ;;  %v465_v24 = vadd.f32 %v723_v19, %v625_v20 }
  0xed   :  { %v725_v4 = vpop.f32.mrf.mxu0 }
  0xee   :  { %v759_v5 = vpop.f32.mrf.mxu1  ;;  %v726_v21 = vadd.f32 %v725_v4, %v724_v2  ;;  %v521_v37 = vadd.f32 %v757_v32, %v465_v24 }
  0xef   :  { %v727_v6 = vpop.f32.mrf.mxu0  ;;  %v760_v25 = vadd.f32 %v759_v5, %v758_v3 }
  0xf0   :  { %v761_v7 = vpop.f32.mrf.mxu1  ;;  %v470_v26 = vadd.f32 %v726_v21, %v625_v20 }
  0xf1   :  { %v728_v8 = vpop.f32.mrf.mxu0 }
  0xf2   :  { %v762_v9 = vpop.f32.mrf.mxu1  ;;  %v729_v22 = vadd.f32 %v728_v8, %v727_v6  ;;  %v526_v40 = vadd.f32 %v760_v25, %v470_v26 }
  0xf3   :  { %v730_v10 = vpop.f32.mrf.mxu0  ;;  %v763_v28 = vadd.f32 %v762_v9, %v761_v7 }
  0xf4   :  { %v764_v11 = vpop.f32.mrf.mxu1  ;;  %v473_v27 = vadd.f32 %v729_v22, %v625_v20 }
  0xf5   :  { %v731_v12 = vpop.f32.mrf.mxu0 }
  0xf6   :  { %v765_v13 = vpop.f32.mrf.mxu1  ;;  %v732_v29 = vadd.f32 %v731_v12, %v730_v10  ;;  %v529_v42 = vadd.f32 %v763_v28, %v473_v27 }
  0xf7   :  { %v733_v14 = vpop.f32.mrf.mxu0  ;;  %v766_v38 = vadd.f32 %v765_v13, %v764_v11 }
  0xf8   :  { %v767_v15 = vpop.f32.mrf.mxu1  ;;  %v478_v39 = vadd.f32 %v732_v29, %v625_v20 }
  0xf9   :  { %v734_v16 = vpop.f32.mrf.mxu0 }
  0xfa   :  { %v768_v17 = vpop.f32.mrf.mxu1  ;;  %v534_v52 = vadd.f32 %v766_v38, %v478_v39 }
 0x103   :  { %v573_v30 = vpop.f32.mrf.mxu0 }
 0x104   :  { %v581_v33 = vpop.f32.mrf.mxu1  ;;  %v574_v43 = vadd.f32 %v573_v30, %v518_v35 }
 0x105   :  { %v799_v34 = vpop.f32.mrf.mxu0  ;;  %v582_v46 = vadd.f32 %v581_v33, %v526_v40 }
 0x106   :  { %v803_v36 = vpop.f32.mrf.mxu1 }
 0x107   :  { %v576_v41 = vpop.f32.mrf.mxu0 }
 0x108   :  { %v577_v44 = vadd.f32 %v576_v41, %v521_v37  ;;  %v584_v45 = vpop.f32.mrf.mxu1 }
 0x109   :  { %v585_v47 = vadd.f32 %v584_v45, %v529_v42  ;;  %v800_v48 = vpop.f32.mrf.mxu0 }
 0x10a   :  { %v694_v49 = vpack.c.bf16 %v577_v44, %v574_v43  ;;  %v804_v50 = vpop.f32.mrf.mxu1 }
 0x10b   :  { %v699_v51 = vpack.c.bf16 %v585_v47, %v582_v46 }
 0x10c   :  { %695 = vst [vmem:[%s1104_s3] sm:$0xff] %v694_v49   ;;  %v589_v53 = vpop.f32.mrf.mxu1 }
 0x10d   :  { %701 = vst [vmem:[%s1104_s3 + $0x8] sm:$0xff] %v699_v51   ;;  %v590_v54 = vadd.f32 %v589_v53, %v534_v52 }
 0x10e   :  { %v807_v55 = vpop.f32.mrf.mxu1 }
 0x10f   :  { %v690_v56 = vpack.c.bf16 %v590_v54, %v590_v54 }
 0x110   :  { %v592_v57 = vpop.f32.mrf.mxu1 }
 0x111   :  { %620 = vst [vmem:[%s1104_s3 + $0x10] sm:$0xf] %v690_v56 }
 0x112   :  { %v808_v58 = vpop.f32.mrf.mxu1 }

// kernel: waveguide_forward.4
= control target key start
LH: loop header
LB: loop body
LE: loop exit
PB: predicated region body
PF: predicated region fallthrough
CT: control target
= control target key end

     0   :  { %v4614_v0 = vmov 0   ;;  %s5951_s1 = inlined_call_operand.vmem [shape: bf16[384,128], index: 1, kind: input, shape index: {}]   ;;  %s5952_s0 = inlined_call_operand.vmem [shape: bf16[1024,384], index: 0, kind: input, shape index: {}]   ;;  %s5953_s2 = inlined_call_operand.vmem [shape: f32[1,128], index: 2, kind: input, shape index: {}]   ;;  %s5954_s3 = inlined_call_operand.vmem [shape: bf16[1024,128], index: 3, kind: output, shape index: {}]  }
   0x1   :  { %1494 = vmatprep.subr.bf16.mxu0 %v4614_v0  ;;  %4300 = vmatprep.subr.bf16.mxu1 %v4614_v0  ;;  %v4333_v1 = vld [vmem:[%s5951_s1 + $0x38] sm:$0xff]   ;;  %v4334_v2 = vld [vmem:[%s5951_s1 + $0x30] sm:$0xff]   ;;  %v4335_v3 = vld [vmem:[%s5951_s1 + $0x28] sm:$0xff]  }
   0x2   :  { %1495 = vmatpush1.bf16.msra.mxu0 %v4333_v1  ;;  %4316 = vmatpush1.bf16.msra.mxu1 %v4333_v1  ;;  %v4336_v4 = vld [vmem:[%s5951_s1 + $0x20] sm:$0xff]   ;;  %v4337_v5 = vld [vmem:[%s5951_s1 + $0x18] sm:$0xff]   ;;  %v4338_v7 = vld [vmem:[%s5951_s1 + $0x10] sm:$0xff]  }
   0x3   :  { %1496 = vmatprep.subr.bf16.mxu0 %v4614_v0  ;;  %4301 = vmatprep.subr.bf16.mxu1 %v4614_v0  ;;  %v4351_v6 = vld [vmem:[%s5952_s0 + $0x4] ss:$12 sps:$4 sm:$0xff]   ;;  %v4339_v9 = vld [vmem:[%s5951_s1 + $0x8] sm:$0xff]   ;;  %v4341_v11 = vld [vmem:[%s5951_s1 + $0x78] sm:$0xff]  }
   0x4   :  { %v4354_v8 = vld [vmem:[%s5952_s0 + $0x484] ss:$12 sps:$4 sm:$0xff]   ;;  %1526 = vmatprep.mubr.bf16.mxu0 %v4351_v6  ;;  %v4343_v13 = vld [vmem:[%s5951_s1 + $0x68] sm:$0xff]   ;;  %v4345_v15 = vld [vmem:[%s5951_s1 + $0x58] sm:$0xff]  }
   0x5   :  { %1910 = vmatprep.mubr.bf16.mxu1 %v4354_v8  ;;  %v4340_v10 = vld [vmem:[%s5951_s1] sm:$0xff]   ;;  %v4342_v12 = vld [vmem:[%s5951_s1 + $0x70] sm:$0xff]   ;;  %v4347_v17 = vld [vmem:[%s5951_s1 + $0x48] sm:$0xff]  }
   0x6   :  { %1497 = vmatpush1.bf16.msra.mxu0 %v4334_v2  ;;  %4317 = vmatpush1.bf16.msra.mxu1 %v4334_v2  ;;  %v4344_v14 = vld [vmem:[%s5951_s1 + $0x60] sm:$0xff]   ;;  %v4346_v16 = vld [vmem:[%s5951_s1 + $0x50] sm:$0xff]   ;;  %v4355_v19 = vld [vmem:[%s5951_s1 + $0xb8] sm:$0xff]  }
   0x7   :  { %1498 = vmatprep.subr.bf16.mxu0 %v4614_v0  ;;  %4302 = vmatprep.subr.bf16.mxu1 %v4614_v0  ;;  %v4348_v18 = vld [vmem:[%s5951_s1 + $0x40] sm:$0xff]   ;;  %v4356_v22 = vld [vmem:[%s5952_s0 + $0x1c] ss:$12 sps:$4 sm:$0xff]   ;;  %v4368_v24 = vld [vmem:[%s5951_s1 + $0xb0] sm:$0xff]  }
   0x8   :  { %v4349_v20 = vld [vmem:[%s5952_s0] ss:$12 sps:$4 sm:$0xff]   ;;  %v4358_v23 = vld [vmem:[%s5952_s0 + $0x49c] ss:$12 sps:$4 sm:$0xff]   ;;  %v4360_v26 = vld [vmem:[%s5952_s0 + $0x18] ss:$12 sps:$4 sm:$0xff]  }
   0x9   :  { %v4352_v21 = vld [vmem:[%s5952_s0 + $0x480] ss:$12 sps:$4 sm:$0xff]   ;;  %v4361_v27 = vld [vmem:[%s5952_s0 + $0x498] ss:$12 sps:$4 sm:$0xff]   ;;  %v4366_v31 = vld [vmem:[%s5952_s0 + $0x30] ss:$12 sps:$4 sm:$0xff]  }
   0xa   :  { %1499 = vmatpush1.bf16.msra.mxu0 %v4335_v3  ;;  %4318 = vmatpush1.bf16.msra.mxu1 %v4335_v3  ;;  %v4381_v25 = vld [vmem:[%s5951_s1 + $0xa8] sm:$0xff]   ;;  %v4362_v28 = vld [vmem:[%s5952_s0 + $0x34] ss:$12 sps:$4 sm:$0xff]   ;;  %v4367_v32 = vld [vmem:[%s5952_s0 + $0x4b0] ss:$12 sps:$4 sm:$0xff]  }
   0xb   :  { %1500 = vmatprep.subr.bf16.mxu0 %v4614_v0  ;;  %4303 = vmatprep.subr.bf16.mxu1 %v4614_v0  ;;  %v4364_v29 = vld [vmem:[%s5952_s0 + $0x4b4] ss:$12 sps:$4 sm:$0xff]   ;;  %v4407_v33 = vld [vmem:[%s5951_s1 + $0x98] sm:$0xff]   ;;  %v4433_v37 = vld [vmem:[%s5951_s1 + $0x88] sm:$0xff]  }
   0xc   :  { %v4394_v30 = vld [vmem:[%s5951_s1 + $0xa0] sm:$0xff]   ;;  %v4369_v34 = vld [vmem:[%s5952_s0 + $0x4c] ss:$12 sps:$4 sm:$0xff]   ;;  %v4420_v36 = vld [vmem:[%s5951_s1 + $0x90] sm:$0xff]  }
   0xd   :  { %v4371_v35 = vld [vmem:[%s5952_s0 + $0x4cc] ss:$12 sps:$4 sm:$0xff]   ;;  %v4373_v38 = vld [vmem:[%s5952_s0 + $0x48] ss:$12 sps:$4 sm:$0xff]   ;;  %v4375_v40 = vld [vmem:[%s5952_s0 + $0x64] ss:$12 sps:$4 sm:$0xff]  }
   0xe   :  { %1501 = vmatpush1.bf16.msra.mxu0 %v4336_v4  ;;  %4319 = vmatpush1.bf16.msra.mxu1 %v4336_v4  ;;  %v4374_v39 = vld [vmem:[%s5952_s0 + $0x4c8] ss:$12 sps:$4 sm:$0xff]   ;;  %v4377_v41 = vld [vmem:[%s5952_s0 + $0x4e4] ss:$12 sps:$4 sm:$0xff]   ;;  %v4379_v43 = vld [vmem:[%s5952_s0 + $0x60] ss:$12 sps:$4 sm:$0xff]  }
   0xf   :  { %1502 = vmatprep.subr.bf16.mxu0 %v4614_v0  ;;  %4304 = vmatprep.subr.bf16.mxu1 %v4614_v0  ;;  %v4446_v42 = vld [vmem:[%s5951_s1 + $0x80] sm:$0xff]   ;;  %v4382_v45 = vld [vmem:[%s5952_s0 + $0x7c] ss:$12 sps:$4 sm:$0xff]   ;;  %v4395_v53 = vld [vmem:[%s5952_s0 + $0xac] ss:$12 sps:$4 sm:$0xff]  }
  0x10   :  { %v4380_v44 = vld [vmem:[%s5952_s0 + $0x4e0] ss:$12 sps:$4 sm:$0xff]   ;;  %v4384_v46 = vld [vmem:[%s5952_s0 + $0x4fc] ss:$12 sps:$4 sm:$0xff]   ;;  %v4386_v47 = vld [vmem:[%s5952_s0 + $0x78] ss:$12 sps:$4 sm:$0xff]  }
  0x11   :  { %v4387_v48 = vld [vmem:[%s5952_s0 + $0x4f8] ss:$12 sps:$4 sm:$0xff]   ;;  %v4388_v49 = vld [vmem:[%s5952_s0 + $0x94] ss:$12 sps:$4 sm:$0xff]   ;;  %v4392_v51 = vld [vmem:[%s5952_s0 + $0x90] ss:$12 sps:$4 sm:$0xff]  }
  0x12   :  { %1503 = vmatpush1.bf16.msra.mxu0 %v4337_v5  ;;  %4320 = vmatpush1.bf16.msra.mxu1 %v4337_v5  ;;  %v4390_v50 = vld [vmem:[%s5952_s0 + $0x514] ss:$12 sps:$4 sm:$0xff]   ;;  %v4393_v52 = vld [vmem:[%s5952_s0 + $0x510] ss:$12 sps:$4 sm:$0xff]   ;;  %v4397_v54 = vld [vmem:[%s5952_s0 + $0x52c] ss:$12 sps:$4 sm:$0xff]  }
  0x13   :  { %1504 = vmatprep.subr.bf16.mxu0 %v4614_v0  ;;  %4305 = vmatprep.subr.bf16.mxu1 %v4614_v0  ;;  %v4399_v55 = vld [vmem:[%s5952_s0 + $0xa8] ss:$12 sps:$4 sm:$0xff]   ;;  %v4401_v57 = vld [vmem:[%s5952_s0 + $0xc4] ss:$12 sps:$4 sm:$0xff]   ;;  %v4405_v59 = vld [vmem:[%s5952_s0 + $0xc0] ss:$12 sps:$4 sm:$0xff]  }
  0x14   :  { %v4400_v56 = vld [vmem:[%s5952_s0 + $0x528] ss:$12 sps:$4 sm:$0xff]   ;;  %v4403_v58 = vld [vmem:[%s5952_s0 + $0x544] ss:$12 sps:$4 sm:$0xff]   ;;  %v4406_v60 = vld [vmem:[%s5952_s0 + $0x540] ss:$12 sps:$4 sm:$0xff]  }
  0x15   :  { %v4408_v61 = vld [vmem:[%s5952_s0 + $0xdc] ss:$12 sps:$4 sm:$0xff]   ;;  %v4412_v63 = vld [vmem:[%s5952_s0 + $0xd8] ss:$12 sps:$4 sm:$0xff]   ;;  %v4414_v1 = vld [vmem:[%s5952_s0 + $0xf4] ss:$12 sps:$4 sm:$0xff]  }
  0x16   :  { %1505 = vmatpush1.bf16.msra.mxu0 %v4338_v7  ;;  %4321 = vmatpush1.bf16.msra.mxu1 %v4338_v7  ;;  %v4410_v62 = vld [vmem:[%s5952_s0 + $0x55c] ss:$12 sps:$4 sm:$0xff]   ;;  %v4416_v2 = vld [vmem:[%s5952_s0 + $0x574] ss:$12 sps:$4 sm:$0xff]   ;;  %v4421_v5 = vld [vmem:[%s5952_s0 + $0x10c] ss:$12 sps:$4 sm:$0xff]  }
  0x17   :  { %1506 = vmatprep.subr.bf16.mxu0 %v4614_v0  ;;  %4306 = vmatprep.subr.bf16.mxu1 %v4614_v0  ;;  %v4418_v3 = vld [vmem:[%s5952_s0 + $0xf0] ss:$12 sps:$4 sm:$0xff]   ;;  %v4423_v6 = vld [vmem:[%s5952_s0 + $0x58c] ss:$12 sps:$4 sm:$0xff]   ;;  %v4425_v7 = vld [vmem:[%s5952_s0 + $0x108] ss:$12 sps:$4 sm:$0xff]  }
  0x18   :  { %v4419_v4 = vld [vmem:[%s5952_s0 + $0x570] ss:$12 sps:$4 sm:$0xff]   ;;  %v4426_v8 = vld [vmem:[%s5952_s0 + $0x588] ss:$12 sps:$4 sm:$0xff]  }
  0x1a   :  { %1507 = vmatpush1.bf16.msra.mxu0 %v4339_v9  ;;  %4322 = vmatpush1.bf16.msra.mxu1 %v4339_v9  ;;  %v4427_v9 = vld [vmem:[%s5952_s0 + $0x124] ss:$12 sps:$4 sm:$0xff]  }
  0x1b   :  { %1508 = vmatprep.subr.bf16.mxu0 %v4614_v0  ;;  %4307 = vmatprep.subr.bf16.mxu1 %v4614_v0 }
  0x1e   :  { %1509 = vmatpush1.bf16.msra.mxu0 %v4340_v10  ;;  %4323 = vmatpush1.bf16.msra.mxu1 %v4340_v10  ;;  %v4429_v10 = vld [vmem:[%s5952_s0 + $0x5a4] ss:$12 sps:$4 sm:$0xff]  }
  0x1f   :  { %1510 = vmatprep.subr.bf16.mxu0 %v4614_v0  ;;  %4308 = vmatprep.subr.bf16.mxu1 %v4614_v0 }
  0x22   :  { %1511 = vmatpush2.bf16.msra.mxu0 %v4341_v11  ;;  %4324 = vmatpush2.bf16.msra.mxu1 %v4341_v11  ;;  %v4431_v11 = vld [vmem:[%s5952_s0 + $0x120] ss:$12 sps:$4 sm:$0xff]  }
  0x23   :  { %1512 = vmatprep.subr.bf16.mxu0 %v4614_v0  ;;  %4309 = vmatprep.subr.bf16.mxu1 %v4614_v0 }
  0x26   :  { %1513 = vmatpush2.bf16.msra.mxu0 %v4342_v12  ;;  %4325 = vmatpush2.bf16.msra.mxu1 %v4342_v12  ;;  %v4432_v12 = vld [vmem:[%s5952_s0 + $0x5a0] ss:$12 sps:$4 sm:$0xff]  }
  0x27   :  { %1514 = vmatprep.subr.bf16.mxu0 %v4614_v0  ;;  %4310 = vmatprep.subr.bf16.mxu1 %v4614_v0 }
  0x2a   :  { %1515 = vmatpush2.bf16.msra.mxu0 %v4343_v13  ;;  %4326 = vmatpush2.bf16.msra.mxu1 %v4343_v13  ;;  %v4434_v13 = vld [vmem:[%s5952_s0 + $0x13c] ss:$12 sps:$4 sm:$0xff]  }
  0x2b   :  { %1516 = vmatprep.subr.bf16.mxu0 %v4614_v0  ;;  %4311 = vmatprep.subr.bf16.mxu1 %v4614_v0 }
  0x2e   :  { %1517 = vmatpush2.bf16.msra.mxu0 %v4344_v14  ;;  %4327 = vmatpush2.bf16.msra.mxu1 %v4344_v14  ;;  %v4436_v14 = vld [vmem:[%s5952_s0 + $0x5bc] ss:$12 sps:$4 sm:$0xff]  }
  0x2f   :  { %1518 = vmatprep.subr.bf16.mxu0 %v4614_v0  ;;  %4312 = vmatprep.subr.bf16.mxu1 %v4614_v0 }
  0x32   :  { %1519 = vmatpush2.bf16.msra.mxu0 %v4345_v15  ;;  %4328 = vmatpush2.bf16.msra.mxu1 %v4345_v15  ;;  %v4438_v15 = vld [vmem:[%s5952_s0 + $0x138] ss:$12 sps:$4 sm:$0xff]  }
  0x33   :  { %1520 = vmatprep.subr.bf16.mxu0 %v4614_v0  ;;  %4313 = vmatprep.subr.bf16.mxu1 %v4614_v0 }
  0x36   :  { %1521 = vmatpush2.bf16.msra.mxu0 %v4346_v16  ;;  %4329 = vmatpush2.bf16.msra.mxu1 %v4346_v16  ;;  %v4439_v16 = vld [vmem:[%s5952_s0 + $0x5b8] ss:$12 sps:$4 sm:$0xff]  }
  0x37   :  { %1522 = vmatprep.subr.bf16.mxu0 %v4614_v0  ;;  %4314 = vmatprep.subr.bf16.mxu1 %v4614_v0 }
  0x3a   :  { %1523 = vmatpush2.bf16.msra.mxu0 %v4347_v17  ;;  %4330 = vmatpush2.bf16.msra.mxu1 %v4347_v17  ;;  %v4440_v17 = vld [vmem:[%s5952_s0 + $0x154] ss:$12 sps:$4 sm:$0xff]  }
  0x3b   :  { %1524 = vmatprep.subr.bf16.mxu0 %v4614_v0  ;;  %4315 = vmatprep.subr.bf16.mxu1 %v4614_v0  ;;  %v4413_v0 = vld [vmem:[%s5952_s0 + $0x558] ss:$12 sps:$4 sm:$0xff]  }
  0x3e   :  { %1525 = vmatpush2.bf16.msra.mxu0 %v4348_v18  ;;  %4331 = vmatpush2.bf16.msra.mxu1 %v4348_v18  ;;  %v4442_v18 = vld [vmem:[%s5952_s0 + $0x5d4] ss:$12 sps:$4 sm:$0xff]  }
  0x3f   :  { %4156 = vmatprep.subr.bf16.mxu1 %v4355_v19 }
  0x41   :  { %1527 = vmatmul.mubr.bf16.vlgmr.msra.gmra.mxu0 %v4349_v20  ;;  %1911 = vmatmul.mubr.bf16.vlgmr.msra.gmra.mxu1 %v4352_v21  ;;  %v4445_v20 = vld [vmem:[%s5952_s0 + $0x5d0] ss:$12 sps:$4 sm:$0xff]   ;;  %v4447_v21 = vld [vmem:[%s5952_s0 + $0x16c] ss:$12 sps:$4 sm:$0xff]  }
  0x42   :  { %4157 = vmatpush3.bf16.msra.mxu1 %v4355_v19  ;;  %1534 = vmatprep.mubr.bf16.mxu0 %v4356_v22  ;;  %v4444_v19 = vld [vmem:[%s5952_s0 + $0x150] ss:$12 sps:$4 sm:$0xff]   ;;  %v4449_v22 = vld [vmem:[%s5952_s0 + $0x5ec] ss:$12 sps:$4 sm:$0xff]  }
  0x43   :  { %1918 = vmatprep.mubr.bf16.mxu1 %v4358_v23  ;;  %4158 = vmatprep.subr.bf16.mxu1 %v4368_v24  ;;  %v4451_v23 = vld [vmem:[%s5952_s0 + $0x168] ss:$12 sps:$4 sm:$0xff]  }
  0x46   :  { %4159 = vmatpush3.bf16.msra.mxu1 %v4368_v24  ;;  %v4452_v24 = vld [vmem:[%s5952_s0 + $0x5e8] ss:$12 sps:$4 sm:$0xff]  }
  0x47   :  { %4160 = vmatprep.subr.bf16.mxu1 %v4381_v25 }
  0x49   :  { %1535 = vmatmul.mubr.bf16.gmra.mxu0 %v4360_v26  ;;  %1919 = vmatmul.mubr.bf16.gmra.mxu1 %v4361_v27  ;;  %v4455_v26 = vld [vmem:[%s5952_s0 + $0x8] ss:$12 sps:$4 sm:$0xff]   ;;  %v4456_v27 = vld [vmem:[%s5952_s0 + $0x180] ss:$12 sps:$4 sm:$0xff]  }
  0x4a   :  { %1542 = vmatprep.mubr.bf16.mxu0 %v4362_v28  ;;  %1926 = vmatprep.mubr.bf16.mxu1 %v4364_v29  ;;  %v4457_v28 = vld [vmem:[%s5952_s0 + $0x20] ss:$12 sps:$4 sm:$0xff]   ;;  %v4458_v29 = vld [vmem:[%s5952_s0 + $0x19c] ss:$12 sps:$4 sm:$0xff]  }
  0x4b   :  { %4161 = vmatpush3.bf16.msra.mxu1 %v4381_v25  ;;  %v4453_v25 = vld [vmem:[%s5952_s0 + $0x184] ss:$12 sps:$4 sm:$0xff]  }
  0x4c   :  { %4162 = vmatprep.subr.bf16.mxu1 %v4394_v30 }
  0x4f   :  { %4163 = vmatpush3.bf16.msra.mxu1 %v4394_v30  ;;  %v4460_v30 = vld [vmem:[%s5952_s0 + $0x38] ss:$12 sps:$4 sm:$0xff]  }
  0x50   :  { %4164 = vmatprep.subr.bf16.mxu1 %v4407_v33 }
  0x51   :  { %1543 = vmatmul.mubr.bf16.gmra.mxu0 %v4366_v31  ;;  %1927 = vmatmul.mubr.bf16.gmra.mxu1 %v4367_v32  ;;  %v4461_v31 = vld [vmem:[%s5952_s0 + $0x198] ss:$12 sps:$4 sm:$0xff]   ;;  %v4462_v32 = vld [vmem:[%s5952_s0 + $0x50] ss:$12 sps:$4 sm:$0xff]  }
  0x52   :  { %1550 = vmatprep.mubr.bf16.mxu0 %v4369_v34  ;;  %1934 = vmatprep.mubr.bf16.mxu1 %v4371_v35  ;;  %v4465_v34 = vld [vmem:[%s5952_s0 + $0x68] ss:$12 sps:$4 sm:$0xff]   ;;  %v4466_v35 = vld [vmem:[%s5952_s0 + $0x1b0] ss:$12 sps:$4 sm:$0xff]  }
  0x53   :  { %4165 = vmatpush3.bf16.msra.mxu1 %v4407_v33  ;;  %v4463_v33 = vld [vmem:[%s5952_s0 + $0x1b4] ss:$12 sps:$4 sm:$0xff]  }
  0x54   :  { %4166 = vmatprep.subr.bf16.mxu1 %v4420_v36 }
  0x57   :  { %4167 = vmatpush3.bf16.msra.mxu1 %v4420_v36  ;;  %v4467_v36 = vld [vmem:[%s5952_s0 + $0x80] ss:$12 sps:$4 sm:$0xff]  }
  0x58   :  { %4168 = vmatprep.subr.bf16.mxu1 %v4433_v37 }
  0x59   :  { %1551 = vmatmul.mubr.bf16.gmra.mxu0 %v4373_v38  ;;  %1935 = vmatmul.mubr.bf16.gmra.mxu1 %v4374_v39  ;;  %v4470_v38 = vld [vmem:[%s5952_s0 + $0x98] ss:$12 sps:$4 sm:$0xff]   ;;  %v4471_v39 = vld [vmem:[%s5952_s0 + $0x1c8] ss:$12 sps:$4 sm:$0xff]  }
  0x5a   :  { %1558 = vmatprep.mubr.bf16.mxu0 %v4375_v40  ;;  %1942 = vmatprep.mubr.bf16.mxu1 %v4377_v41  ;;  %v4472_v40 = vld [vmem:[%s5952_s0 + $0xb0] ss:$12 sps:$4 sm:$0xff]  }
  0x5b   :  { %4169 = vmatpush3.bf16.msra.mxu1 %v4433_v37  ;;  %v4468_v37 = vld [vmem:[%s5952_s0 + $0x1cc] ss:$12 sps:$4 sm:$0xff]   ;;  %v4473_v41 = vld [vmem:[%s5952_s0 + $0x1e4] ss:$12 sps:$4 sm:$0xff]  }
  0x5c   :  { %4170 = vmatprep.subr.bf16.mxu1 %v4446_v42 }
  0x5f   :  { %4171 = vmatpush3.bf16.msra.mxu1 %v4446_v42  ;;  %v4475_v42 = vld [vmem:[%s5952_s0 + $0xc8] ss:$12 sps:$4 sm:$0xff]  }
  0x61   :  { %1559 = vmatmul.mubr.bf16.gmra.mxu0 %v4379_v43  ;;  %1943 = vmatmul.mubr.bf16.gmra.mxu1 %v4380_v44  ;;  %v4476_v43 = vld [vmem:[%s5952_s0 + $0x1e0] ss:$12 sps:$4 sm:$0xff]  }
  0x62   :  { %1566 = vmatprep.mubr.bf16.mxu0 %v4382_v45  ;;  %1950 = vmatprep.mubr.bf16.mxu1 %v4384_v46  ;;  %v4477_v44 = vld [vmem:[%s5952_s0 + $0xe0] ss:$12 sps:$4 sm:$0xff]   ;;  %v4478_v45 = vld [vmem:[%s5952_s0 + $0x1fc] ss:$12 sps:$4 sm:$0xff]   ;;  %v4480_v46 = vld [vmem:[%s5952_s0 + $0xf8] ss:$12 sps:$4 sm:$0xff]  }
  0x69   :  { %1567 = vmatmul.mubr.bf16.gmra.mxu0 %v4386_v47  ;;  %1951 = vmatmul.mubr.bf16.gmra.mxu1 %v4387_v48  ;;  %v4481_v47 = vld [vmem:[%s5952_s0 + $0x1f8] ss:$12 sps:$4 sm:$0xff]   ;;  %v4482_v48 = vld [vmem:[%s5952_s0 + $0x110] ss:$12 sps:$4 sm:$0xff]  }
  0x6a   :  { %1574 = vmatprep.mubr.bf16.mxu0 %v4388_v49  ;;  %1958 = vmatprep.mubr.bf16.mxu1 %v4390_v50  ;;  %v4483_v49 = vld [vmem:[%s5952_s0 + $0x214] ss:$12 sps:$4 sm:$0xff]  }
  0x6b   :  { %v4485_v50 = vld [vmem:[%s5952_s0 + $0x128] ss:$12 sps:$4 sm:$0xff]  }
  0x71   :  { %1575 = vmatmul.mubr.bf16.gmra.mxu0 %v4392_v51  ;;  %1959 = vmatmul.mubr.bf16.gmra.mxu1 %v4393_v52  ;;  %v4486_v51 = vld [vmem:[%s5952_s0 + $0x210] ss:$12 sps:$4 sm:$0xff]   ;;  %v4487_v52 = vld [vmem:[%s5952_s0 + $0x140] ss:$12 sps:$4 sm:$0xff]  }
  0x72   :  { %1582 = vmatprep.mubr.bf16.mxu0 %v4395_v53  ;;  %1966 = vmatprep.mubr.bf16.mxu1 %v4397_v54  ;;  %v4488_v53 = vld [vmem:[%s5952_s0 + $0x22c] ss:$12 sps:$4 sm:$0xff]  }
  0x73   :  { %v4490_v54 = vld [vmem:[%s5952_s0 + $0x158] ss:$12 sps:$4 sm:$0xff]  }
  0x79   :  { %1583 = vmatmul.mubr.bf16.gmra.mxu0 %v4399_v55  ;;  %1967 = vmatmul.mubr.bf16.gmra.mxu1 %v4400_v56  ;;  %v4491_v55 = vld [vmem:[%s5952_s0 + $0x228] ss:$12 sps:$4 sm:$0xff]   ;;  %v4492_v56 = vld [vmem:[%s5952_s0 + $0x170] ss:$12 sps:$4 sm:$0xff]  }
  0x7a   :  { %1590 = vmatprep.mubr.bf16.mxu0 %v4401_v57  ;;  %1974 = vmatprep.mubr.bf16.mxu1 %v4403_v58  ;;  %v4493_v57 = vld [vmem:[%s5952_s0 + $0x244] ss:$12 sps:$4 sm:$0xff]   ;;  %v4495_v58 = vld [vmem:[%s5952_s0 + $0x188] ss:$12 sps:$4 sm:$0xff]  }
  0x81   :  { %1591 = vmatmul.mubr.bf16.gmra.mxu0 %v4405_v59  ;;  %1975 = vmatmul.mubr.bf16.gmra.mxu1 %v4406_v60  ;;  %v4496_v59 = vld [vmem:[%s5952_s0 + $0x240] ss:$12 sps:$4 sm:$0xff]  }
  0x82   :  { %1598 = vmatprep.mubr.bf16.mxu0 %v4408_v61  ;;  %1982 = vmatprep.mubr.bf16.mxu1 %v4410_v62  ;;  %v4497_v60 = vld [vmem:[%s5952_s0 + $0x1a0] ss:$12 sps:$4 sm:$0xff]   ;;  %v4498_v61 = vld [vmem:[%s5952_s0 + $0x25c] ss:$12 sps:$4 sm:$0xff]   ;;  %v4500_v62 = vld [vmem:[%s5952_s0 + $0x1b8] ss:$12 sps:$4 sm:$0xff]  }
  0x89   :  { %1599 = vmatmul.mubr.bf16.gmra.mxu0 %v4412_v63  ;;  %1983 = vmatmul.mubr.bf16.gmra.mxu1 %v4413_v0 }
  0x8a   :  { %1606 = vmatprep.mubr.bf16.mxu0 %v4414_v1  ;;  %1990 = vmatprep.mubr.bf16.mxu1 %v4416_v2 }
  0x91   :  { %1607 = vmatmul.mubr.bf16.gmra.mxu0 %v4418_v3  ;;  %1991 = vmatmul.mubr.bf16.gmra.mxu1 %v4419_v4 }
  0x92   :  { %1614 = vmatprep.mubr.bf16.mxu0 %v4421_v5  ;;  %1998 = vmatprep.mubr.bf16.mxu1 %v4423_v6  ;;  %v4501_v5 = vld [vmem:[%s5952_s0 + $0x258] ss:$12 sps:$4 sm:$0xff]   ;;  %v4502_v6 = vld [vmem:[%s5952_s0 + $0x1d0] ss:$12 sps:$4 sm:$0xff]  }
  0x99   :  { %1615 = vmatmul.mubr.bf16.gmra.mxu0 %v4425_v7  ;;  %1999 = vmatmul.mubr.bf16.gmra.mxu1 %v4426_v8  ;;  %v4503_v7 = vld [vmem:[%s5952_s0 + $0x274] ss:$12 sps:$4 sm:$0xff]  }
  0x9a   :  { %1622 = vmatprep.mubr.bf16.mxu0 %v4427_v9  ;;  %2006 = vmatprep.mubr.bf16.mxu1 %v4429_v10  ;;  %v4505_v8 = vld [vmem:[%s5952_s0 + $0x1e8] ss:$12 sps:$4 sm:$0xff]  }
  0xa1   :  { %1623 = vmatmul.mubr.bf16.gmra.mxu0 %v4431_v11  ;;  %2007 = vmatmul.mubr.bf16.gmra.mxu1 %v4432_v12 }
  0xa2   :  { %1630 = vmatprep.mubr.bf16.mxu0 %v4434_v13  ;;  %2014 = vmatprep.mubr.bf16.mxu1 %v4436_v14 }
  0xa9   :  { %1631 = vmatmul.mubr.bf16.gmra.mxu0 %v4438_v15  ;;  %2015 = vmatmul.mubr.bf16.gmra.mxu1 %v4439_v16 }
  0xaa   :  { %1638 = vmatprep.mubr.bf16.mxu0 %v4440_v17  ;;  %2022 = vmatprep.mubr.bf16.mxu1 %v4442_v18  ;;  %v4506_v17 = vld [vmem:[%s5952_s0 + $0x270] ss:$12 sps:$4 sm:$0xff]   ;;  %v4507_v18 = vld [vmem:[%s5952_s0 + $0x200] ss:$12 sps:$4 sm:$0xff]  }
  0xb1   :  { %1639 = vmatmul.mubr.bf16.gmra.mxu0 %v4444_v19  ;;  %2023 = vmatmul.mubr.bf16.gmra.mxu1 %v4445_v20  ;;  %v4508_v19 = vld [vmem:[%s5952_s0 + $0x28c] ss:$12 sps:$4 sm:$0xff]  }
  0xb2   :  { %1646 = vmatprep.mubr.bf16.mxu0 %v4447_v21  ;;  %2030 = vmatprep.mubr.bf16.mxu1 %v4449_v22  ;;  %v4510_v20 = vld [vmem:[%s5952_s0 + $0x218] ss:$12 sps:$4 sm:$0xff]  }
  0xb9   :  { %1647 = vmatmul.mubr.bf16.gmra.mxu0 %v4451_v23  ;;  %2031 = vmatmul.mubr.bf16.gmra.mxu1 %v4452_v24 }
  0xba   :  { %1654 = vmatprep.mubr.bf16.mxu0 %v4453_v25  ;;  %4172 = vmatprep.mubr.bf16.mxu1 %v4455_v26 }
  0xc1   :  { %1655 = vmatmul.mubr.bf16.gmra.mxu0 %v4456_v27  ;;  %4173 = vmatmul.mubr.bf16.vlgmr.msra.gmra.mxu1 %v4457_v28 }
  0xc2   :  { %1662 = vmatprep.mubr.bf16.mxu0 %v4458_v29  ;;  %4176 = vmatprep.mubr.bf16.mxu1 %v4460_v30  ;;  %v4511_v29 = vld [vmem:[%s5952_s0 + $0x288] ss:$12 sps:$4 sm:$0xff]   ;;  %v4512_v30 = vld [vmem:[%s5952_s0 + $0x230] ss:$12 sps:$4 sm:$0xff]  }
  0xc9   :  { %1663 = vmatmul.mubr.bf16.gmra.mxu0 %v4461_v31  ;;  %4177 = vmatmul.mubr.bf16.gmra.mxu1 %v4462_v32  ;;  %v4515_v31 = vld [vmem:[%s5952_s0 + $0x2a4] ss:$12 sps:$4 sm:$0xff]   ;;  %v4516_v32 = vld [vmem:[%s5952_s0 + $0x248] ss:$12 sps:$4 sm:$0xff]  }
  0xca   :  { %1670 = vmatprep.mubr.bf16.mxu0 %v4463_v33  ;;  %4180 = vmatprep.mubr.bf16.mxu1 %v4465_v34 }
  0xd1   :  { %1671 = vmatmul.mubr.bf16.gmra.mxu0 %v4466_v35  ;;  %4181 = vmatmul.mubr.bf16.gmra.mxu1 %v4467_v36 }
  0xd2   :  { %1678 = vmatprep.mubr.bf16.mxu0 %v4468_v37  ;;  %4184 = vmatprep.mubr.bf16.mxu1 %v4470_v38 }
  0xd9   :  { %1679 = vmatmul.mubr.bf16.gmra.mxu0 %v4471_v39  ;;  %4185 = vmatmul.mubr.bf16.gmra.mxu1 %v4472_v40 }
  0xda   :  { %1686 = vmatprep.mubr.bf16.mxu0 %v4473_v41  ;;  %4188 = vmatprep.mubr.bf16.mxu1 %v4475_v42  ;;  %v4513_v41 = vld [vmem:[%s5952_s0 + $0x2a0] ss:$12 sps:$4 sm:$0xff]  }
  0xdb   :  { %v4517_v42 = vld [vmem:[%s5952_s0 + $0x260] ss:$12 sps:$4 sm:$0xff]  }
  0xe1   :  { %1687 = vmatmul.mubr.bf16.gmra.mxu0 %v4476_v43  ;;  %4189 = vmatmul.mubr.bf16.gmra.mxu1 %v4477_v44  ;;  %v4520_v43 = vld [vmem:[%s5952_s0 + $0x2bc] ss:$12 sps:$4 sm:$0xff]   ;;  %v4521_v44 = vld [vmem:[%s5952_s0 + $0x278] ss:$12 sps:$4 sm:$0xff]  }
  0xe2   :  { %1694 = vmatprep.mubr.bf16.mxu0 %v4478_v45  ;;  %4192 = vmatprep.mubr.bf16.mxu1 %v4480_v46 }
  0xe9   :  { %1695 = vmatmul.mubr.bf16.gmra.mxu0 %v4481_v47  ;;  %4193 = vmatmul.mubr.bf16.gmra.mxu1 %v4482_v48 }
  0xea   :  { %1702 = vmatprep.mubr.bf16.mxu0 %v4483_v49  ;;  %4196 = vmatprep.mubr.bf16.mxu1 %v4485_v50 }
  0xf1   :  { %1703 = vmatmul.mubr.bf16.gmra.mxu0 %v4486_v51  ;;  %4197 = vmatmul.mubr.bf16.gmra.mxu1 %v4487_v52 }
  0xf2   :  { %1710 = vmatprep.mubr.bf16.mxu0 %v4488_v53  ;;  %4200 = vmatprep.mubr.bf16.mxu1 %v4490_v54  ;;  %v4518_v53 = vld [vmem:[%s5952_s0 + $0x2b8] ss:$12 sps:$4 sm:$0xff]   ;;  %v4522_v54 = vld [vmem:[%s5952_s0 + $0x290] ss:$12 sps:$4 sm:$0xff]  }
  0xf9   :  { %1711 = vmatmul.mubr.bf16.gmra.mxu0 %v4491_v55  ;;  %4201 = vmatmul.mubr.bf16.gmra.mxu1 %v4492_v56  ;;  %v4525_v55 = vld [vmem:[%s5952_s0 + $0x2d4] ss:$12 sps:$4 sm:$0xff]  }
  0xfa   :  { %1718 = vmatprep.mubr.bf16.mxu0 %v4493_v57  ;;  %4204 = vmatprep.mubr.bf16.mxu1 %v4495_v58  ;;  %v4526_v56 = vld [vmem:[%s5952_s0 + $0x2a8] ss:$12 sps:$4 sm:$0xff]  }
 0x101   :  { %v5045_v63 = vpop.f32.mrf.mxu0  ;;  %1719 = vmatmul.mubr.bf16.gmra.mxu0 %v4496_v59  ;;  %v5047_v0 = vpop.f32.mrf.mxu1  ;;  %4205 = vmatmul.mubr.bf16.gmra.mxu1 %v4497_v60 }
 0x102   :  { %1726 = vmatprep.mubr.bf16.mxu0 %v4498_v61  ;;  %4208 = vmatprep.mubr.bf16.mxu1 %v4500_v62 }
 0x103   :  { %v1530_v1 = vpop.f32.mrf.mxu0  ;;  %v1914_v2 = vpop.f32.mrf.mxu1 }
 0x105   :  { %v5049_v3 = vpop.f32.mrf.mxu0  ;;  %v5051_v4 = vpop.f32.mrf.mxu1 }
 0x107   :  { %v1533_v9 = vpop.f32.mrf.mxu0  ;;  %v1917_v10 = vpop.f32.mrf.mxu1 }
 0x109   :  { %v5065_v11 = vpop.f32.mrf.mxu0  ;;  %1727 = vmatmul.mubr.bf16.gmra.mxu0 %v4501_v5  ;;  %v5067_v12 = vpop.f32.mrf.mxu1  ;;  %4209 = vmatmul.mubr.bf16.gmra.mxu1 %v4502_v6  ;;  %v4523_v5 = vld [vmem:[%s5952_s0 + $0x2d0] ss:$12 sps:$4 sm:$0xff]   ;;  %v4527_v6 = vld [vmem:[%s5952_s0 + $0x2c0] ss:$12 sps:$4 sm:$0xff]  }
 0x10a   :  { %1734 = vmatprep.mubr.bf16.mxu0 %v4503_v7  ;;  %4212 = vmatprep.mubr.bf16.mxu1 %v4505_v8  ;;  %v4530_v7 = vld [vmem:[%s5952_s0 + $0x2ec] ss:$12 sps:$4 sm:$0xff]  }
 0x10b   :  { %v1538_v13 = vpop.f32.mrf.mxu0  ;;  %v1922_v14 = vpop.f32.mrf.mxu1  ;;  %v4531_v8 = vld [vmem:[%s5952_s0 + $0x2d8] ss:$12 sps:$4 sm:$0xff]  }
 0x10d   :  { %v5069_v15 = vpop.f32.mrf.mxu0  ;;  %v5071_v16 = vpop.f32.mrf.mxu1 }
 0x10f   :  { %v1541_v21 = vpop.f32.mrf.mxu0  ;;  %v1925_v22 = vpop.f32.mrf.mxu1 }
 0x110   :  { %v4528_v21 = vld [vmem:[%s5952_s0 + $0x2e8] ss:$12 sps:$4 sm:$0xff]   ;;  %v4532_v22 = vld [vmem:[%s5952_s0 + $0x2f0] ss:$12 sps:$4 sm:$0xff]  }
 0x111   :  { %v5085_v23 = vpop.f32.mrf.mxu0  ;;  %1735 = vmatmul.mubr.bf16.gmra.mxu0 %v4506_v17  ;;  %v5087_v24 = vpop.f32.mrf.mxu1  ;;  %4213 = vmatmul.mubr.bf16.gmra.mxu1 %v4507_v18 }
 0x112   :  { %1742 = vmatprep.mubr.bf16.mxu0 %v4508_v19  ;;  %4216 = vmatprep.mubr.bf16.mxu1 %v4510_v20 }
 0x113   :  { %v1546_v25 = vpop.f32.mrf.mxu0  ;;  %v1930_v26 = vpop.f32.mrf.mxu1 }
 0x114   :  { %v4535_v25 = vld [vmem:[%s5952_s0 + $0x304] ss:$12 sps:$4 sm:$0xff]   ;;  %v4536_v26 = vld [vmem:[%s5952_s0 + $0x308] ss:$12 sps:$4 sm:$0xff]  }
 0x115   :  { %v5089_v27 = vpop.f32.mrf.mxu0  ;;  %v5091_v28 = vpop.f32.mrf.mxu1 }
 0x117   :  { %v1549_v33 = vpop.f32.mrf.mxu0  ;;  %v1933_v34 = vpop.f32.mrf.mxu1 }
 0x119   :  { %v5105_v35 = vpop.f32.mrf.mxu0  ;;  %1743 = vmatmul.mubr.bf16.gmra.mxu0 %v4511_v29  ;;  %v5107_v36 = vpop.f32.mrf.mxu1  ;;  %4217 = vmatmul.mubr.bf16.gmra.mxu1 %v4512_v30 }
 0x11a   :  { %1750 = vmatprep.mubr.bf16.mxu0 %v4515_v31  ;;  %4220 = vmatprep.mubr.bf16.mxu1 %v4516_v32 }
 0x11b   :  { %v1554_v37 = vpop.f32.mrf.mxu0  ;;  %v1938_v38 = vpop.f32.mrf.mxu1 }
 0x11d   :  { %v5109_v39 = vpop.f32.mrf.mxu0  ;;  %v5111_v40 = vpop.f32.mrf.mxu1 }
 0x11f   :  { %v1557_v45 = vpop.f32.mrf.mxu0  ;;  %v1941_v46 = vpop.f32.mrf.mxu1 }
 0x121   :  { %v5125_v47 = vpop.f32.mrf.mxu0  ;;  %1751 = vmatmul.mubr.bf16.gmra.mxu0 %v4513_v41  ;;  %v5127_v48 = vpop.f32.mrf.mxu1  ;;  %4221 = vmatmul.mubr.bf16.gmra.mxu1 %v4517_v42  ;;  %v4533_v41 = vld [vmem:[%s5952_s0 + $0x300] ss:$12 sps:$4 sm:$0xff]  }
 0x122   :  { %1758 = vmatprep.mubr.bf16.mxu0 %v4520_v43  ;;  %4224 = vmatprep.mubr.bf16.mxu1 %v4521_v44  ;;  %v4537_v42 = vld [vmem:[%s5952_s0 + $0x320] ss:$12 sps:$4 sm:$0xff]   ;;  %v4540_v43 = vld [vmem:[%s5952_s0 + $0x31c] ss:$12 sps:$4 sm:$0xff]   ;;  %v4541_v44 = vld [vmem:[%s5952_s0 + $0x338] ss:$12 sps:$4 sm:$0xff]  }
 0x123   :  { %v1562_v49 = vpop.f32.mrf.mxu0  ;;  %v1946_v50 = vpop.f32.mrf.mxu1 }
 0x125   :  { %v5129_v51 = vpop.f32.mrf.mxu0  ;;  %v5131_v52 = vpop.f32.mrf.mxu1 }
 0x127   :  { %v1565_v57 = vpop.f32.mrf.mxu0  ;;  %v1949_v58 = vpop.f32.mrf.mxu1 }
 0x128   :  { %v4538_v57 = vld [vmem:[%s5952_s0 + $0x318] ss:$12 sps:$4 sm:$0xff]   ;;  %v4542_v58 = vld [vmem:[%s5952_s0 + $0x350] ss:$12 sps:$4 sm:$0xff]  }
 0x129   :  { %v5145_v59 = vpop.f32.mrf.mxu0  ;;  %1759 = vmatmul.mubr.bf16.gmra.mxu0 %v4518_v53  ;;  %v5147_v60 = vpop.f32.mrf.mxu1  ;;  %4225 = vmatmul.mubr.bf16.gmra.mxu1 %v4522_v54 }
 0x12a   :  { %1766 = vmatprep.mubr.bf16.mxu0 %v4525_v55  ;;  %4228 = vmatprep.mubr.bf16.mxu1 %v4526_v56 }
 0x12b   :  { %v1570_v61 = vpop.f32.mrf.mxu0  ;;  %v1954_v62 = vpop.f32.mrf.mxu1 }
 0x12c   :  { %v4545_v61 = vld [vmem:[%s5952_s0 + $0x334] ss:$12 sps:$4 sm:$0xff]  }
 0x12d   :  { %v5149_v1 = vpop.f32.mrf.mxu0  ;;  %v5151_v2 = vpop.f32.mrf.mxu1  ;;  %v4546_v62 = vld [vmem:[%s5952_s0 + $0x368] ss:$12 sps:$4 sm:$0xff]  }
 0x12f   :  { %v1573_v9 = vpop.f32.mrf.mxu0  ;;  %v1957_v10 = vpop.f32.mrf.mxu1 }
 0x131   :  { %v5165_v13 = vpop.f32.mrf.mxu0  ;;  %1767 = vmatmul.mubr.bf16.gmra.mxu0 %v4523_v5  ;;  %v5167_v14 = vpop.f32.mrf.mxu1  ;;  %4229 = vmatmul.mubr.bf16.gmra.mxu1 %v4527_v6 }
 0x132   :  { %5955 = vst [vmem:[#allocation2_spill] sm:$0xff] %v5167_v14  ;;  %1774 = vmatprep.mubr.bf16.mxu0 %v4530_v7  ;;  %4232 = vmatprep.mubr.bf16.mxu1 %v4531_v8 }
 0x133   :  { %v1578_v17 = vpop.f32.mrf.mxu0  ;;  %v1962_v18 = vpop.f32.mrf.mxu1 }
 0x135   :  { %v5169_v19 = vpop.f32.mrf.mxu0  ;;  %v5171_v20 = vpop.f32.mrf.mxu1 }
 0x136   :  { %5956 = vst [vmem:[#allocation3_spill] sm:$0xff] %v5171_v20 }
 0x137   :  { %v1581_v29 = vpop.f32.mrf.mxu0  ;;  %v1965_v30 = vpop.f32.mrf.mxu1 }
 0x139   :  { %v5185_v31 = vpop.f32.mrf.mxu0  ;;  %1775 = vmatmul.mubr.bf16.gmra.mxu0 %v4528_v21  ;;  %v5187_v32 = vpop.f32.mrf.mxu1  ;;  %4233 = vmatmul.mubr.bf16.gmra.mxu1 %v4532_v22  ;;  %v4543_v21 = vld [vmem:[%s5952_s0 + $0x330] ss:$12 sps:$4 sm:$0xff]   ;;  %v4547_v22 = vld [vmem:[%s5952_s0 + $0x380] ss:$12 sps:$4 sm:$0xff]  }
 0x13a   :  { %5957 = vst [vmem:[#allocation4_spill] sm:$0xff] %v5187_v32  ;;  %1782 = vmatprep.mubr.bf16.mxu0 %v4535_v25  ;;  %4236 = vmatprep.mubr.bf16.mxu1 %v4536_v26  ;;  %v4550_v25 = vld [vmem:[%s5952_s0 + $0x34c] ss:$12 sps:$4 sm:$0xff]  }
 0x13b   :  { %v1586_v33 = vpop.f32.mrf.mxu0  ;;  %v1970_v34 = vpop.f32.mrf.mxu1  ;;  %v4551_v26 = vld [vmem:[%s5952_s0 + $0x398] ss:$12 sps:$4 sm:$0xff]  }
 0x13d   :  { %v5189_v37 = vpop.f32.mrf.mxu0  ;;  %v5191_v38 = vpop.f32.mrf.mxu1 }
 0x13e   :  { %5958 = vst [vmem:[#allocation5_spill] sm:$0xff] %v5191_v38 }
 0x13f   :  { %v1589_v45 = vpop.f32.mrf.mxu0  ;;  %v1973_v46 = vpop.f32.mrf.mxu1 }
 0x140   :  { %v4548_v45 = vld [vmem:[%s5952_s0 + $0x348] ss:$12 sps:$4 sm:$0xff]   ;;  %v4552_v46 = vld [vmem:[%s5952_s0 + $0x3b0] ss:$12 sps:$4 sm:$0xff]  }
 0x141   :  { %v5205_v49 = vpop.f32.mrf.mxu0  ;;  %1783 = vmatmul.mubr.bf16.gmra.mxu0 %v4533_v41  ;;  %v5207_v50 = vpop.f32.mrf.mxu1  ;;  %4237 = vmatmul.mubr.bf16.gmra.mxu1 %v4537_v42 }
 0x142   :  { %5959 = vst [vmem:[#allocation6_spill] sm:$0xff] %v5207_v50  ;;  %1790 = vmatprep.mubr.bf16.mxu0 %v4540_v43  ;;  %4240 = vmatprep.mubr.bf16.mxu1 %v4541_v44  ;;  %v4586_v50 = vld [vmem:[%s5952_s0 + $0x4e8] ss:$12 sps:$4 sm:$0xff]  }
 0x143   :  { %v1594_v53 = vpop.f32.mrf.mxu0  ;;  %v1978_v54 = vpop.f32.mrf.mxu1 }
 0x144   :  { %v4555_v53 = vld [vmem:[%s5952_s0 + $0x364] ss:$12 sps:$4 sm:$0xff]   ;;  %v4556_v54 = vld [vmem:[%s5952_s0 + $0x3c8] ss:$12 sps:$4 sm:$0xff]  }
 0x145   :  { %v5209_v55 = vpop.f32.mrf.mxu0  ;;  %v5211_v56 = vpop.f32.mrf.mxu1 }
 0x146   :  { %5960 = vst [vmem:[#allocation7_spill] sm:$0xff] %v5211_v56 }
 0x147   :  { %v1597_v5 = vpop.f32.mrf.mxu0  ;;  %v1981_v6 = vpop.f32.mrf.mxu1 }
 0x149   :  { %v5225_v7 = vpop.f32.mrf.mxu0  ;;  %1791 = vmatmul.mubr.bf16.gmra.mxu0 %v4538_v57  ;;  %v5227_v8 = vpop.f32.mrf.mxu1  ;;  %4241 = vmatmul.mubr.bf16.gmra.mxu1 %v4542_v58 }
 0x14a   :  { %5961 = vst [vmem:[#allocation8_spill] sm:$0xff] %v5227_v8  ;;  %1798 = vmatprep.mubr.bf16.mxu0 %v4545_v61  ;;  %4244 = vmatprep.mubr.bf16.mxu1 %v4546_v62 }
 0x14b   :  { %v1602_v9 = vpop.f32.mrf.mxu0  ;;  %v1986_v10 = vpop.f32.mrf.mxu1 }
 0x14d   :  { %v5229_v17 = vpop.f32.mrf.mxu0  ;;  %v5231_v18 = vpop.f32.mrf.mxu1 }
 0x14e   :  { %5962 = vst [vmem:[#allocation9_spill] sm:$0xff] %v5231_v18 }
 0x14f   :  { %v1605_v29 = vpop.f32.mrf.mxu0  ;;  %v1989_v30 = vpop.f32.mrf.mxu1 }
 0x151   :  { %v5245_v33 = vpop.f32.mrf.mxu0  ;;  %1799 = vmatmul.mubr.bf16.gmra.mxu0 %v4543_v21  ;;  %v5247_v34 = vpop.f32.mrf.mxu1  ;;  %4245 = vmatmul.mubr.bf16.gmra.mxu1 %v4547_v22  ;;  %v4553_v21 = vld [vmem:[%s5952_s0 + $0x360] ss:$12 sps:$4 sm:$0xff]  }
 0x152   :  { %5963 = vst [vmem:[#allocation10_spill] sm:$0xff] %v5247_v34  ;;  %1806 = vmatprep.mubr.bf16.mxu0 %v4550_v25  ;;  %4248 = vmatprep.mubr.bf16.mxu1 %v4551_v26  ;;  %v4557_v22 = vld [vmem:[%s5952_s0 + $0x3e0] ss:$12 sps:$4 sm:$0xff]   ;;  %v4560_v25 = vld [vmem:[%s5952_s0 + $0x37c] ss:$12 sps:$4 sm:$0xff]  }
 0x153   :  { %v1610_v41 = vpop.f32.mrf.mxu0  ;;  %v1994_v42 = vpop.f32.mrf.mxu1  ;;  %v4561_v26 = vld [vmem:[%s5952_s0 + $0x3f8] ss:$12 sps:$4 sm:$0xff]  }
 0x155   :  { %v5249_v43 = vpop.f32.mrf.mxu0  ;;  %v5251_v44 = vpop.f32.mrf.mxu1 }
 0x156   :  { %5964 = vst [vmem:[#allocation11_spill] sm:$0xff] %v5251_v44  ;;  %v4568_v44 = vld [vmem:[%s5952_s0 + $0x3a8] ss:$12 sps:$4 sm:$0xff]  }
 0x157   :  { %v1613_v57 = vpop.f32.mrf.mxu0  ;;  %v1997_v58 = vpop.f32.mrf.mxu1 }
 0x158   :  { %v4558_v57 = vld [vmem:[%s5952_s0 + $0x378] ss:$12 sps:$4 sm:$0xff]   ;;  %v4562_v58 = vld [vmem:[%s5952_s0 + $0x410] ss:$12 sps:$4 sm:$0xff]  }
 0x159   :  { %v5265_v61 = vpop.f32.mrf.mxu0  ;;  %1807 = vmatmul.mubr.bf16.gmra.mxu0 %v4548_v45  ;;  %v5267_v62 = vpop.f32.mrf.mxu1  ;;  %4249 = vmatmul.mubr.bf16.gmra.mxu1 %v4552_v46 }
 0x15a   :  { %5965 = vst [vmem:[#allocation12_spill] sm:$0xff] %v5267_v62  ;;  %1814 = vmatprep.mubr.bf16.mxu0 %v4555_v53  ;;  %4252 = vmatprep.mubr.bf16.mxu1 %v4556_v54 }
 0x15b   :  { %v1618_v5 = vpop.f32.mrf.mxu0  ;;  %v2002_v6 = vpop.f32.mrf.mxu1 }
 0x15c   :  { %v4565_v5 = vld [vmem:[%s5952_s0 + $0x394] ss:$12 sps:$4 sm:$0xff]  }
 0x15d   :  { %v5269_v9 = vpop.f32.mrf.mxu0  ;;  %v5271_v10 = vpop.f32.mrf.mxu1  ;;  %v4566_v6 = vld [vmem:[%s5952_s0 + $0x428] ss:$12 sps:$4 sm:$0xff]  }
 0x15e   :  { %5966 = vst [vmem:[#allocation13_spill] sm:$0xff] %v5271_v10  ;;  %v4573_v10 = vld [vmem:[%s5952_s0 + $0x3c0] ss:$12 sps:$4 sm:$0xff]  }
 0x15f   :  { %v1621_v29 = vpop.f32.mrf.mxu0  ;;  %v2005_v30 = vpop.f32.mrf.mxu1 }
 0x161   :  { %v5285_v41 = vpop.f32.mrf.mxu0  ;;  %1815 = vmatmul.mubr.bf16.gmra.mxu0 %v4553_v21  ;;  %v5287_v42 = vpop.f32.mrf.mxu1  ;;  %4253 = vmatmul.mubr.bf16.gmra.mxu1 %v4557_v22 }
 0x162   :  { %5967 = vst [vmem:[#allocation14_spill] sm:$0xff] %v5287_v42  ;;  %1822 = vmatprep.mubr.bf16.mxu0 %v4560_v25  ;;  %4256 = vmatprep.mubr.bf16.mxu1 %v4561_v26 }
 0x163   :  { %v1626_v45 = vpop.f32.mrf.mxu0  ;;  %v2010_v46 = vpop.f32.mrf.mxu1 }
 0x165   :  { %v5289_v53 = vpop.f32.mrf.mxu0  ;;  %v5291_v54 = vpop.f32.mrf.mxu1 }
 0x166   :  { %5968 = vst [vmem:[#allocation15_spill] sm:$0xff] %v5291_v54  ;;  %v4563_v54 = vld [vmem:[%s5952_s0 + $0x390] ss:$12 sps:$4 sm:$0xff]  }
 0x167   :  { %v1629_v21 = vpop.f32.mrf.mxu0  ;;  %v2013_v22 = vpop.f32.mrf.mxu1 }
 0x168   :  { %v4567_v21 = vld [vmem:[%s5952_s0 + $0x440] ss:$12 sps:$4 sm:$0xff]  }
 0x169   :  { %v5305_v25 = vpop.f32.mrf.mxu0  ;;  %1823 = vmatmul.mubr.bf16.gmra.mxu0 %v4558_v57  ;;  %v5307_v26 = vpop.f32.mrf.mxu1  ;;  %4257 = vmatmul.mubr.bf16.gmra.mxu1 %v4562_v58  ;;  %v4570_v57 = vld [vmem:[%s5952_s0 + $0x3ac] ss:$12 sps:$4 sm:$0xff]  }
 0x16a   :  { %5969 = vst [vmem:[#allocation16_spill] sm:$0xff] %v5307_v26  ;;  %1830 = vmatprep.mubr.bf16.mxu0 %v4565_v5  ;;  %4260 = vmatprep.mubr.bf16.mxu1 %v4566_v6  ;;  %v4571_v58 = vld [vmem:[%s5952_s0 + $0x458] ss:$12 sps:$4 sm:$0xff]  }
 0x16b   :  { %v1634_v29 = vpop.f32.mrf.mxu0  ;;  %v2018_v30 = vpop.f32.mrf.mxu1 }
 0x16d   :  { %v5309_v45 = vpop.f32.mrf.mxu0  ;;  %v5311_v46 = vpop.f32.mrf.mxu1 }
 0x16e   :  { %5970 = vst [vmem:[#allocation17_spill] sm:$0xff] %v5311_v46 }
 0x16f   :  { %v1637_v5 = vpop.f32.mrf.mxu0  ;;  %v2021_v6 = vpop.f32.mrf.mxu1 }
 0x170   :  { %v4572_v5 = vld [vmem:[%s5952_s0 + $0x470] ss:$12 sps:$4 sm:$0xff]  }
 0x171   :  { %v5325_v22 = vpop.f32.mrf.mxu0  ;;  %1831 = vmatmul.mubr.bf16.gmra.mxu0 %v4563_v54  ;;  %v5327_v29 = vpop.f32.mrf.mxu1  ;;  %4261 = vmatmul.mubr.bf16.gmra.mxu1 %v4567_v21  ;;  %v4575_v54 = vld [vmem:[%s5952_s0 + $0x3c4] ss:$12 sps:$4 sm:$0xff]  }
 0x172   :  { %5971 = vst [vmem:[#allocation18_spill] sm:$0xff] %v5327_v29  ;;  %1838 = vmatprep.mubr.bf16.mxu0 %v4570_v57  ;;  %4264 = vmatprep.mubr.bf16.mxu1 %v4571_v58 }
 0x173   :  { %v1642_v30 = vpop.f32.mrf.mxu0  ;;  %v2026_v42 = vpop.f32.mrf.mxu1 }
 0x174   :  { %v4576_v42 = vld [vmem:[%s5952_s0 + $0x488] ss:$12 sps:$4 sm:$0xff]  }
 0x175   :  { %v5329_v46 = vpop.f32.mrf.mxu0  ;;  %v5331_v26 = vpop.f32.mrf.mxu1 }
 0x176   :  { %5972 = vst [vmem:[#allocation19_spill] sm:$0xff] %v5331_v26 }
 0x177   :  { %v1645_v21 = vpop.f32.mrf.mxu0  ;;  %v2029_v57 = vpop.f32.mrf.mxu1 }
 0x178   :  { %v4577_v21 = vld [vmem:[%s5952_s0 + $0x4a0] ss:$12 sps:$4 sm:$0xff]  }
 0x179   :  { %v5345_v58 = vpop.f32.mrf.mxu0  ;;  %1839 = vmatmul.mubr.bf16.gmra.mxu0 %v4568_v44  ;;  %v5347_v6 = vpop.f32.mrf.mxu1  ;;  %4265 = vmatmul.mubr.bf16.gmra.mxu1 %v4572_v5  ;;  %v4580_v44 = vld [vmem:[%s5952_s0 + $0x3dc] ss:$12 sps:$4 sm:$0xff]  }
 0x17a   :  { %5973 = vst [vmem:[#allocation20_spill] sm:$0xff] %v5347_v6  ;;  %1846 = vmatprep.mubr.bf16.mxu0 %v4575_v54  ;;  %4268 = vmatprep.mubr.bf16.mxu1 %v4576_v42 }
 0x17b   :  { %v1650_v30 = vpop.f32.mrf.mxu0  ;;  %v2034_v26 = vpop.f32.mrf.mxu1 }
 0x17c   :  { %v4581_v26 = vld [vmem:[%s5952_s0 + $0x4b8] ss:$12 sps:$4 sm:$0xff]   ;;  %v5370_v30 = vld [vmem:[%s5953_s2] ss:$0 sm:$0xff] }
 0x17d   :  { %v5349_v29 = vpop.f32.mrf.mxu0  ;;  %v5351_v34 = vpop.f32.mrf.mxu1  ;;  %v1537_v62 = vadd.f32 %v5370_v30, %v5065_v11  ;;  %v1532_v11 = vadd.f32 %v5370_v30, %v5049_v3 }
 0x17e   :  { %5974 = vst [vmem:[#allocation21_spill] sm:$0xff] %v5351_v34 }
 0x17f   :  { %v1653_v5 = vpop.f32.mrf.mxu0  ;;  %v2037_v54 = vpop.f32.mrf.mxu1 }
 0x180   :  { %v1540_v5 = vadd.f32 %v5370_v30, %v5069_v15  ;;  %v4585_v15 = vld [vmem:[%s5952_s0 + $0x3f4] ss:$12 sps:$4 sm:$0xff]  }
 0x181   :  { %v5365_v42 = vpop.f32.mrf.mxu0  ;;  %1847 = vmatmul.mubr.bf16.gmra.mxu0 %v4573_v10  ;;  %v4174_v57 = vpop.f32.mrf.mxu1  ;;  %4269 = vmatmul.mubr.bf16.gmra.mxu1 %v4577_v21  ;;  %v4578_v21 = vld [vmem:[%s5952_s0 + $0x3d8] ss:$12 sps:$4 sm:$0xff]  }
 0x182   :  { %1854 = vmatprep.mubr.bf16.mxu0 %v4580_v44  ;;  %4272 = vmatprep.mubr.bf16.mxu1 %v4581_v26  ;;  %v4582_v44 = vld [vmem:[%s5952_s0 + $0x4d0] ss:$12 sps:$4 sm:$0xff]   ;;  %v2082_v26 = vadd.f32 %v4174_v57, %v1537_v62 }
 0x183   :  { %v1658_v34 = vpop.f32.mrf.mxu0  ;;  %v2073_v6 = vpop.f32.mrf.mxu1 }
 0x184   :  { %v1529_v34 = vadd.f32 %v5370_v30, %v5045_v63 }
 0x185   :  { %v5376_v54 = vpop.f32.mrf.mxu0  ;;  %v4175_v10 = vpop.f32.mrf.mxu1 }
 0x186   :  { %v2085_v56 = vadd.f32 %v4175_v10, %v1540_v5  ;;  %v2074_v20 = vadd.f32 %v2073_v6, %v1529_v34  ;;  %v4590_v5 = vld [vmem:[%s5952_s0 + $0x40c] ss:$12 sps:$4 sm:$0xff]  }
 0x187   :  { %v1661_v18 = vpop.f32.mrf.mxu0  ;;  %v2076_v8 = vpop.f32.mrf.mxu1  ;;  %v4591_v10 = vld [vmem:[%s5952_s0 + $0x518] ss:$12 sps:$4 sm:$0xff]  }
 0x188   :  { %v3709_v14 = vpack.c.bf16 %v2085_v56, %v2082_v26  ;;  %v2077_v38 = vadd.f32 %v2076_v8, %v1532_v11  ;;  %v1553_v18 = vadd.f32 %v5370_v30, %v5105_v35  ;;  %v1556_v56 = vadd.f32 %v5370_v30, %v5109_v39 }
 0x189   :  { %v5394_v32 = vpop.f32.mrf.mxu0  ;;  %1855 = vmatmul.mubr.bf16.gmra.mxu0 %v4578_v21  ;;  %v4178_v63 = vpop.f32.mrf.mxu1  ;;  %4273 = vmatmul.mubr.bf16.gmra.mxu1 %v4582_v44  ;;  %v1545_v35 = vadd.f32 %v5370_v30, %v5085_v23  ;;  %v1548_v39 = vadd.f32 %v5370_v30, %v5089_v27 }
 0x18a   :  { %4021 = vst [vmem:[%s5954_s3 + $0x8] sm:$0xff] %v3709_v14   ;;  %v3704_v3 = vpack.c.bf16 %v2077_v38, %v2074_v20  ;;  %1862 = vmatprep.mubr.bf16.mxu0 %v4585_v15  ;;  %4276 = vmatprep.mubr.bf16.mxu1 %v4586_v50  ;;  %v4583_v14 = vld [vmem:[%s5952_s0 + $0x3f0] ss:$12 sps:$4 sm:$0xff]   ;;  %v4587_v20 = vld [vmem:[%s5952_s0 + $0x500] ss:$12 sps:$4 sm:$0xff]   ;;  %v2098_v38 = vadd.f32 %v4178_v63, %v1553_v18 }
 0x18b   :  { %v1666_v62 = vpop.f32.mrf.mxu0  ;;  %v2089_v57 = vpop.f32.mrf.mxu1 }
 0x18c   :  { %3705 = vst [vmem:[%s5954_s3] sm:$0xff] %v3704_v3   ;;  %v2090_v34 = vadd.f32 %v2089_v57, %v1545_v35  ;;  %v1569_v62 = vadd.f32 %v5370_v30, %v5145_v59  ;;  %v1572_v57 = vadd.f32 %v5370_v30, %v5149_v1  ;;  %v1561_v59 = vadd.f32 %v5370_v30, %v5125_v47 }
 0x18d   :  { %v5406_v8 = vpop.f32.mrf.mxu0  ;;  %v4179_v6 = vpop.f32.mrf.mxu1  ;;  %v1564_v1 = vadd.f32 %v5370_v30, %v5129_v51 }
 0x18e   :  { %v2101_v50 = vadd.f32 %v4179_v6, %v1556_v56  ;;  %v4588_v6 = vld [vmem:[%s5952_s0 + $0x408] ss:$12 sps:$4 sm:$0xff]  }
 0x18f   :  { %v1669_v21 = vpop.f32.mrf.mxu0  ;;  %v2092_v44 = vpop.f32.mrf.mxu1 }
 0x190   :  { %v3719_v11 = vpack.c.bf16 %v2101_v50, %v2098_v38  ;;  %v2093_v26 = vadd.f32 %v2092_v44, %v1548_v39  ;;  %v4595_v39 = vld [vmem:[%s5952_s0 + $0x424] ss:$12 sps:$4 sm:$0xff]   ;;  %v4596_v38 = vld [vmem:[%s5952_s0 + $0x548] ss:$12 sps:$4 sm:$0xff]  }
 0x191   :  { %v5424_v15 = vpop.f32.mrf.mxu0  ;;  %1863 = vmatmul.mubr.bf16.gmra.mxu0 %v4583_v14  ;;  %v4182_v23 = vpop.f32.mrf.mxu1  ;;  %4277 = vmatmul.mubr.bf16.gmra.mxu1 %v4587_v20  ;;  %v4592_v14 = vld [vmem:[%s5952_s0 + $0x530] ss:$12 sps:$4 sm:$0xff]  }
 0x192   :  { %4023 = vst [vmem:[%s5954_s3 + $0x18] sm:$0xff] %v3719_v11   ;;  %v3714_v27 = vpack.c.bf16 %v2093_v26, %v2090_v34  ;;  %1870 = vmatprep.mubr.bf16.mxu0 %v4590_v5  ;;  %4280 = vmatprep.mubr.bf16.mxu1 %v4591_v10  ;;  %v2114_v20 = vadd.f32 %v4182_v23, %v1569_v62  ;;  %v4593_v62 = vld [vmem:[%s5952_s0 + $0x420] ss:$12 sps:$4 sm:$0xff]  }
 0x193   :  { %v1674_v63 = vpop.f32.mrf.mxu0  ;;  %v2105_v3 = vpop.f32.mrf.mxu1  ;;  %v1585_v23 = vadd.f32 %v5370_v30, %v5185_v31  ;;  %v1577_v31 = vadd.f32 %v5370_v30, %v5165_v13 }
 0x194   :  { %4022 = vst [vmem:[%s5954_s3 + $0x10] sm:$0xff] %v3714_v27   ;;  %v2106_v10 = vadd.f32 %v2105_v3, %v1561_v59  ;;  %v1588_v27 = vadd.f32 %v5370_v30, %v5189_v37  ;;  %v1580_v37 = vadd.f32 %v5370_v30, %v5169_v19  ;;  %v4601_v59 = vld [vmem:[%s5952_s0 + $0x578] ss:$12 sps:$4 sm:$0xff]  }
 0x195   :  { %v5436_v18 = vpop.f32.mrf.mxu0  ;;  %v4183_v56 = vpop.f32.mrf.mxu1 }
 0x196   :  { %v2117_v35 = vadd.f32 %v4183_v56, %v1572_v57  ;;  %v4597_v57 = vld [vmem:[%s5952_s0 + $0x560] ss:$12 sps:$4 sm:$0xff]  }
 0x197   :  { %v1677_v50 = vpop.f32.mrf.mxu0  ;;  %v2108_v5 = vpop.f32.mrf.mxu1 }
 0x198   :  { %v3729_v21 = vpack.c.bf16 %v2117_v35, %v2114_v20  ;;  %v2109_v44 = vadd.f32 %v2108_v5, %v1564_v1 }
 0x199   :  { %v5454_v34 = vpop.f32.mrf.mxu0  ;;  %1871 = vmatmul.mubr.bf16.gmra.mxu0 %v4588_v6  ;;  %v4186_v47 = vpop.f32.mrf.mxu1  ;;  %4281 = vmatmul.mubr.bf16.gmra.mxu1 %v4592_v14  ;;  %v4600_v14 = vld [vmem:[%s5952_s0 + $0x43c] ss:$12 sps:$4 sm:$0xff]  }
 0x19a   :  { %4025 = vst [vmem:[%s5954_s3 + $0x28] sm:$0xff] %v3729_v21   ;;  %v3724_v51 = vpack.c.bf16 %v2109_v44, %v2106_v10  ;;  %1878 = vmatprep.mubr.bf16.mxu0 %v4595_v39  ;;  %4284 = vmatprep.mubr.bf16.mxu1 %v4596_v38  ;;  %v2130_v56 = vadd.f32 %v4186_v47, %v1585_v23 }
 0x19b   :  { %v1682_v11 = vpop.f32.mrf.mxu0  ;;  %v2121_v26 = vpop.f32.mrf.mxu1  ;;  %v1601_v21 = vadd.f32 %v5370_v30, %v5225_v7  ;;  %v1604_v44 = vadd.f32 %v5370_v30, %v5229_v17  ;;  %v1593_v7 = vadd.f32 %v5370_v30, %v5205_v49  ;;  %v1596_v17 = vadd.f32 %v5370_v30, %v5209_v55 }
 0x19c   :  { %4024 = vst [vmem:[%s5954_s3 + $0x20] sm:$0xff] %v3724_v51   ;;  %v2122_v35 = vadd.f32 %v2121_v26, %v1577_v31  ;;  %v4598_v11 = vld [vmem:[%s5952_s0 + $0x438] ss:$12 sps:$4 sm:$0xff]   ;;  %v4602_v26 = vld [vmem:[%s5952_s0 + $0x590] ss:$12 sps:$4 sm:$0xff]  }
 0x19d   :  { %v5466_v63 = vpop.f32.mrf.mxu0  ;;  %v4187_v3 = vpop.f32.mrf.mxu1 }
 0x19e   :  { %v2133_v6 = vadd.f32 %v4187_v3, %v1588_v27  ;;  %v4605_v3 = vld [vmem:[%s5952_s0 + $0x454] ss:$12 sps:$4 sm:$0xff]  }
 0x19f   :  { %v1685_v1 = vpop.f32.mrf.mxu0  ;;  %v2124_v20 = vpop.f32.mrf.mxu1 }
 0x1a0   :  { %v3739_v39 = vpack.c.bf16 %v2133_v6, %v2130_v56  ;;  %v2125_v38 = vadd.f32 %v2124_v20, %v1580_v37  ;;  %v1617_v20 = vadd.f32 %v5370_v30, %v5265_v61  ;;  %v1609_v61 = vadd.f32 %v5370_v30, %v5245_v33 }
 0x1a1   :  { %v5484_v50 = vpop.f32.mrf.mxu0  ;;  %1879 = vmatmul.mubr.bf16.gmra.mxu0 %v4593_v62  ;;  %v4190_v13 = vpop.f32.mrf.mxu1  ;;  %4285 = vmatmul.mubr.bf16.gmra.mxu1 %v4597_v57  ;;  %v4606_v62 = vld [vmem:[%s5952_s0 + $0x5a8] ss:$12 sps:$4 sm:$0xff]  }
 0x1a2   :  { %4027 = vst [vmem:[%s5954_s3 + $0x38] sm:$0xff] %v3739_v39   ;;  %v3734_v19 = vpack.c.bf16 %v2125_v38, %v2122_v35  ;;  %1886 = vmatprep.mubr.bf16.mxu0 %v4600_v14  ;;  %4288 = vmatprep.mubr.bf16.mxu1 %v4601_v59  ;;  %v2146_v23 = vadd.f32 %v4190_v13, %v1601_v21  ;;  %v4603_v13 = vld [vmem:[%s5952_s0 + $0x450] ss:$12 sps:$4 sm:$0xff]   ;;  %v4610_v21 = vld [vmem:[%s5952_s0 + $0x46c] ss:$12 sps:$4 sm:$0xff]  }
 0x1a3   :  { %v1690_v5 = vpop.f32.mrf.mxu0  ;;  %v2137_v10 = vpop.f32.mrf.mxu1  ;;  %v1620_v35 = vadd.f32 %v5370_v30, %v5269_v9  ;;  %v1612_v9 = vadd.f32 %v5370_v30, %v5249_v43 }
 0x1a4   :  { %4026 = vst [vmem:[%s5954_s3 + $0x30] sm:$0xff] %v3734_v19   ;;  %v2138_v37 = vadd.f32 %v2137_v10, %v1593_v7  ;;  %v4607_v19 = vld [vmem:[%s5952_s0 + $0x5c0] ss:$12 sps:$4 sm:$0xff]  }
 0x1a5   :  { %v5496_v47 = vpop.f32.mrf.mxu0  ;;  %v4191_v51 = vpop.f32.mrf.mxu1 }
 0x1a6   :  { %v2149_v27 = vadd.f32 %v4191_v51, %v1604_v44  ;;  %v4611_v44 = vld [vmem:[%s5952_s0 + $0x5d8] ss:$12 sps:$4 sm:$0xff]  }
 0x1a7   :  { %v1693_v57 = vpop.f32.mrf.mxu0  ;;  %v2140_v31 = vpop.f32.mrf.mxu1 }
 0x1a8   :  { %v3749_v56 = vpack.c.bf16 %v2149_v27, %v2146_v23  ;;  %v2141_v6 = vadd.f32 %v2140_v31, %v1596_v17  ;;  %v1636_v57 = vadd.f32 %v5370_v30, %v5309_v45  ;;  %v1628_v45 = vadd.f32 %v5370_v30, %v5289_v53 }
 0x1a9   :  { %v5514_v14 = vpop.f32.mrf.mxu0  ;;  %1887 = vmatmul.mubr.bf16.gmra.mxu0 %v4598_v11  ;;  %v4194_v49 = vpop.f32.mrf.mxu1  ;;  %4289 = vmatmul.mubr.bf16.gmra.mxu1 %v4602_v26  ;;  %v1649_v53 = vadd.f32 %v5370_v30, %v5345_v58 }
 0x1aa   :  { %4029 = vst [vmem:[%s5954_s3 + $0x48] sm:$0xff] %v3749_v56   ;;  %v3744_v55 = vpack.c.bf16 %v2141_v6, %v2138_v37  ;;  %1894 = vmatprep.mubr.bf16.mxu0 %v4605_v3  ;;  %4292 = vmatprep.mubr.bf16.mxu1 %v4606_v62  ;;  %v2162_v5 = vadd.f32 %v4194_v49, %v1617_v20  ;;  %v4608_v56 = vld [vmem:[%s5952_s0 + $0x468] ss:$12 sps:$4 sm:$0xff]   ;;  %v4612_v6 = vld [vmem:[%s5952_s0 + $0x5f0] ss:$12 sps:$4 sm:$0xff]  }
 0x1ab   :  { %v1698_v59 = vpop.f32.mrf.mxu0  ;;  %v2153_v1 = vpop.f32.mrf.mxu1  ;;  %v1633_v62 = vadd.f32 %v5370_v30, %v5305_v25  ;;  %v1625_v25 = vadd.f32 %v5370_v30, %v5285_v41 }
 0x1ac   :  { %4028 = vst [vmem:[%s5954_s3 + $0x40] sm:$0xff] %v3744_v55   ;;  %v2154_v26 = vadd.f32 %v2153_v1, %v1609_v61 }
 0x1ad   :  { %v5526_v39 = vpop.f32.mrf.mxu0  ;;  %v4195_v38 = vpop.f32.mrf.mxu1 }
 0x1ae   :  { %v2165_v10 = vadd.f32 %v4195_v38, %v1620_v35 }
 0x1af   :  { %v1701_v51 = vpop.f32.mrf.mxu0  ;;  %v2156_v11 = vpop.f32.mrf.mxu1 }
 0x1b0   :  { %v3759_v7 = vpack.c.bf16 %v2165_v10, %v2162_v5  ;;  %v2157_v17 = vadd.f32 %v2156_v11, %v1612_v9  ;;  %v1652_v5 = vadd.f32 %v5370_v30, %v5349_v29  ;;  %v1644_v51 = vadd.f32 %v5370_v30, %v5329_v46 }
 0x1b1   :  { %v5544_v23 = vpop.f32.mrf.mxu0  ;;  %1895 = vmatmul.mubr.bf16.gmra.mxu0 %v4603_v13  ;;  %v4198_v33 = vpop.f32.mrf.mxu1  ;;  %4293 = vmatmul.mubr.bf16.gmra.mxu1 %v4607_v19  ;;  %v1665_v46 = vadd.f32 %v5370_v30, %v5394_v32 }
 0x1b2   :  { %4031 = vst [vmem:[%s5954_s3 + $0x58] sm:$0xff] %v3759_v7   ;;  %v3754_v43 = vpack.c.bf16 %v2157_v17, %v2154_v26  ;;  %1902 = vmatprep.mubr.bf16.mxu0 %v4610_v21  ;;  %4296 = vmatprep.mubr.bf16.mxu1 %v4611_v44  ;;  %v2178_v49 = vadd.f32 %v4198_v33, %v1633_v62 }
 0x1b3   :  { %v1706_v27 = vpop.f32.mrf.mxu0  ;;  %v2169_v3 = vpop.f32.mrf.mxu1  ;;  %v1641_v44 = vadd.f32 %v5370_v30, %v5325_v22 }
 0x1b4   :  { %4030 = vst [vmem:[%s5954_s3 + $0x50] sm:$0xff] %v3754_v43   ;;  %v2170_v20 = vadd.f32 %v2169_v3, %v1625_v25  ;;  %v1660_v25 = vadd.f32 %v5370_v30, %v5376_v54  ;;  %v1681_v54 = vadd.f32 %v5370_v30, %v5454_v34 }
 0x1b5   :  { %v5556_v31 = vpop.f32.mrf.mxu0  ;;  %v4199_v37 = vpop.f32.mrf.mxu1 }
 0x1b6   :  { %v2181_v55 = vadd.f32 %v4199_v37, %v1636_v57  ;;  %v1668_v57 = vadd.f32 %v5370_v30, %v5406_v8 }
 0x1b7   :  { %v1709_v59 = vpop.f32.mrf.mxu0  ;;  %v2172_v1 = vpop.f32.mrf.mxu1 }
 0x1b8   :  { %v3769_v35 = vpack.c.bf16 %v2181_v55, %v2178_v49  ;;  %v2173_v38 = vadd.f32 %v2172_v1, %v1628_v45 }
 0x1b9   :  { %v5568_v13 = vpop.f32.mrf.mxu0  ;;  %1903 = vmatmul.mubr.bf16.gmra.mxu0 %v4608_v56  ;;  %v4202_v19 = vpop.f32.mrf.mxu1  ;;  %4297 = vmatmul.mubr.bf16.gmra.mxu1 %v4612_v6  ;;  %v1657_v6 = vadd.f32 %v5370_v30, %v5365_v42 }
 0x1ba   :  { %4033 = vst [vmem:[%s5954_s3 + $0x68] sm:$0xff] %v3769_v35   ;;  %v3764_v41 = vpack.c.bf16 %v2173_v38, %v2170_v20  ;;  %v2194_v11 = vadd.f32 %v4202_v19, %v1649_v53  ;;  %v1673_v53 = vadd.f32 %v5370_v30, %v5424_v15 }
 0x1bb   :  { %v1714_v61 = vpop.f32.mrf.mxu0  ;;  %v2185_v9 = vpop.f32.mrf.mxu1 }
 0x1bc   :  { %4032 = vst [vmem:[%s5954_s3 + $0x60] sm:$0xff] %v3764_v41   ;;  %v2186_v17 = vadd.f32 %v2185_v9, %v1641_v44  ;;  %v1684_v41 = vadd.f32 %v5370_v30, %v5466_v63 }
 0x1bd   :  { %v5580_v10 = vpop.f32.mrf.mxu0  ;;  %v4203_v21 = vpop.f32.mrf.mxu1 }
 0x1be   :  { %v2197_v26 = vadd.f32 %v4203_v21, %v1652_v5  ;;  %v1676_v5 = vadd.f32 %v5370_v30, %v5436_v18  ;;  %v1697_v18 = vadd.f32 %v5370_v30, %v5514_v14 }
 0x1bf   :  { %v1717_v7 = vpop.f32.mrf.mxu0  ;;  %v2188_v58 = vpop.f32.mrf.mxu1 }
 0x1c0   :  { %v3779_v33 = vpack.c.bf16 %v2197_v26, %v2194_v11  ;;  %v2189_v29 = vadd.f32 %v2188_v58, %v1644_v51 }
 0x1c1   :  { %v5586_v43 = vpop.f32.mrf.mxu0  ;;  %v4206_v27 = vpop.f32.mrf.mxu1 }
 0x1c2   :  { %4035 = vst [vmem:[%s5954_s3 + $0x78] sm:$0xff] %v3779_v33   ;;  %v3774_v3 = vpack.c.bf16 %v2189_v29, %v2186_v17  ;;  %v2210_v45 = vadd.f32 %v4206_v27, %v1665_v46  ;;  %v1700_v29 = vadd.f32 %v5370_v30, %v5526_v39 }
 0x1c3   :  { %v1722_v62 = vpop.f32.mrf.mxu0  ;;  %v2201_v22 = vpop.f32.mrf.mxu1 }
 0x1c4   :  { %4034 = vst [vmem:[%s5954_s3 + $0x70] sm:$0xff] %v3774_v3   ;;  %v2202_v59 = vadd.f32 %v2201_v22, %v1657_v6  ;;  %v1689_v62 = vadd.f32 %v5370_v30, %v5484_v50  ;;  %v1692_v22 = vadd.f32 %v5370_v30, %v5496_v47  ;;  %v1713_v50 = vadd.f32 %v5370_v30, %v5568_v13 }
 0x1c5   :  { %v5598_v37 = vpop.f32.mrf.mxu0  ;;  %v4207_v56 = vpop.f32.mrf.mxu1  ;;  %v1716_v47 = vadd.f32 %v5370_v30, %v5580_v10 }
 0x1c6   :  { %v2213_v49 = vadd.f32 %v4207_v56, %v1668_v57 }
 0x1c7   :  { %v1725_v55 = vpop.f32.mrf.mxu0  ;;  %v2204_v32 = vpop.f32.mrf.mxu1 }
 0x1c8   :  { %v3789_v1 = vpack.c.bf16 %v2213_v49, %v2210_v45  ;;  %v2205_v8 = vadd.f32 %v2204_v32, %v1660_v25 }
 0x1c9   :  { %v5604_v20 = vpop.f32.mrf.mxu0  ;;  %v4210_v35 = vpop.f32.mrf.mxu1 }
 0x1ca   :  { %4037 = vst [vmem:[%s5954_s3 + $0x88] sm:$0xff] %v3789_v1   ;;  %v3784_v38 = vpack.c.bf16 %v2205_v8, %v2202_v59  ;;  %v2226_v21 = vadd.f32 %v4210_v35, %v1681_v54  ;;  %v1705_v35 = vadd.f32 %v5370_v30, %v5544_v23  ;;  %v1729_v23 = vadd.f32 %v5370_v30, %v5604_v20 }
 0x1cb   :  { %v1730_v19 = vpop.f32.mrf.mxu0  ;;  %v2217_v42 = vpop.f32.mrf.mxu1 }
 0x1cc   :  { %4036 = vst [vmem:[%s5954_s3 + $0x80] sm:$0xff] %v3784_v38   ;;  %v2218_v34 = vadd.f32 %v2217_v42, %v1673_v53  ;;  %v1708_v38 = vadd.f32 %v5370_v30, %v5556_v31 }
 0x1cd   :  { %v1731_v61 = vpop.f32.mrf.mxu0  ;;  %v4211_v9 = vpop.f32.mrf.mxu1 }
 0x1ce   :  { %v2229_v44 = vadd.f32 %v4211_v9, %v1684_v41  ;;  %v1732_v31 = vadd.f32 %v5370_v30, %v1731_v61 }
 0x1cf   :  { %v1733_v51 = vpop.f32.mrf.mxu0  ;;  %v2220_v11 = vpop.f32.mrf.mxu1 }
 0x1d0   :  { %v3799_v26 = vpack.c.bf16 %v2229_v44, %v2226_v21  ;;  %v2221_v7 = vadd.f32 %v2220_v11, %v1676_v5 }
 0x1d1   :  { %v5620_v63 = vpop.f32.mrf.mxu0  ;;  %v4214_v58 = vpop.f32.mrf.mxu1 }
 0x1d2   :  { %4039 = vst [vmem:[%s5954_s3 + $0x98] sm:$0xff] %v3799_v26   ;;  %v3794_v17 = vpack.c.bf16 %v2221_v7, %v2218_v34  ;;  %v2242_v46 = vadd.f32 %v4214_v58, %v1697_v18  ;;  %v1721_v26 = vadd.f32 %v5370_v30, %v5586_v43  ;;  %v1724_v7 = vadd.f32 %v5370_v30, %v5598_v37 }
 0x1d3   :  { %v1738_v33 = vpop.f32.mrf.mxu0  ;;  %v2233_v15 = vpop.f32.mrf.mxu1 }
 0x1d4   :  { %4038 = vst [vmem:[%s5954_s3 + $0x90] sm:$0xff] %v3794_v17   ;;  %v2234_v6 = vadd.f32 %v2233_v15, %v1689_v62 }
 0x1d5   :  { %v5632_v27 = vpop.f32.mrf.mxu0  ;;  %v4215_v3 = vpop.f32.mrf.mxu1 }
 0x1d6   :  { %v2245_v57 = vadd.f32 %v4215_v3, %v1700_v29 }
 0x1d7   :  { %v1741_v56 = vpop.f32.mrf.mxu0  ;;  %v2236_v14 = vpop.f32.mrf.mxu1 }
 0x1d8   :  { %v3809_v25 = vpack.c.bf16 %v2245_v57, %v2242_v46  ;;  %v2237_v39 = vadd.f32 %v2236_v14, %v1692_v22  ;;  %v1737_v14 = vadd.f32 %v5370_v30, %v5620_v63 }
 0x1d9   :  { %v1744_v45 = vpop.f32.mrf.mxu0  ;;  %v4218_v49 = vpop.f32.mrf.mxu1 }
 0x1da   :  { %4041 = vst [vmem:[%s5954_s3 + $0xa8] sm:$0xff] %v3809_v25   ;;  %v3804_v55 = vpack.c.bf16 %v2237_v39, %v2234_v6  ;;  %v2258_v19 = vadd.f32 %v4218_v49, %v1713_v50  ;;  %v1745_v43 = vadd.f32 %v5370_v30, %v1744_v45  ;;  %v1740_v6 = vadd.f32 %v5370_v30, %v5632_v27 }
 0x1db   :  { %v1746_v32 = vpop.f32.mrf.mxu0  ;;  %v2249_v59 = vpop.f32.mrf.mxu1 }
 0x1dc   :  { %4040 = vst [vmem:[%s5954_s3 + $0xa0] sm:$0xff] %v3804_v55   ;;  %v2250_v13 = vadd.f32 %v2249_v59, %v1705_v35 }
 0x1dd   :  { %v1747_v1 = vpop.f32.mrf.mxu0  ;;  %v4219_v8 = vpop.f32.mrf.mxu1 }
 0x1de   :  { %v2261_v42 = vadd.f32 %v4219_v8, %v1716_v47  ;;  %v1748_v37 = vadd.f32 %v5370_v30, %v1747_v1 }
 0x1df   :  { %v1749_v54 = vpop.f32.mrf.mxu0  ;;  %v2252_v41 = vpop.f32.mrf.mxu1 }
 0x1e0   :  { %v3819_v9 = vpack.c.bf16 %v2261_v42, %v2258_v19  ;;  %v2253_v53 = vadd.f32 %v2252_v41, %v1708_v38 }
 0x1e1   :  { %v1752_v10 = vpop.f32.mrf.mxu0  ;;  %v4222_v5 = vpop.f32.mrf.mxu1 }
 0x1e2   :  { %4043 = vst [vmem:[%s5954_s3 + $0xb8] sm:$0xff] %v3819_v9   ;;  %v3814_v21 = vpack.c.bf16 %v2253_v53, %v2250_v13  ;;  %v2274_v58 = vadd.f32 %v4222_v5, %v1729_v23  ;;  %v1753_v42 = vadd.f32 %v5370_v30, %v1752_v10 }
 0x1e3   :  { %v1754_v44 = vpop.f32.mrf.mxu0  ;;  %v2265_v51 = vpop.f32.mrf.mxu1 }
 0x1e4   :  { %4042 = vst [vmem:[%s5954_s3 + $0xb0] sm:$0xff] %v3814_v21   ;;  %v2266_v18 = vadd.f32 %v2265_v51, %v1721_v26 }
 0x1e5   :  { %v1755_v11 = vpop.f32.mrf.mxu0  ;;  %v4223_v34 = vpop.f32.mrf.mxu1 }
 0x1e6   :  { %v2277_v17 = vadd.f32 %v4223_v34, %v1732_v31  ;;  %v1756_v54 = vadd.f32 %v5370_v30, %v1755_v11 }
 0x1e7   :  { %v1757_v33 = vpop.f32.mrf.mxu0  ;;  %v2268_v15 = vpop.f32.mrf.mxu1 }
 0x1e8   :  { %v3829_v20 = vpack.c.bf16 %v2277_v17, %v2274_v58  ;;  %v2269_v29 = vadd.f32 %v2268_v15, %v1724_v7 }
 0x1e9   :  { %v1760_v61 = vpop.f32.mrf.mxu0  ;;  %v4226_v3 = vpop.f32.mrf.mxu1 }
 0x1ea   :  { %4045 = vst [vmem:[%s5954_s3 + $0xc8] sm:$0xff] %v3829_v20   ;;  %v3824_v62 = vpack.c.bf16 %v2269_v29, %v2266_v18  ;;  %v2290_v25 = vadd.f32 %v4226_v3, %v1745_v43  ;;  %v1761_v63 = vadd.f32 %v5370_v30, %v1760_v61 }
 0x1eb   :  { %v1762_v22 = vpop.f32.mrf.mxu0  ;;  %v2281_v46 = vpop.f32.mrf.mxu1 }
 0x1ec   :  { %4044 = vst [vmem:[%s5954_s3 + $0xc0] sm:$0xff] %v3824_v62   ;;  %v2282_v32 = vadd.f32 %v2281_v46, %v1737_v14 }
 0x1ed   :  { %v1763_v57 = vpop.f32.mrf.mxu0  ;;  %v4227_v56 = vpop.f32.mrf.mxu1 }
 0x1ee   :  { %v2293_v39 = vadd.f32 %v4227_v56, %v1748_v37  ;;  %v1764_v27 = vadd.f32 %v5370_v30, %v1763_v57 }
 0x1ef   :  { %v1765_v49 = vpop.f32.mrf.mxu0  ;;  %v2284_v55 = vpop.f32.mrf.mxu1 }
 0x1f0   :  { %v3839_v45 = vpack.c.bf16 %v2293_v39, %v2290_v25  ;;  %v2285_v59 = vadd.f32 %v2284_v55, %v1740_v6 }
 0x1f1   :  { %v1768_v50 = vpop.f32.mrf.mxu0  ;;  %v4230_v47 = vpop.f32.mrf.mxu1 }
 0x1f2   :  { %4047 = vst [vmem:[%s5954_s3 + $0xd8] sm:$0xff] %v3839_v45   ;;  %v3834_v1 = vpack.c.bf16 %v2285_v59, %v2282_v32  ;;  %v2306_v41 = vadd.f32 %v4230_v47, %v1761_v63  ;;  %v1769_v58 = vadd.f32 %v5370_v30, %v1768_v50 }
 0x1f3   :  { %v1770_v8 = vpop.f32.mrf.mxu0  ;;  %v2297_v35 = vpop.f32.mrf.mxu1 }
 0x1f4   :  { %4046 = vst [vmem:[%s5954_s3 + $0xd0] sm:$0xff] %v3834_v1   ;;  %v2298_v5 = vadd.f32 %v2297_v35, %v1753_v42 }
 0x1f5   :  { %v1771_v38 = vpop.f32.mrf.mxu0  ;;  %v4231_v19 = vpop.f32.mrf.mxu1 }
 0x1f6   :  { %v2309_v13 = vadd.f32 %v4231_v19, %v1764_v27  ;;  %v1772_v17 = vadd.f32 %v5370_v30, %v1771_v38 }
 0x1f7   :  { %v1773_v9 = vpop.f32.mrf.mxu0  ;;  %v2300_v53 = vpop.f32.mrf.mxu1 }
 0x1f8   :  { %v3849_v21 = vpack.c.bf16 %v2309_v13, %v2306_v41  ;;  %v2301_v44 = vadd.f32 %v2300_v53, %v1756_v54 }
 0x1f9   :  { %v1776_v51 = vpop.f32.mrf.mxu0  ;;  %v4234_v23 = vpop.f32.mrf.mxu1 }
 0x1fa   :  { %4049 = vst [vmem:[%s5954_s3 + $0xe8] sm:$0xff] %v3849_v21   ;;  %v3844_v31 = vpack.c.bf16 %v2301_v44, %v2298_v5  ;;  %v1777_v10 = vadd.f32 %v5370_v30, %v1776_v51 }
 0x1fb   :  { %v1778_v34 = vpop.f32.mrf.mxu0  ;;  %v2313_v26 = vpop.f32.mrf.mxu1 }
 0x1fc   :  { %4048 = vst [vmem:[%s5954_s3 + $0xe0] sm:$0xff] %v3844_v31   ;;  %v2322_v20 = vadd.f32 %v4234_v23, %v1777_v10  ;;  %v2314_v29 = vadd.f32 %v2313_v26, %v1769_v58 }
 0x1fd   :  { %v1779_v11 = vpop.f32.mrf.mxu0  ;;  %v4235_v7 = vpop.f32.mrf.mxu1 }
 0x1fe   :  { %v1780_v33 = vadd.f32 %v5370_v30, %v1779_v11 }
 0x1ff   :  { %v1781_v15 = vpop.f32.mrf.mxu0  ;;  %v2316_v18 = vpop.f32.mrf.mxu1 }
 0x200   :  { %v2325_v61 = vadd.f32 %v4235_v7, %v1780_v33  ;;  %v2317_v3 = vadd.f32 %v2316_v18, %v1772_v17 }
 0x201   :  { %v1784_v62 = vpop.f32.mrf.mxu0  ;;  %v4238_v22 = vpop.f32.mrf.mxu1 }
 0x202   :  { %v3859_v46 = vpack.c.bf16 %v2325_v61, %v2322_v20  ;;  %v3854_v43 = vpack.c.bf16 %v2317_v3, %v2314_v29  ;;  %v1785_v56 = vadd.f32 %v5370_v30, %v1784_v62 }
 0x203   :  { %v1786_v37 = vpop.f32.mrf.mxu0  ;;  %v2329_v57 = vpop.f32.mrf.mxu1 }
 0x204   :  { %4051 = vst [vmem:[%s5954_s3 + $0xf8] sm:$0xff] %v3859_v46   ;;  %4050 = vst [vmem:[%s5954_s3 + $0xf0] sm:$0xff] %v3854_v43   ;;  %v2330_v55 = vadd.f32 %v2329_v57, %v1785_v56 }
 0x205   :  { %v1787_v14 = vpop.f32.mrf.mxu0  ;;  %v4239_v6 = vpop.f32.mrf.mxu1 }
 0x206   :  { %v1788_v25 = vadd.f32 %v5370_v30, %v1787_v14 }
 0x207   :  { %v1789_v39 = vpop.f32.mrf.mxu0  ;;  %v2332_v49 = vpop.f32.mrf.mxu1 }
 0x208   :  { %v2333_v32 = vadd.f32 %v2332_v49, %v1788_v25 }
 0x209   :  { %v1792_v45 = vpop.f32.mrf.mxu0  ;;  %v4242_v59 = vpop.f32.mrf.mxu1 }
 0x20a   :  { %v3864_v50 = vpack.c.bf16 %v2333_v32, %v2330_v55  ;;  %v1793_v8 = vadd.f32 %v5370_v30, %v1792_v45 }
 0x20b   :  { %v1794_v47 = vpop.f32.mrf.mxu0  ;;  %v2345_v1 = vpop.f32.mrf.mxu1 }
 0x20c   :  { %4052 = vst [vmem:[%s5954_s3 + $0x100] sm:$0xff] %v3864_v50   ;;  %v2338_v42 = vadd.f32 %v4238_v22, %v1793_v8 }
 0x20d   :  { %v1795_v35 = vpop.f32.mrf.mxu0  ;;  %v4243_v63 = vpop.f32.mrf.mxu1 }
 0x20e   :  { %v1796_v27 = vadd.f32 %v5370_v30, %v1795_v35 }
 0x20f   :  { %v1797_v38 = vpop.f32.mrf.mxu0  ;;  %v2348_v19 = vpop.f32.mrf.mxu1 }
 0x210   :  { %v2341_v54 = vadd.f32 %v4239_v6, %v1796_v27 }
 0x211   :  { %v1800_v41 = vpop.f32.mrf.mxu0  ;;  %v4246_v13 = vpop.f32.mrf.mxu1 }
 0x212   :  { %v3869_v9 = vpack.c.bf16 %v2341_v54, %v2338_v42  ;;  %v1801_v21 = vadd.f32 %v5370_v30, %v1800_v41 }
 0x213   :  { %v1802_v53 = vpop.f32.mrf.mxu0  ;;  %v2361_v5 = vpop.f32.mrf.mxu1 }
 0x214   :  { %4053 = vst [vmem:[%s5954_s3 + $0x108] sm:$0xff] %v3869_v9   ;;  %v2346_v26 = vadd.f32 %v2345_v1, %v1801_v21 }
 0x215   :  { %v1803_v44 = vpop.f32.mrf.mxu0  ;;  %v4247_v51 = vpop.f32.mrf.mxu1 }
 0x216   :  { %v1804_v23 = vadd.f32 %v5370_v30, %v1803_v44 }
 0x217   :  { %v1805_v31 = vpop.f32.mrf.mxu0  ;;  %v2364_v34 = vpop.f32.mrf.mxu1 }
 0x218   :  { %v2349_v10 = vadd.f32 %v2348_v19, %v1804_v23 }
 0x219   :  { %v1808_v11 = vpop.f32.mrf.mxu0  ;;  %v5715_v7 = vpop.f32.mrf.mxu1 }
 0x21a   :  { %v3874_v58 = vpack.c.bf16 %v2349_v10, %v2346_v26  ;;  %v1809_v15 = vadd.f32 %v5370_v30, %v1808_v11 }
 0x21b   :  { %v1810_v17 = vpop.f32.mrf.mxu0  ;;  %v2377_v33 = vpop.f32.mrf.mxu1 }
 0x21c   :  { %4054 = vst [vmem:[%s5954_s3 + $0x110] sm:$0xff] %v3874_v58   ;;  %v2354_v62 = vadd.f32 %v4242_v59, %v1809_v15 }
 0x21d   :  { %v1811_v18 = vpop.f32.mrf.mxu0  ;;  %v4251_v20 = vpop.f32.mrf.mxu1 }
 0x21e   :  { %v1812_v29 = vadd.f32 %v5370_v30, %v1811_v18 }
 0x21f   :  { %v1813_v61 = vpop.f32.mrf.mxu0  ;;  %v2380_v3 = vpop.f32.mrf.mxu1 }
 0x220   :  { %v2357_v22 = vadd.f32 %v4243_v63, %v1812_v29 }
 0x221   :  { %v1816_v46 = vpop.f32.mrf.mxu0  ;;  %v5722_v43 = vpop.f32.mrf.mxu1 }
 0x222   :  { %v3879_v37 = vpack.c.bf16 %v2357_v22, %v2354_v62  ;;  %v1817_v14 = vadd.f32 %v5370_v30, %v1816_v46 }
 0x223   :  { %v1818_v57 = vpop.f32.mrf.mxu0  ;;  %v5724_v56 = vpop.f32.mrf.mxu1 }
 0x224   :  { %4055 = vst [vmem:[%s5954_s3 + $0x118] sm:$0xff] %v3879_v37   ;;  %v2362_v32 = vadd.f32 %v2361_v5, %v1817_v14 }
 0x225   :  { %v1819_v6 = vpop.f32.mrf.mxu0  ;;  %v5730_v25 = vpop.f32.mrf.mxu1 }
 0x226   :  { %v1820_v39 = vadd.f32 %v5370_v30, %v1819_v6 }
 0x227   :  { %v1821_v49 = vpop.f32.mrf.mxu0  ;;  %v5733_v55 = vpop.f32.mrf.mxu1 }
 0x228   :  { %v2365_v45 = vadd.f32 %v2364_v34, %v1820_v39 }
 0x229   :  { %v1824_v59 = vpop.f32.mrf.mxu0  ;;  %v5735_v50 = vpop.f32.mrf.mxu1 }
 0x22a   :  { %v3884_v47 = vpack.c.bf16 %v2365_v45, %v2362_v32  ;;  %v1825_v35 = vadd.f32 %v5370_v30, %v1824_v59  ;;  %v1921_v59 = vadd.f32 %v5370_v30, %v5067_v12 }
 0x22b   :  { %v1826_v1 = vpop.f32.mrf.mxu0  ;;  %v5737_v8 = vpop.f32.mrf.mxu1 }
 0x22c   :  { %4056 = vst [vmem:[%s5954_s3 + $0x120] sm:$0xff] %v3884_v47   ;;  %v2370_v54 = vadd.f32 %v4246_v13, %v1825_v35  ;;  %v1924_v47 = vadd.f32 %v5370_v30, %v5071_v16  ;;  %v1916_v35 = vadd.f32 %v5370_v30, %v5051_v4 }
 0x22d   :  { %v1827_v63 = vpop.f32.mrf.mxu0  ;;  %v5743_v27 = vpop.f32.mrf.mxu1 }
 0x22e   :  { %v1828_v38 = vadd.f32 %v5370_v30, %v1827_v63 }
 0x22f   :  { %v1829_v19 = vpop.f32.mrf.mxu0  ;;  %v5746_v42 = vpop.f32.mrf.mxu1 }
 0x230   :  { %v2373_v41 = vadd.f32 %v4247_v51, %v1828_v38 }
 0x231   :  { %v1832_v9 = vpop.f32.mrf.mxu0  ;;  %v5748_v53 = vpop.f32.mrf.mxu1 }
 0x232   :  { %v3889_v5 = vpack.c.bf16 %v2373_v41, %v2370_v54  ;;  %v1833_v23 = vadd.f32 %v5370_v30, %v1832_v9 }
 0x233   :  { %v1834_v21 = vpop.f32.mrf.mxu0  ;;  %v5750_v44 = vpop.f32.mrf.mxu1 }
 0x234   :  { %4057 = vst [vmem:[%s5954_s3 + $0x128] sm:$0xff] %v3889_v5   ;;  %v2378_v10 = vadd.f32 %v2377_v33, %v1833_v23 }
 0x235   :  { %v1835_v31 = vpop.f32.mrf.mxu0  ;;  %v5756_v34 = vpop.f32.mrf.mxu1 }
 0x236   :  { %v1836_v26 = vadd.f32 %v5370_v30, %v1835_v31 }
 0x237   :  { %v1837_v13 = vpop.f32.mrf.mxu0  ;;  %v5759_v51 = vpop.f32.mrf.mxu1 }
 0x238   :  { %v2381_v11 = vadd.f32 %v2380_v3, %v1836_v26 }
 0x239   :  { %v1840_v58 = vpop.f32.mrf.mxu0  ;;  %v5761_v17 = vpop.f32.mrf.mxu1 }
 0x23a   :  { %v3894_v15 = vpack.c.bf16 %v2381_v11, %v2378_v10  ;;  %v1841_v61 = vadd.f32 %v5370_v30, %v1840_v58 }
 0x23b   :  { %v1842_v18 = vpop.f32.mrf.mxu0  ;;  %v5763_v29 = vpop.f32.mrf.mxu1 }
 0x23c   :  { %4058 = vst [vmem:[%s5954_s3 + $0x130] sm:$0xff] %v3894_v15   ;;  %v2386_v37 = vadd.f32 %v5715_v7, %v1841_v61  ;;  %v1913_v7 = vadd.f32 %v5370_v30, %v5047_v0 }
 0x23d   :  { %v1843_v62 = vpop.f32.mrf.mxu0  ;;  %v5769_v22 = vpop.f32.mrf.mxu1 }
 0x23e   :  { %v1844_v46 = vadd.f32 %v5370_v30, %v1843_v62 }
 0x23f   :  { %v1845_v33 = vpop.f32.mrf.mxu0  ;;  %v5772_v3 = vpop.f32.mrf.mxu1 }
 0x240   :  { %v2389_v57 = vadd.f32 %v4251_v20, %v1844_v46 }
 0x241   :  { %v1848_v14 = vpop.f32.mrf.mxu0  ;;  %v4270_v6 = vpop.f32.mrf.mxu1 }
 0x242   :  { %v3899_v39 = vpack.c.bf16 %v2389_v57, %v2386_v37  ;;  %v1849_v49 = vadd.f32 %v5370_v30, %v1848_v14  ;;  %v2466_v63 = vadd.f32 %v4270_v6, %v1921_v59 }
 0x243   :  { %v1850_v32 = vpop.f32.mrf.mxu0  ;;  %v2457_v45 = vpop.f32.mrf.mxu1 }
 0x244   :  { %4059 = vst [vmem:[%s5954_s3 + $0x138] sm:$0xff] %v3899_v39   ;;  %v2394_v12 = vadd.f32 %v5724_v56, %v1849_v49  ;;  %v2458_v41 = vadd.f32 %v2457_v45, %v1913_v7  ;;  %v5797_v56 = vld [vmem:[%s5953_s2] ss:$0 sm:$0xff] }
 0x245   :  { %v1851_v20 = vpop.f32.mrf.mxu0  ;;  %v4271_v1 = vpop.f32.mrf.mxu1  ;;  %v1940_v11 = vadd.f32 %v5797_v56, %v5111_v40  ;;  %v1932_v18 = vadd.f32 %v5797_v56, %v5091_v28 }
 0x246   :  { %v1852_v38 = vadd.f32 %v5370_v30, %v1851_v20  ;;  %v2469_v19 = vadd.f32 %v4271_v1, %v1924_v47  ;;  %v1945_v47 = vadd.f32 %v5797_v56, %v5127_v48  ;;  %v1948_v1 = vadd.f32 %v5797_v56, %v5131_v52 }
 0x247   :  { %v1853_v54 = vpop.f32.mrf.mxu0  ;;  %v2460_v16 = vpop.f32.mrf.mxu1 }
 0x248   :  { %v2397_v9 = vadd.f32 %v5733_v55, %v1852_v38  ;;  %v3949_v5 = vpack.c.bf16 %v2469_v19, %v2466_v63  ;;  %v2461_v21 = vadd.f32 %v2460_v16, %v1916_v35  ;;  %v1937_v55 = vadd.f32 %v5797_v56, %v5107_v36 }
 0x249   :  { %v1856_v23 = vpop.f32.mrf.mxu0  ;;  %v4274_v0 = vpop.f32.mrf.mxu1 }
 0x24a   :  { %v3904_v31 = vpack.c.bf16 %v2397_v9, %v2394_v12  ;;  %4069 = vst [vmem:[%s5954_s3 + $0x188] sm:$0xff] %v3949_v5   ;;  %v3944_v4 = vpack.c.bf16 %v2461_v21, %v2458_v41  ;;  %v1857_v26 = vadd.f32 %v5370_v30, %v1856_v23  ;;  %v1929_v30 = vadd.f32 %v5797_v56, %v5087_v24 }
 0x24b   :  { %v1858_v13 = vpop.f32.mrf.mxu0  ;;  %v2473_v10 = vpop.f32.mrf.mxu1  ;;  %v2482_v36 = vadd.f32 %v4274_v0, %v1937_v55 }
 0x24c   :  { %4060 = vst [vmem:[%s5954_s3 + $0x140] sm:$0xff] %v3904_v31   ;;  %4068 = vst [vmem:[%s5954_s3 + $0x180] sm:$0xff] %v3944_v4   ;;  %v2402_v62 = vadd.f32 %v5722_v43, %v1857_v26  ;;  %v2474_v37 = vadd.f32 %v2473_v10, %v1929_v30  ;;  %v1953_v43 = vadd.f32 %v5797_v56, %v5147_v60  ;;  %v5976_v4 = vld [vmem:[#allocation5_spill] sm:$0xff]  ;;  %v5977_v26 = vld [vmem:[#allocation2_spill] sm:$0xff] }
 0x24d   :  { %v1859_v58 = vpop.f32.mrf.mxu0  ;;  %v4275_v15 = vpop.f32.mrf.mxu1  ;;  %v1961_v13 = vadd.f32 %v5797_v56, %v5977_v26 }
 0x24e   :  { %v1860_v61 = vadd.f32 %v5797_v56, %v1859_v58  ;;  %v2485_v40 = vadd.f32 %v4275_v15, %v1940_v11  ;;  %v5978_v11 = vld [vmem:[#allocation3_spill] sm:$0xff] }
 0x24f   :  { %v1861_v46 = vpop.f32.mrf.mxu0  ;;  %v2476_v33 = vpop.f32.mrf.mxu1  ;;  %v1964_v30 = vadd.f32 %v5797_v56, %v5978_v11 }
 0x250   :  { %v2405_v57 = vadd.f32 %v5730_v25, %v1860_v61  ;;  %v3959_v14 = vpack.c.bf16 %v2485_v40, %v2482_v36  ;;  %v2477_v6 = vadd.f32 %v2476_v33, %v1932_v18  ;;  %v1956_v25 = vadd.f32 %v5797_v56, %v5151_v2 }
 0x251   :  { %v1864_v39 = vpop.f32.mrf.mxu0  ;;  %v4278_v24 = vpop.f32.mrf.mxu1 }
 0x252   :  { %v3909_v49 = vpack.c.bf16 %v2405_v57, %v2402_v62  ;;  %4071 = vst [vmem:[%s5954_s3 + $0x198] sm:$0xff] %v3959_v14   ;;  %v3954_v28 = vpack.c.bf16 %v2477_v6, %v2474_v37  ;;  %v1865_v32 = vadd.f32 %v5797_v56, %v1864_v39  ;;  %v2498_v60 = vadd.f32 %v4278_v24, %v1953_v43 }
 0x253   :  { %v1866_v45 = vpop.f32.mrf.mxu0  ;;  %v2489_v59 = vpop.f32.mrf.mxu1 }
 0x254   :  { %4061 = vst [vmem:[%s5954_s3 + $0x148] sm:$0xff] %v3909_v49   ;;  %4070 = vst [vmem:[%s5954_s3 + $0x190] sm:$0xff] %v3954_v28   ;;  %v2410_v63 = vadd.f32 %v5737_v8, %v1865_v32  ;;  %v2490_v12 = vadd.f32 %v2489_v59, %v1945_v47  ;;  %v5975_v8 = vld [vmem:[#allocation4_spill] sm:$0xff]  ;;  %v5980_v45 = vld [vmem:[#allocation9_spill] sm:$0xff] }
 0x255   :  { %v1867_v7 = vpop.f32.mrf.mxu0  ;;  %v4279_v20 = vpop.f32.mrf.mxu1  ;;  %v1969_v31 = vadd.f32 %v5797_v56, %v5975_v8  ;;  %v5981_v59 = vld [vmem:[#allocation6_spill] sm:$0xff]  ;;  %v5984_v8 = vld [vmem:[#allocation13_spill] sm:$0xff] }
 0x256   :  { %v1868_v35 = vadd.f32 %v5797_v56, %v1867_v7  ;;  %v2501_v2 = vadd.f32 %v4279_v20, %v1956_v25  ;;  %v1977_v43 = vadd.f32 %v5797_v56, %v5981_v59  ;;  %v5982_v7 = vld [vmem:[#allocation7_spill] sm:$0xff] }
 0x257   :  { %v1869_v38 = vpop.f32.mrf.mxu0  ;;  %v2492_v19 = vpop.f32.mrf.mxu1  ;;  %v1980_v20 = vadd.f32 %v5797_v56, %v5982_v7 }
 0x258   :  { %v2413_v54 = vadd.f32 %v5746_v42, %v1868_v35  ;;  %v3969_v16 = vpack.c.bf16 %v2501_v2, %v2498_v60  ;;  %v2493_v41 = vadd.f32 %v2492_v19, %v1948_v1  ;;  %v1972_v42 = vadd.f32 %v5797_v56, %v5976_v4 }
 0x259   :  { %v1872_v9 = vpop.f32.mrf.mxu0  ;;  %v4282_v48 = vpop.f32.mrf.mxu1 }
 0x25a   :  { %v3914_v5 = vpack.c.bf16 %v2413_v54, %v2410_v63  ;;  %4073 = vst [vmem:[%s5954_s3 + $0x1a8] sm:$0xff] %v3969_v16   ;;  %v3964_v52 = vpack.c.bf16 %v2493_v41, %v2490_v12  ;;  %v1873_v21 = vadd.f32 %v5797_v56, %v1872_v9  ;;  %v2514_v58 = vadd.f32 %v4282_v48, %v1969_v31  ;;  %v5985_v31 = vld [vmem:[#allocation10_spill] sm:$0xff] }
 0x25b   :  { %v1874_v23 = vpop.f32.mrf.mxu0  ;;  %v2505_v0 = vpop.f32.mrf.mxu1  ;;  %v1993_v4 = vadd.f32 %v5797_v56, %v5985_v31 }
 0x25c   :  { %4062 = vst [vmem:[%s5954_s3 + $0x150] sm:$0xff] %v3914_v5   ;;  %4072 = vst [vmem:[%s5954_s3 + $0x1a0] sm:$0xff] %v3964_v52   ;;  %v2418_v36 = vadd.f32 %v5735_v50, %v1873_v21  ;;  %v2506_v62 = vadd.f32 %v2505_v0, %v1961_v13  ;;  %v5979_v50 = vld [vmem:[#allocation8_spill] sm:$0xff]  ;;  %v5986_v13 = vld [vmem:[#allocation11_spill] sm:$0xff] }
 0x25d   :  { %v1875_v10 = vpop.f32.mrf.mxu0  ;;  %v4283_v55 = vpop.f32.mrf.mxu1  ;;  %v1985_v32 = vadd.f32 %v5797_v56, %v5979_v50 }
 0x25e   :  { %v1876_v15 = vadd.f32 %v5797_v56, %v1875_v10  ;;  %v2517_v18 = vadd.f32 %v4283_v55, %v1972_v42  ;;  %v1996_v10 = vadd.f32 %v5797_v56, %v5986_v13 }
 0x25f   :  { %v1877_v61 = vpop.f32.mrf.mxu0  ;;  %v2508_v40 = vpop.f32.mrf.mxu1 }
 0x260   :  { %v2421_v46 = vadd.f32 %v5743_v27, %v1876_v15  ;;  %v3979_v33 = vpack.c.bf16 %v2517_v18, %v2514_v58  ;;  %v2509_v37 = vadd.f32 %v2508_v40, %v1964_v30  ;;  %v1988_v27 = vadd.f32 %v5797_v56, %v5980_v45 }
 0x261   :  { %v1880_v57 = vpop.f32.mrf.mxu0  ;;  %v4286_v14 = vpop.f32.mrf.mxu1 }
 0x262   :  { %v3919_v6 = vpack.c.bf16 %v2421_v46, %v2418_v36  ;;  %4075 = vst [vmem:[%s5954_s3 + $0x1b8] sm:$0xff] %v3979_v33   ;;  %v3974_v39 = vpack.c.bf16 %v2509_v37, %v2506_v62  ;;  %v1881_v24 = vadd.f32 %v5797_v56, %v1880_v57  ;;  %v2530_v1 = vadd.f32 %v4286_v14, %v1985_v32 }
 0x263   :  { %v1882_v49 = vpop.f32.mrf.mxu0  ;;  %v2521_v28 = vpop.f32.mrf.mxu1 }
 0x264   :  { %4063 = vst [vmem:[%s5954_s3 + $0x158] sm:$0xff] %v3919_v6   ;;  %4074 = vst [vmem:[%s5954_s3 + $0x1b0] sm:$0xff] %v3974_v39   ;;  %v2426_v2 = vadd.f32 %v5750_v44, %v1881_v24  ;;  %v2522_v19 = vadd.f32 %v2521_v28, %v1977_v43  ;;  %v5983_v44 = vld [vmem:[#allocation12_spill] sm:$0xff]  ;;  %v5988_v49 = vld [vmem:[#allocation17_spill] sm:$0xff] }
 0x265   :  { %v1883_v25 = vpop.f32.mrf.mxu0  ;;  %v4287_v47 = vpop.f32.mrf.mxu1  ;;  %v2001_v0 = vadd.f32 %v5797_v56, %v5983_v44  ;;  %v5989_v28 = vld [vmem:[#allocation14_spill] sm:$0xff] }
 0x266   :  { %v1884_v60 = vadd.f32 %v5797_v56, %v1883_v25  ;;  %v2533_v35 = vadd.f32 %v4287_v47, %v1988_v27  ;;  %v2009_v50 = vadd.f32 %v5797_v56, %v5989_v28  ;;  %v5990_v27 = vld [vmem:[#allocation15_spill] sm:$0xff] }
 0x267   :  { %v1885_v63 = vpop.f32.mrf.mxu0  ;;  %v2524_v38 = vpop.f32.mrf.mxu1  ;;  %v2012_v59 = vadd.f32 %v5797_v56, %v5990_v27 }
 0x268   :  { %v2429_v12 = vadd.f32 %v5759_v51, %v1884_v60  ;;  %v3989_v54 = vpack.c.bf16 %v2533_v35, %v2530_v1  ;;  %v2525_v16 = vadd.f32 %v2524_v38, %v1980_v20  ;;  %v2004_v51 = vadd.f32 %v5797_v56, %v5984_v8 }
 0x269   :  { %v1888_v41 = vpop.f32.mrf.mxu0  ;;  %v4290_v9 = vpop.f32.mrf.mxu1 }
 0x26a   :  { %v3924_v48 = vpack.c.bf16 %v2429_v12, %v2426_v2  ;;  %4077 = vst [vmem:[%s5954_s3 + $0x1c8] sm:$0xff] %v3989_v54   ;;  %v3984_v5 = vpack.c.bf16 %v2525_v16, %v2522_v19  ;;  %v1889_v52 = vadd.f32 %v5797_v56, %v1888_v41  ;;  %v2546_v55 = vadd.f32 %v4290_v9, %v2001_v0  ;;  %v5994_v0 = vld [vmem:[#allocation19_spill] sm:$0xff] }
 0x26b   :  { %v1890_v21 = vpop.f32.mrf.mxu0  ;;  %v2537_v23 = vpop.f32.mrf.mxu1  ;;  %v2028_v8 = vadd.f32 %v5797_v56, %v5994_v0 }
 0x26c   :  { %4064 = vst [vmem:[%s5954_s3 + $0x160] sm:$0xff] %v3924_v48   ;;  %4076 = vst [vmem:[%s5954_s3 + $0x1c0] sm:$0xff] %v3984_v5   ;;  %v2434_v58 = vadd.f32 %v5748_v53, %v1889_v52  ;;  %v2538_v36 = vadd.f32 %v2537_v23, %v1993_v4  ;;  %v5987_v53 = vld [vmem:[#allocation16_spill] sm:$0xff]  ;;  %v5992_v5 = vld [vmem:[#allocation21_spill] sm:$0xff] }
 0x26d   :  { %v1891_v42 = vpop.f32.mrf.mxu0  ;;  %v4291_v26 = vpop.f32.mrf.mxu1  ;;  %v2017_v24 = vadd.f32 %v5797_v56, %v5987_v53  ;;  %v5993_v52 = vld [vmem:[#allocation18_spill] sm:$0xff] }
 0x26e   :  { %v1892_v11 = vadd.f32 %v5797_v56, %v1891_v42  ;;  %v2549_v30 = vadd.f32 %v4291_v26, %v2004_v51  ;;  %v2025_v21 = vadd.f32 %v5797_v56, %v5993_v52 }
 0x26f   :  { %v1893_v15 = vpop.f32.mrf.mxu0  ;;  %v2540_v18 = vpop.f32.mrf.mxu1 }
 0x270   :  { %v2437_v61 = vadd.f32 %v5756_v34, %v1892_v11  ;;  %v3999_v40 = vpack.c.bf16 %v2549_v30, %v2546_v55  ;;  %v2541_v62 = vadd.f32 %v2540_v18, %v1996_v10  ;;  %v2020_v34 = vadd.f32 %v5797_v56, %v5988_v49 }
 0x271   :  { %v1896_v46 = vpop.f32.mrf.mxu0  ;;  %v4294_v33 = vpop.f32.mrf.mxu1 }
 0x272   :  { %v3929_v37 = vpack.c.bf16 %v2437_v61, %v2434_v58  ;;  %4079 = vst [vmem:[%s5954_s3 + $0x1d8] sm:$0xff] %v3999_v40   ;;  %v3994_v57 = vpack.c.bf16 %v2541_v62, %v2538_v36  ;;  %v1897_v14 = vadd.f32 %v5797_v56, %v1896_v46  ;;  %v2562_v43 = vadd.f32 %v4294_v33, %v2017_v24 }
 0x273   :  { %v1898_v6 = vpop.f32.mrf.mxu0  ;;  %v2553_v39 = vpop.f32.mrf.mxu1 }
 0x274   :  { %4065 = vst [vmem:[%s5954_s3 + $0x168] sm:$0xff] %v3929_v37   ;;  %4078 = vst [vmem:[%s5954_s3 + $0x1d0] sm:$0xff] %v3994_v57   ;;  %v2442_v7 = vadd.f32 %v5763_v29, %v1897_v14  ;;  %v2554_v60 = vadd.f32 %v2553_v39, %v2009_v50  ;;  %v5991_v29 = vld [vmem:[#allocation20_spill] sm:$0xff] }
 0x275   :  { %v1899_v32 = vpop.f32.mrf.mxu0  ;;  %v4295_v45 = vpop.f32.mrf.mxu1  ;;  %v2033_v48 = vadd.f32 %v5797_v56, %v5991_v29 }
 0x276   :  { %v1900_v25 = vadd.f32 %v5797_v56, %v1899_v32  ;;  %v2565_v47 = vadd.f32 %v4295_v45, %v2020_v34 }
 0x277   :  { %v1901_v20 = vpop.f32.mrf.mxu0  ;;  %v2556_v1 = vpop.f32.mrf.mxu1 }
 0x278   :  { %v2445_v35 = vadd.f32 %v5772_v3, %v1900_v25  ;;  %v4009_v2 = vpack.c.bf16 %v2565_v47, %v2562_v43  ;;  %v2557_v63 = vadd.f32 %v2556_v1, %v2012_v59  ;;  %v2036_v3 = vadd.f32 %v5797_v56, %v5992_v5 }
 0x279   :  { %v1904_v38 = vpop.f32.mrf.mxu0  ;;  %v4298_v19 = vpop.f32.mrf.mxu1 }
 0x27a   :  { %v3934_v12 = vpack.c.bf16 %v2445_v35, %v2442_v7  ;;  %4081 = vst [vmem:[%s5954_s3 + $0x1e8] sm:$0xff] %v4009_v2   ;;  %v4004_v54 = vpack.c.bf16 %v2557_v63, %v2554_v60  ;;  %v1905_v16 = vadd.f32 %v5797_v56, %v1904_v38  ;;  %v2578_v51 = vadd.f32 %v4298_v19, %v2033_v48 }
 0x27b   :  { %v1906_v41 = vpop.f32.mrf.mxu0  ;;  %v2569_v9 = vpop.f32.mrf.mxu1 }
 0x27c   :  { %4066 = vst [vmem:[%s5954_s3 + $0x170] sm:$0xff] %v3934_v12   ;;  %4080 = vst [vmem:[%s5954_s3 + $0x1e0] sm:$0xff] %v4004_v54   ;;  %v2450_v42 = vadd.f32 %v5761_v17, %v1905_v16  ;;  %v2570_v10 = vadd.f32 %v2569_v9, %v2025_v21 }
 0x27d   :  { %v1907_v23 = vpop.f32.mrf.mxu0  ;;  %v4299_v44 = vpop.f32.mrf.mxu1 }
 0x27e   :  { %v1908_v31 = vadd.f32 %v5797_v56, %v1907_v23  ;;  %v2581_v4 = vadd.f32 %v4299_v44, %v2036_v3 }
 0x27f   :  { %v1909_v26 = vpop.f32.mrf.mxu0  ;;  %v2572_v13 = vpop.f32.mrf.mxu1 }
 0x280   :  { %v2453_v55 = vadd.f32 %v5769_v22, %v1908_v31  ;;  %v4019_v11 = vpack.c.bf16 %v2581_v4, %v2578_v51  ;;  %v2573_v30 = vadd.f32 %v2572_v13, %v2028_v8 }
 0x282   :  { %v3939_v58 = vpack.c.bf16 %v2453_v55, %v2450_v42  ;;  %4083 = vst [vmem:[%s5954_s3 + $0x1f8] sm:$0xff] %v4019_v11   ;;  %v4014_v15 = vpack.c.bf16 %v2573_v30, %v2570_v10 }
 0x284   :  { %4067 = vst [vmem:[%s5954_s3 + $0x178] sm:$0xff] %v3939_v58   ;;  %4082 = vst [vmem:[%s5954_s3 + $0x1f0] sm:$0xff] %v4014_v15  }

// kernel: waveguide_forward.5
= control target key start
LH: loop header
LB: loop body
LE: loop exit
PB: predicated region body
PF: predicated region fallthrough
CT: control target
= control target key end

     0   :  { %vm5890_vm0 = vmmov 0   ;;  %vm1554_vm1 = vcmask 1046528   ;;  %vm1897_vm2 = vcmask 1044480   ;;  %vm1768_vm3 = vcmask 1045504   ;;  %s8115_s1 = inlined_call_operand.vmem [shape: bf16[3,128,128], index: 1, kind: input, shape index: {}]   ;;  %s8116_s0 = inlined_call_operand.vmem [shape: bf16[7,64,128], index: 0, kind: input, shape index: {}]   ;;  %s8117_s3 = inlined_call_operand.vmem [shape: bf16[3,128,128], index: 3, kind: input, shape index: {}]   ;;  %s8118_s2 = inlined_call_operand.vmem [shape: f32[1,128], index: 2, kind: input, shape index: {}]   ;;  %s8119_s5 = inlined_call_operand.vmem [shape: f32[18,128,128], index: 5, kind: input, shape index: {}]   ;;  %s8120_s4 = inlined_call_operand.vmem [shape: f32[1,128], index: 4, kind: input, shape index: {}]   ;;  %s8121_s6 = inlined_call_operand.vmem [shape: f32[1,128], index: 6, kind: input, shape index: {}]   ;;  %s8122_s7 = inlined_call_operand.vmem [shape: f32[40,128], index: 7, kind: output, shape index: {}]  }
   0x1   :  { %v5934_v0 = vld [vmem:[%s8115_s1 + $0x78] sm:$0xff]   ;;  %v5945_v2 = vld [vmem:[%s8115_s1 + $0x70] sm:$0xff]   ;;  %v5959_v4 = vld [vmem:[%s8115_s1 + $0x68] sm:$0xff]   ;;  %vm2155_vm4 = vcmask 1042432   ;;  %vm2026_vm5 = vcmask 1043456   ;;  %vm2413_vm6 = vcmask 1040384  }
   0x2   :  { %v5939_v1 = vld [vmem:[%s8115_s1 + $0x38] sm:$0xff]   ;;  %4677 = vmatprep.subr.bf16.mxu0 %v5934_v0  ;;  %v5952_v3 = vld [vmem:[%s8115_s1 + $0x30] sm:$0xff]   ;;  %v5965_v5 = vld [vmem:[%s8115_s1 + $0x28] sm:$0xff]   ;;  %vm2284_vm7 = vcmask 1041408  }
   0x3   :  { %4701 = vmatprep.subr.bf16.mxu1 %v5939_v1  ;;  %4678 = vmatpush3.bf16.msra.mxu0 %v5934_v0  ;;  %v5973_v6 = vld [vmem:[%s8115_s1 + $0x60] sm:$0xff]   ;;  %v5987_v8 = vld [vmem:[%s8115_s1 + $0x58] sm:$0xff]   ;;  %v5998_v10 = vld [vmem:[%s8115_s1 + $0x50] sm:$0xff]  }
   0x4   :  { %4702 = vmatpush3.bf16.msra.mxu1 %v5939_v1  ;;  %4679 = vmatprep.subr.bf16.mxu0 %v5945_v2  ;;  %v5979_v7 = vld [vmem:[%s8115_s1 + $0x20] sm:$0xff]   ;;  %v5993_v9 = vld [vmem:[%s8115_s1 + $0x18] sm:$0xff]   ;;  %v6004_v11 = vld [vmem:[%s8115_s1 + $0x10] sm:$0xff]  }
   0x5   :  { %4703 = vmatprep.subr.bf16.mxu1 %v5952_v3  ;;  %v6011_v12 = vld [vmem:[%s8116_s0 + $0x20] sm:$0xff]   ;;  %v6024_v14 = vld [vmem:[%s8115_s1 + $0x48] sm:$0xff]   ;;  %v6052_v18 = vld [vmem:[%s8115_s1 + $0xb8] sm:$0xff]  }
   0x6   :  { %v5830_v13 = vld [vmem:[%s8116_s0] sm:$0xff]   ;;  %4693 = vmatprep.mubr.bf16.mxu0 %v6011_v12  ;;  %v6030_v15 = vld [vmem:[%s8115_s1 + $0x8] sm:$0xff]   ;;  %v6069_v21 = vld [vmem:[%s8115_s1 + $0xb0] sm:$0xff]  }
   0x7   :  { %4680 = vmatpush3.bf16.msra.mxu0 %v5945_v2  ;;  %4717 = vmatprep.mubr.bf16.mxu1 %v5830_v13  ;;  %v6038_v16 = vld [vmem:[%s8115_s1 + $0x40] sm:$0xff]   ;;  %v6058_v19 = vld [vmem:[%s8116_s0 + $0x28] sm:$0xff]   ;;  %v6075_v22 = vld [vmem:[%s8116_s0 + $0x30] sm:$0xff]  }
   0x8   :  { %4704 = vmatpush3.bf16.msra.mxu1 %v5952_v3  ;;  %4681 = vmatprep.subr.bf16.mxu0 %v5959_v4  ;;  %v6044_v17 = vld [vmem:[%s8115_s1] sm:$0xff]   ;;  %v5832_v20 = vld [vmem:[%s8116_s0 + $0x8] sm:$0xff]   ;;  %v5839_v23 = vld [vmem:[%s8116_s0 + $0x10] sm:$0xff]  }
   0x9   :  { %4705 = vmatprep.subr.bf16.mxu1 %v5965_v5  ;;  %v6087_v24 = vld [vmem:[%s8115_s1 + $0xa8] sm:$0xff]   ;;  %v6094_v25 = vld [vmem:[%s8116_s0 + $0x38] sm:$0xff]   ;;  %v6105_v27 = vld [vmem:[%s8115_s1 + $0xa0] sm:$0xff]  }
   0xa   :  { %v5841_v26 = vld [vmem:[%s8116_s0 + $0x18] sm:$0xff]   ;;  %v6111_v28 = vld [vmem:[%s8116_s0 + $0x40] sm:$0xff]   ;;  %v6133_v31 = vld [vmem:[%s8115_s1 + $0x90] sm:$0xff]  }
   0xb   :  { %4682 = vmatpush3.bf16.msra.mxu0 %v5959_v4  ;;  %v5847_v29 = vld [vmem:[%s8116_s0 + $0x60] sm:$0xff]   ;;  %v6123_v30 = vld [vmem:[%s8115_s1 + $0x98] sm:$0xff]   ;;  %v6142_v32 = vld [vmem:[%s8115_s1 + $0x88] sm:$0xff]  }
   0xc   :  { %4706 = vmatpush3.bf16.msra.mxu1 %v5965_v5  ;;  %4683 = vmatprep.subr.bf16.mxu0 %v5973_v6  ;;  %v6151_v33 = vld [vmem:[%s8115_s1 + $0x80] sm:$0xff]   ;;  %v6161_v34 = vld [vmem:[%s8116_s0 + $0x48] sm:$0xff]   ;;  %v6173_v36 = vld [vmem:[%s8116_s0 + $0x50] sm:$0xff]  }
   0xd   :  { %4707 = vmatprep.subr.bf16.mxu1 %v5979_v7  ;;  %v5848_v35 = vld [vmem:[%s8116_s0 + $0x68] sm:$0xff]   ;;  %v5851_v37 = vld [vmem:[%s8116_s0 + $0x70] sm:$0xff]   ;;  %v6187_v38 = vld [vmem:[%s8116_s0 + $0x58] sm:$0xff]  }
   0xe   :  { %v5852_v39 = vld [vmem:[%s8116_s0 + $0x78] sm:$0xff]   ;;  %v5853_v40 = vld [vmem:[%s8116_s0 + $0x80] sm:$0xff]   ;;  %v5854_v41 = vld [vmem:[%s8116_s0 + $0x88] sm:$0xff]  }
   0xf   :  { %4684 = vmatpush3.bf16.msra.mxu0 %v5973_v6  ;;  %v5855_v42 = vld [vmem:[%s8116_s0 + $0x90] sm:$0xff]   ;;  %v5856_v43 = vld [vmem:[%s8116_s0 + $0x98] sm:$0xff]   ;;  %v5857_v44 = vld [vmem:[%s8116_s0 + $0xa0] sm:$0xff]  }
  0x10   :  { %4708 = vmatpush3.bf16.msra.mxu1 %v5979_v7  ;;  %4685 = vmatprep.subr.bf16.mxu0 %v5987_v8  ;;  %v5858_v45 = vld [vmem:[%s8116_s0 + $0xa8] sm:$0xff]   ;;  %v5859_v46 = vld [vmem:[%s8116_s0 + $0xb0] sm:$0xff]   ;;  %v5860_v47 = vld [vmem:[%s8116_s0 + $0xb8] sm:$0xff]  }
  0x11   :  { %4709 = vmatprep.subr.bf16.mxu1 %v5993_v9  ;;  %v5861_v48 = vld [vmem:[%s8116_s0 + $0xc0] sm:$0xff]   ;;  %v5873_v49 = vld [vmem:[%s8117_s3 + $0x78] sm:$0xff]   ;;  %v5874_v50 = vld [vmem:[%s8117_s3 + $0x70] sm:$0xff]  }
  0x12   :  { %v5875_v51 = vld [vmem:[%s8117_s3 + $0x68] sm:$0xff]   ;;  %v5876_v52 = vld [vmem:[%s8117_s3 + $0x60] sm:$0xff]   ;;  %v5865_v53 = vld [vmem:[%s8117_s3 + $0x38] sm:$0xff]  }
  0x13   :  { %4686 = vmatpush3.bf16.msra.mxu0 %v5987_v8  ;;  %v5862_v54 = vld [vmem:[%s8116_s0 + $0xc8] sm:$0xff]   ;;  %v5863_v55 = vld [vmem:[%s8116_s0 + $0xd0] sm:$0xff]   ;;  %v5877_v57 = vld [vmem:[%s8117_s3 + $0x58] sm:$0xff]  }
  0x14   :  { %4710 = vmatpush3.bf16.msra.mxu1 %v5993_v9  ;;  %4687 = vmatprep.subr.bf16.mxu0 %v5998_v10  ;;  %v5866_v56 = vld [vmem:[%s8117_s3 + $0x30] sm:$0xff]   ;;  %v5867_v58 = vld [vmem:[%s8117_s3 + $0x28] sm:$0xff]   ;;  %v5864_v60 = vld [vmem:[%s8116_s0 + $0xd8] sm:$0xff]  }
  0x15   :  { %4711 = vmatprep.subr.bf16.mxu1 %v6004_v11  ;;  %v5878_v59 = vld [vmem:[%s8117_s3 + $0x50] sm:$0xff]   ;;  %v5868_v61 = vld [vmem:[%s8117_s3 + $0x20] sm:$0xff]   ;;  %v5879_v62 = vld [vmem:[%s8117_s3 + $0x48] sm:$0xff]  }
  0x16   :  { %v5869_v63 = vld [vmem:[%s8117_s3 + $0x18] sm:$0xff]  }
  0x17   :  { %4688 = vmatpush3.bf16.msra.mxu0 %v5998_v10 }
  0x18   :  { %4712 = vmatpush3.bf16.msra.mxu1 %v6004_v11  ;;  %4689 = vmatprep.subr.bf16.mxu0 %v6024_v14 }
  0x19   :  { %4713 = vmatprep.subr.bf16.mxu1 %v6030_v15 }
  0x1b   :  { %4690 = vmatpush3.bf16.msra.mxu0 %v6024_v14 }
  0x1c   :  { %4714 = vmatpush3.bf16.msra.mxu1 %v6030_v15  ;;  %4691 = vmatprep.subr.bf16.mxu0 %v6038_v16 }
  0x1d   :  { %4715 = vmatprep.subr.bf16.mxu1 %v6044_v17 }
  0x1f   :  { %4692 = vmatpush3.bf16.msra.mxu0 %v6038_v16 }
  0x20   :  { %4716 = vmatpush3.bf16.msra.mxu1 %v6044_v17  ;;  %4725 = vmatprep.subr.bf16.mxu0 %v6052_v18 }
  0x21   :  { %4749 = vmatprep.subr.bf16.mxu1 %v5934_v0 }
  0x22   :  { %4694 = vmatmul.mubr.bf16.vlgmr.msra.gmra.mxu0 %v6058_v19 }
  0x23   :  { %4718 = vmatmul.mubr.bf16.vlgmr.msra.gmra.mxu1 %v5832_v20  ;;  %4726 = vmatpush3.bf16.msra.mxu0 %v6052_v18 }
  0x24   :  { %4750 = vmatpush3.bf16.msra.mxu1 %v5934_v0  ;;  %4727 = vmatprep.subr.bf16.mxu0 %v6069_v21 }
  0x25   :  { %4751 = vmatprep.subr.bf16.mxu1 %v5945_v2  ;;  %4697 = vmatprep.mubr.bf16.mxu0 %v6075_v22 }
  0x26   :  { %4721 = vmatprep.mubr.bf16.mxu1 %v5839_v23 }
  0x27   :  { %4728 = vmatpush3.bf16.msra.mxu0 %v6069_v21 }
  0x28   :  { %4752 = vmatpush3.bf16.msra.mxu1 %v5945_v2  ;;  %4729 = vmatprep.subr.bf16.mxu0 %v6087_v24 }
  0x29   :  { %4753 = vmatprep.subr.bf16.mxu1 %v5959_v4 }
  0x2a   :  { %4698 = vmatmul.mubr.bf16.gmra.mxu0 %v6094_v25 }
  0x2b   :  { %4730 = vmatpush3.bf16.msra.mxu0 %v6087_v24  ;;  %4722 = vmatmul.mubr.bf16.gmra.mxu1 %v5841_v26 }
  0x2c   :  { %4754 = vmatpush3.bf16.msra.mxu1 %v5959_v4  ;;  %4731 = vmatprep.subr.bf16.mxu0 %v6105_v27 }
  0x2d   :  { %4755 = vmatprep.subr.bf16.mxu1 %v5973_v6  ;;  %4741 = vmatprep.mubr.bf16.mxu0 %v6111_v28 }
  0x2e   :  { %4765 = vmatprep.mubr.bf16.mxu1 %v5847_v29 }
  0x2f   :  { %4732 = vmatpush3.bf16.msra.mxu0 %v6105_v27 }
  0x30   :  { %4756 = vmatpush3.bf16.msra.mxu1 %v5973_v6  ;;  %4733 = vmatprep.subr.bf16.mxu0 %v6123_v30 }
  0x31   :  { %4757 = vmatprep.subr.bf16.mxu1 %v5987_v8 }
  0x33   :  { %4734 = vmatpush3.bf16.msra.mxu0 %v6123_v30 }
  0x34   :  { %4758 = vmatpush3.bf16.msra.mxu1 %v5987_v8  ;;  %4735 = vmatprep.subr.bf16.mxu0 %v6133_v31 }
  0x35   :  { %4759 = vmatprep.subr.bf16.mxu1 %v5998_v10 }
  0x37   :  { %4736 = vmatpush3.bf16.msra.mxu0 %v6133_v31 }
  0x38   :  { %4760 = vmatpush3.bf16.msra.mxu1 %v5998_v10  ;;  %4737 = vmatprep.subr.bf16.mxu0 %v6142_v32 }
  0x39   :  { %4761 = vmatprep.subr.bf16.mxu1 %v6024_v14 }
  0x3b   :  { %4738 = vmatpush3.bf16.msra.mxu0 %v6142_v32 }
  0x3c   :  { %4762 = vmatpush3.bf16.msra.mxu1 %v6024_v14  ;;  %4739 = vmatprep.subr.bf16.mxu0 %v6151_v33 }
  0x3d   :  { %4763 = vmatprep.subr.bf16.mxu1 %v6038_v16 }
  0x3f   :  { %4740 = vmatpush3.bf16.msra.mxu0 %v6151_v33 }
  0x40   :  { %4764 = vmatpush3.bf16.msra.mxu1 %v6038_v16  ;;  %4773 = vmatprep.subr.bf16.mxu0 %v5939_v1 }
  0x41   :  { %4797 = vmatprep.subr.bf16.mxu1 %v6052_v18 }
  0x42   :  { %4742 = vmatmul.mubr.bf16.vlgmr.msra.gmra.mxu0 %v6161_v34 }
  0x43   :  { %4766 = vmatmul.mubr.bf16.vlgmr.msra.gmra.mxu1 %v5848_v35  ;;  %4774 = vmatpush3.bf16.msra.mxu0 %v5939_v1 }
  0x44   :  { %4798 = vmatpush3.bf16.msra.mxu1 %v6052_v18  ;;  %4775 = vmatprep.subr.bf16.mxu0 %v5952_v3 }
  0x45   :  { %4799 = vmatprep.subr.bf16.mxu1 %v6069_v21  ;;  %4745 = vmatprep.mubr.bf16.mxu0 %v6173_v36 }
  0x46   :  { %4769 = vmatprep.mubr.bf16.mxu1 %v5851_v37 }
  0x47   :  { %4776 = vmatpush3.bf16.msra.mxu0 %v5952_v3 }
  0x48   :  { %4800 = vmatpush3.bf16.msra.mxu1 %v6069_v21  ;;  %4777 = vmatprep.subr.bf16.mxu0 %v5965_v5 }
  0x49   :  { %4801 = vmatprep.subr.bf16.mxu1 %v6087_v24 }
  0x4a   :  { %4746 = vmatmul.mubr.bf16.gmra.mxu0 %v6187_v38 }
  0x4b   :  { %4778 = vmatpush3.bf16.msra.mxu0 %v5965_v5  ;;  %4770 = vmatmul.mubr.bf16.gmra.mxu1 %v5852_v39 }
  0x4c   :  { %4802 = vmatpush3.bf16.msra.mxu1 %v6087_v24  ;;  %4779 = vmatprep.subr.bf16.mxu0 %v5979_v7 }
  0x4d   :  { %4803 = vmatprep.subr.bf16.mxu1 %v6105_v27  ;;  %4789 = vmatprep.mubr.bf16.mxu0 %v6011_v12 }
  0x4e   :  { %4813 = vmatprep.mubr.bf16.mxu1 %v5853_v40 }
  0x4f   :  { %4780 = vmatpush3.bf16.msra.mxu0 %v5979_v7 }
  0x50   :  { %4804 = vmatpush3.bf16.msra.mxu1 %v6105_v27  ;;  %4781 = vmatprep.subr.bf16.mxu0 %v5993_v9 }
  0x51   :  { %4805 = vmatprep.subr.bf16.mxu1 %v6123_v30 }
  0x53   :  { %4782 = vmatpush3.bf16.msra.mxu0 %v5993_v9 }
  0x54   :  { %4806 = vmatpush3.bf16.msra.mxu1 %v6123_v30  ;;  %4783 = vmatprep.subr.bf16.mxu0 %v6004_v11 }
  0x55   :  { %4807 = vmatprep.subr.bf16.mxu1 %v6133_v31 }
  0x57   :  { %4784 = vmatpush3.bf16.msra.mxu0 %v6004_v11 }
  0x58   :  { %4808 = vmatpush3.bf16.msra.mxu1 %v6133_v31  ;;  %4785 = vmatprep.subr.bf16.mxu0 %v6030_v15 }
  0x59   :  { %4809 = vmatprep.subr.bf16.mxu1 %v6142_v32 }
  0x5b   :  { %4786 = vmatpush3.bf16.msra.mxu0 %v6030_v15 }
  0x5c   :  { %4810 = vmatpush3.bf16.msra.mxu1 %v6142_v32  ;;  %4787 = vmatprep.subr.bf16.mxu0 %v6044_v17 }
  0x5d   :  { %4811 = vmatprep.subr.bf16.mxu1 %v6151_v33 }
  0x5f   :  { %4788 = vmatpush3.bf16.msra.mxu0 %v6044_v17 }
  0x60   :  { %4812 = vmatpush3.bf16.msra.mxu1 %v6151_v33  ;;  %4821 = vmatprep.subr.bf16.mxu0 %v5934_v0 }
  0x61   :  { %4845 = vmatprep.subr.bf16.mxu1 %v5939_v1 }
  0x62   :  { %4790 = vmatmul.mubr.bf16.vlgmr.msra.gmra.mxu0 %v6058_v19 }
  0x63   :  { %4814 = vmatmul.mubr.bf16.vlgmr.msra.gmra.mxu1 %v5854_v41  ;;  %4822 = vmatpush3.bf16.msra.mxu0 %v5934_v0  ;;  %v5880_v0 = vld [vmem:[%s8117_s3 + $0x40] sm:$0xff]  }
  0x64   :  { %4846 = vmatpush3.bf16.msra.mxu1 %v5939_v1  ;;  %4823 = vmatprep.subr.bf16.mxu0 %v5945_v2  ;;  %v5870_v1 = vld [vmem:[%s8117_s3 + $0x10] sm:$0xff]  }
  0x65   :  { %4847 = vmatprep.subr.bf16.mxu1 %v5952_v3  ;;  %4793 = vmatprep.mubr.bf16.mxu0 %v6075_v22 }
  0x66   :  { %4817 = vmatprep.mubr.bf16.mxu1 %v5855_v42 }
  0x67   :  { %4824 = vmatpush3.bf16.msra.mxu0 %v5945_v2  ;;  %v5871_v2 = vld [vmem:[%s8117_s3 + $0x8] sm:$0xff]  }
  0x68   :  { %4848 = vmatpush3.bf16.msra.mxu1 %v5952_v3  ;;  %4825 = vmatprep.subr.bf16.mxu0 %v5959_v4  ;;  %v5872_v3 = vld [vmem:[%s8117_s3] sm:$0xff]  }
  0x69   :  { %4849 = vmatprep.subr.bf16.mxu1 %v5965_v5 }
  0x6a   :  { %4794 = vmatmul.mubr.bf16.gmra.mxu0 %v6094_v25 }
  0x6b   :  { %4826 = vmatpush3.bf16.msra.mxu0 %v5959_v4  ;;  %4818 = vmatmul.mubr.bf16.gmra.mxu1 %v5856_v43  ;;  %v6362_v4 = vld [vmem:[%s8117_s3 + $0xb8] sm:$0xff]  }
  0x6c   :  { %4850 = vmatpush3.bf16.msra.mxu1 %v5965_v5  ;;  %4827 = vmatprep.subr.bf16.mxu0 %v5973_v6 }
  0x6d   :  { %4851 = vmatprep.subr.bf16.mxu1 %v5979_v7  ;;  %4837 = vmatprep.mubr.bf16.mxu0 %v5857_v44 }
  0x6e   :  { %4861 = vmatprep.mubr.bf16.mxu1 %v6111_v28 }
  0x6f   :  { %4828 = vmatpush3.bf16.msra.mxu0 %v5973_v6 }
  0x70   :  { %4852 = vmatpush3.bf16.msra.mxu1 %v5979_v7  ;;  %4829 = vmatprep.subr.bf16.mxu0 %v5987_v8 }
  0x71   :  { %4853 = vmatprep.subr.bf16.mxu1 %v5993_v9 }
  0x73   :  { %4830 = vmatpush3.bf16.msra.mxu0 %v5987_v8 }
  0x74   :  { %4854 = vmatpush3.bf16.msra.mxu1 %v5993_v9  ;;  %4831 = vmatprep.subr.bf16.mxu0 %v5998_v10 }
  0x75   :  { %4855 = vmatprep.subr.bf16.mxu1 %v6004_v11 }
  0x77   :  { %4832 = vmatpush3.bf16.msra.mxu0 %v5998_v10 }
  0x78   :  { %4856 = vmatpush3.bf16.msra.mxu1 %v6004_v11  ;;  %4833 = vmatprep.subr.bf16.mxu0 %v6024_v14 }
  0x79   :  { %4857 = vmatprep.subr.bf16.mxu1 %v6030_v15 }
  0x7b   :  { %4834 = vmatpush3.bf16.msra.mxu0 %v6024_v14 }
  0x7c   :  { %4858 = vmatpush3.bf16.msra.mxu1 %v6030_v15  ;;  %4835 = vmatprep.subr.bf16.mxu0 %v6038_v16 }
  0x7d   :  { %4859 = vmatprep.subr.bf16.mxu1 %v6044_v17 }
  0x7f   :  { %4836 = vmatpush3.bf16.msra.mxu0 %v6038_v16 }
  0x80   :  { %4860 = vmatpush3.bf16.msra.mxu1 %v6044_v17  ;;  %4869 = vmatprep.subr.bf16.mxu0 %v6052_v18 }
  0x81   :  { %4893 = vmatprep.subr.bf16.mxu1 %v5873_v49 }
  0x82   :  { %4838 = vmatmul.mubr.bf16.vlgmr.msra.gmra.mxu0 %v5858_v45 }
  0x83   :  { %4862 = vmatmul.mubr.bf16.vlgmr.msra.gmra.mxu1 %v6161_v34  ;;  %4870 = vmatpush3.bf16.msra.mxu0 %v6052_v18  ;;  %v6368_v34 = vld [vmem:[%s8118_s2] ss:$0 sm:$0xff] }
  0x84   :  { %4871 = vmatprep.subr.bf16.mxu0 %v6069_v21  ;;  %4841 = vmatprep.mubr.bf16.mxu0 %v5859_v46 }
  0x85   :  { %4865 = vmatprep.mubr.bf16.mxu1 %v6173_v36  ;;  %4894 = vmatpush3.bf16.msra.mxu1 %v5873_v49 }
  0x86   :  { %4895 = vmatprep.subr.bf16.mxu1 %v5874_v50 }
  0x87   :  { %4872 = vmatpush3.bf16.msra.mxu0 %v6069_v21 }
  0x88   :  { %4873 = vmatprep.subr.bf16.mxu0 %v6087_v24 }
  0x89   :  { %4896 = vmatpush3.bf16.msra.mxu1 %v5874_v50 }
  0x8a   :  { %4842 = vmatmul.mubr.bf16.gmra.mxu0 %v5860_v47  ;;  %4897 = vmatprep.subr.bf16.mxu1 %v5875_v51 }
  0x8b   :  { %4874 = vmatpush3.bf16.msra.mxu0 %v6087_v24  ;;  %4866 = vmatmul.mubr.bf16.gmra.mxu1 %v6187_v38 }
  0x8c   :  { %4875 = vmatprep.subr.bf16.mxu0 %v6105_v27  ;;  %4885 = vmatprep.mubr.bf16.mxu0 %v5861_v48 }
  0x8d   :  { %4898 = vmatpush3.bf16.msra.mxu1 %v5875_v51 }
  0x8e   :  { %4899 = vmatprep.subr.bf16.mxu1 %v5876_v52 }
  0x8f   :  { %4876 = vmatpush3.bf16.msra.mxu0 %v6105_v27 }
  0x90   :  { %4877 = vmatprep.subr.bf16.mxu0 %v6123_v30 }
  0x91   :  { %4900 = vmatpush3.bf16.msra.mxu1 %v5876_v52 }
  0x92   :  { %4901 = vmatprep.subr.bf16.mxu1 %v5877_v57 }
  0x93   :  { %4878 = vmatpush3.bf16.msra.mxu0 %v6123_v30 }
  0x94   :  { %4879 = vmatprep.subr.bf16.mxu0 %v6133_v31 }
  0x95   :  { %4902 = vmatpush3.bf16.msra.mxu1 %v5877_v57 }
  0x96   :  { %4903 = vmatprep.subr.bf16.mxu1 %v5878_v59 }
  0x97   :  { %4880 = vmatpush3.bf16.msra.mxu0 %v6133_v31 }
  0x98   :  { %4881 = vmatprep.subr.bf16.mxu0 %v6142_v32 }
  0x99   :  { %4904 = vmatpush3.bf16.msra.mxu1 %v5878_v59 }
  0x9a   :  { %4905 = vmatprep.subr.bf16.mxu1 %v5879_v62 }
  0x9b   :  { %4882 = vmatpush3.bf16.msra.mxu0 %v6142_v32 }
  0x9c   :  { %4883 = vmatprep.subr.bf16.mxu0 %v6151_v33 }
  0x9d   :  { %4906 = vmatpush3.bf16.msra.mxu1 %v5879_v62 }
  0x9e   :  { %4907 = vmatprep.subr.bf16.mxu1 %v5880_v0 }
  0x9f   :  { %4884 = vmatpush3.bf16.msra.mxu0 %v6151_v33 }
  0xa0   :  { %4917 = vmatprep.subr.bf16.mxu0 %v5865_v53 }
  0xa1   :  { %4908 = vmatpush3.bf16.msra.mxu1 %v5880_v0 }
  0xa2   :  { %4886 = vmatmul.mubr.bf16.vlgmr.msra.gmra.mxu0 %v5862_v54  ;;  %4941 = vmatprep.subr.bf16.mxu1 %v6362_v4 }
  0xa3   :  { %4889 = vmatprep.mubr.bf16.mxu0 %v5863_v55  ;;  %4918 = vmatpush3.bf16.msra.mxu0 %v5865_v53 }
  0xa4   :  { %4919 = vmatprep.subr.bf16.mxu0 %v5866_v56 }
  0xa7   :  { %4920 = vmatpush3.bf16.msra.mxu0 %v5866_v56 }
  0xa8   :  { %4921 = vmatprep.subr.bf16.mxu0 %v5867_v58 }
  0xaa   :  { %4890 = vmatmul.mubr.bf16.gmra.mxu0 %v5864_v60 }
  0xab   :  { %4922 = vmatpush3.bf16.msra.mxu0 %v5867_v58 }
  0xac   :  { %4923 = vmatprep.subr.bf16.mxu0 %v5868_v61 }
  0xaf   :  { %4924 = vmatpush3.bf16.msra.mxu0 %v5868_v61 }
  0xb0   :  { %4925 = vmatprep.subr.bf16.mxu0 %v5869_v63 }
  0xb3   :  { %4926 = vmatpush3.bf16.msra.mxu0 %v5869_v63 }
  0xb4   :  { %4927 = vmatprep.subr.bf16.mxu0 %v5870_v1 }
  0xb7   :  { %4928 = vmatpush3.bf16.msra.mxu0 %v5870_v1 }
  0xb8   :  { %4929 = vmatprep.subr.bf16.mxu0 %v5871_v2 }
  0xbb   :  { %4930 = vmatpush3.bf16.msra.mxu0 %v5871_v2 }
  0xbc   :  { %4931 = vmatprep.subr.bf16.mxu0 %v5872_v3 }
  0xbf   :  { %4932 = vmatpush3.bf16.msra.mxu0 %v5872_v3 }
  0xe2   :  { %v4695_v5 = vpop.f32.mrf.mxu0 }
  0xe3   :  { %v4719_v6 = vpop.f32.mrf.mxu1 }
  0xe4   :  { %v184_v7 = vpop.f32.mrf.mxu0  ;;  %v330_v26 = vadd.f32 %v4719_v6, %v4695_v5 }
  0xe5   :  { %v321_v8 = vpop.f32.mrf.mxu1 }
  0xe6   :  { %v4696_v9 = vpop.f32.mrf.mxu0  ;;  %v322_v24 = vadd.f32 %v321_v8, %v184_v7 }
  0xe7   :  { %v4720_v10 = vpop.f32.mrf.mxu1 }
  0xe8   :  { %v187_v11 = vpop.f32.mrf.mxu0  ;;  %v333_v25 = vadd.f32 %v4720_v10, %v4696_v9 }
  0xe9   :  { %v324_v12 = vpop.f32.mrf.mxu1 }
  0xea   :  { %v4699_v13 = vpop.f32.mrf.mxu0  ;;  %v325_v28 = vadd.f32 %v324_v12, %v187_v11 }
  0xeb   :  { %v4723_v14 = vpop.f32.mrf.mxu1 }
  0xec   :  { %v200_v15 = vpop.f32.mrf.mxu0  ;;  %v346_v46 = vadd.f32 %v4723_v14, %v4699_v13 }
  0xed   :  { %v337_v16 = vpop.f32.mrf.mxu1 }
  0xee   :  { %v4700_v17 = vpop.f32.mrf.mxu0  ;;  %v338_v43 = vadd.f32 %v337_v16, %v200_v15 }
  0xef   :  { %v4724_v18 = vpop.f32.mrf.mxu1 }
  0xf0   :  { %v203_v19 = vpop.f32.mrf.mxu0  ;;  %v349_v44 = vadd.f32 %v4724_v18, %v4700_v17 }
  0xf1   :  { %v340_v20 = vpop.f32.mrf.mxu1 }
  0xf2   :  { %v341_v49 = vadd.f32 %v340_v20, %v203_v19 }
 0x102   :  { %v4743_v21 = vpop.f32.mrf.mxu0 }
 0x103   :  { %v4767_v22 = vpop.f32.mrf.mxu1  ;;  %v517_v32 = vadd.f32 %v4743_v21, %v330_v26 }
 0x104   :  { %v484_v23 = vpop.f32.mrf.mxu0 }
 0x105   :  { %v515_v29 = vadd.f32 %v484_v23, %v322_v24  ;;  %v604_v31 = vpop.f32.mrf.mxu1  ;;  %v531_v41 = vadd.f32 %v6368_v34, %v517_v32 }
 0x106   :  { %v4744_v27 = vpop.f32.mrf.mxu0 }
 0x107   :  { %v518_v30 = vadd.f32 %v4744_v27, %v333_v25  ;;  %v529_v38 = vadd.f32 %v6368_v34, %v515_v29  ;;  %v4768_v40 = vpop.f32.mrf.mxu1 }
 0x108   :  { %v487_v33 = vpop.f32.mrf.mxu0 }
 0x109   :  { %v516_v35 = vadd.f32 %v487_v33, %v325_v28  ;;  %v532_v36 = vadd.f32 %v6368_v34, %v518_v30  ;;  %v607_v52 = vpop.f32.mrf.mxu1 }
 0x10a   :  { %v4747_v37 = vpop.f32.mrf.mxu0 }
 0x10b   :  { %v530_v39 = vadd.f32 %v6368_v34, %v516_v35  ;;  %v1092_v47 = vpack.c.bf16 %v532_v36, %v531_v41  ;;  %v521_v53 = vadd.f32 %v4747_v37, %v346_v46  ;;  %v4771_v59 = vpop.f32.mrf.mxu1  ;;  %v5883_v46 = vld [vmem:[%s8117_s3 + $0xa8] sm:$0xff]  }
 0x10c   :  { %v500_v42 = vpop.f32.mrf.mxu0 }
 0x10d   :  { %v1091_v45 = vpack.c.bf16 %v530_v39, %v529_v38  ;;  %v519_v50 = vadd.f32 %v500_v42, %v338_v43  ;;  %v535_v60 = vadd.f32 %v6368_v34, %v521_v53  ;;  %v620_v63 = vpop.f32.mrf.mxu1  ;;  %v5882_v38 = vld [vmem:[%s8117_s3 + $0xb0] sm:$0xff]  }
 0x10e   :  { %v4748_v48 = vpop.f32.mrf.mxu0 }
 0x10f   :  { %v522_v51 = vadd.f32 %v4748_v48, %v349_v44  ;;  %4933 = vmatprep.mubr.bf16.mxu0 %v1091_v45  ;;  %v533_v57 = vadd.f32 %v6368_v34, %v519_v50  ;;  %v4772_v0 = vpop.f32.mrf.mxu1  ;;  %v5884_v50 = vld [vmem:[%s8117_s3 + $0xa0] sm:$0xff]  }
 0x110   :  { %v503_v54 = vpop.f32.mrf.mxu0  ;;  %4934 = vmatmul.mubr.bf16.vlgmr.msra.gmra.mxu0 %v1092_v47 }
 0x111   :  { %v520_v55 = vadd.f32 %v503_v54, %v341_v49  ;;  %v536_v56 = vadd.f32 %v6368_v34, %v522_v51  ;;  %v623_v1 = vpop.f32.mrf.mxu1  ;;  %v5886_v51 = vld [vmem:[%s8117_s3 + $0x90] sm:$0xff]   ;;  %v5888_v54 = vld [vmem:[%s8117_s3 + $0x80] sm:$0xff]  }
 0x113   :  { %v534_v58 = vadd.f32 %v6368_v34, %v520_v55  ;;  %v1094_v62 = vpack.c.bf16 %v536_v56, %v535_v60 }
 0x115   :  { %v1093_v61 = vpack.c.bf16 %v534_v58, %v533_v57 }
 0x117   :  { %4937 = vmatprep.mubr.bf16.mxu0 %v1093_v61 }
 0x118   :  { %4938 = vmatmul.mubr.bf16.gmra.mxu0 %v1094_v62 }
 0x122   :  { %v4791_v2 = vpop.f32.mrf.mxu0 }
 0x123   :  { %v4815_v3 = vpop.f32.mrf.mxu1  ;;  %v678_v8 = vadd.f32 %v4791_v2, %v4767_v22 }
 0x124   :  { %v669_v5 = vpop.f32.mrf.mxu0 }
 0x125   :  { %v670_v6 = vadd.f32 %v669_v5, %v604_v31  ;;  %v767_v7 = vpop.f32.mrf.mxu1  ;;  %v800_v17 = vadd.f32 %v4815_v3, %v678_v8 }
 0x126   :  { %v4792_v9 = vpop.f32.mrf.mxu0 }
 0x127   :  { %v681_v10 = vadd.f32 %v4792_v9, %v4768_v40  ;;  %v4816_v11 = vpop.f32.mrf.mxu1  ;;  %v798_v13 = vadd.f32 %v767_v7, %v670_v6  ;;  %v808_v28 = vadd.f32 %v6368_v34, %v800_v17 }
 0x128   :  { %v672_v12 = vpop.f32.mrf.mxu0 }
 0x129   :  { %v673_v14 = vadd.f32 %v672_v12, %v607_v52  ;;  %v801_v15 = vadd.f32 %v4816_v11, %v681_v10  ;;  %v770_v16 = vpop.f32.mrf.mxu1  ;;  %v806_v25 = vadd.f32 %v6368_v34, %v798_v13  ;;  %v5887_v52 = vld [vmem:[%s8117_s3 + $0x88] sm:$0xff]  }
 0x12a   :  { %v4795_v18 = vpop.f32.mrf.mxu0 }
 0x12b   :  { %v694_v19 = vadd.f32 %v4795_v18, %v4771_v59  ;;  %v799_v20 = vadd.f32 %v770_v16, %v673_v14  ;;  %v4819_v21 = vpop.f32.mrf.mxu1  ;;  %v809_v23 = vadd.f32 %v6368_v34, %v801_v15 }
 0x12c   :  { %v685_v24 = vpop.f32.mrf.mxu0 }
 0x12d   :  { %v807_v22 = vadd.f32 %v6368_v34, %v799_v20  ;;  %v686_v26 = vadd.f32 %v685_v24, %v620_v63  ;;  %v783_v27 = vpop.f32.mrf.mxu1  ;;  %v804_v29 = vadd.f32 %v4819_v21, %v694_v19  ;;  %v1112_v36 = vpack.c.bf16 %v809_v23, %v808_v28 }
 0x12e   :  { %v4796_v30 = vpop.f32.mrf.mxu0 }
 0x12f   :  { %v697_v31 = vadd.f32 %v4796_v30, %v4772_v0  ;;  %v802_v32 = vadd.f32 %v783_v27, %v686_v26  ;;  %v4820_v33 = vpop.f32.mrf.mxu1  ;;  %v1111_v35 = vpack.c.bf16 %v807_v22, %v806_v25  ;;  %v812_v42 = vadd.f32 %v6368_v34, %v804_v29 }
 0x130   :  { %v688_v37 = vpop.f32.mrf.mxu0 }
 0x131   :  { %v689_v39 = vadd.f32 %v688_v37, %v623_v1  ;;  %v805_v40 = vadd.f32 %v4820_v33, %v697_v31  ;;  %4909 = vmatprep.mubr.bf16.mxu1 %v1111_v35  ;;  %v786_v41 = vpop.f32.mrf.mxu1  ;;  %v810_v43 = vadd.f32 %v6368_v34, %v802_v32 }
 0x132   :  { %4910 = vmatmul.mubr.bf16.vlgmr.msra.gmra.mxu1 %v1112_v36 }
 0x133   :  { %v813_v44 = vadd.f32 %v6368_v34, %v805_v40  ;;  %v803_v45 = vadd.f32 %v786_v41, %v689_v39  ;;  %4942 = vmatpush3.bf16.msra.mxu1 %v6362_v4  ;;  %v5885_v4 = vld [vmem:[%s8117_s3 + $0x98] sm:$0xff]  }
 0x134   :  { %4943 = vmatprep.subr.bf16.mxu1 %v5882_v38 }
 0x135   :  { %v811_v47 = vadd.f32 %v6368_v34, %v803_v45  ;;  %v1114_v48 = vpack.c.bf16 %v813_v44, %v812_v42  ;;  %v5889_v44 = vmov 0.0   ;;  %v1530_v45 = vld [vmem:[%s8119_s5 + $0x78] sm:$0xff] }
 0x136   :  { %4965 = vmatprep.subr.mxu0 %v5889_v44  ;;  %4997 = vmatprep.mubr.msk.f32.mxu0 %vm5890_vm0, %v5889_v44 }
 0x137   :  { %v1113_v49 = vpack.c.bf16 %v811_v47, %v810_v43  ;;  %4944 = vmatpush3.bf16.msra.mxu1 %v5882_v38  ;;  %v1528_v47 = vld [vmem:[%s8119_s5 + $0x68] sm:$0xff] }
 0x138   :  { %4945 = vmatprep.subr.bf16.mxu1 %v5883_v46 }
 0x139   :  { %4913 = vmatprep.mubr.bf16.mxu1 %v1113_v49  ;;  %v3895_v49 = vld [vmem:[%s8119_s5 + $0xe8] sm:$0xff] }
 0x13a   :  { %4914 = vmatmul.mubr.bf16.gmra.mxu1 %v1114_v48  ;;  %v3896_v48 = vld [vmem:[%s8119_s5 + $0xf0] sm:$0xff] }
 0x13b   :  { %4946 = vmatpush3.bf16.msra.mxu1 %v5883_v46  ;;  %v1529_v46 = vld [vmem:[%s8119_s5 + $0x70] sm:$0xff] }
 0x13c   :  { %4947 = vmatprep.subr.bf16.mxu1 %v5884_v50 }
 0x13f   :  { %4948 = vmatpush3.bf16.msra.mxu1 %v5884_v50  ;;  %v1527_v50 = vld [vmem:[%s8119_s5 + $0x60] sm:$0xff] }
 0x140   :  { %4949 = vmatprep.subr.bf16.mxu1 %v5885_v4 }
 0x142   :  { %v4839_v53 = vpop.f32.mrf.mxu0 }
 0x143   :  { %4950 = vmatpush3.bf16.msra.mxu1 %v5885_v4  ;;  %v4863_v57 = vpop.f32.mrf.mxu1  ;;  %v3894_v4 = vld [vmem:[%s8119_s5 + $0xe0] sm:$0xff] }
 0x144   :  { %4951 = vmatprep.subr.bf16.mxu1 %v5886_v51  ;;  %v881_v55 = vpop.f32.mrf.mxu0  ;;  %v955_v9 = vadd.f32 %v4863_v57, %v4839_v53  ;;  %v1525_v53 = vld [vmem:[%s8119_s5 + $0x50] sm:$0xff]  ;;  %v1523_v57 = vld [vmem:[%s8119_s5 + $0x40] sm:$0xff] }
 0x145   :  { %v946_v60 = vpop.f32.mrf.mxu1 }
 0x146   :  { %v4840_v56 = vpop.f32.mrf.mxu0  ;;  %v947_v7 = vadd.f32 %v946_v60, %v881_v55  ;;  %v1524_v55 = vld [vmem:[%s8119_s5 + $0x48] sm:$0xff]  ;;  %v3889_v60 = vld [vmem:[%s8119_s5 + $0xb8] sm:$0xff] }
 0x147   :  { %4952 = vmatpush3.bf16.msra.mxu1 %v5886_v51  ;;  %v4864_v62 = vpop.f32.mrf.mxu1  ;;  %v1526_v51 = vld [vmem:[%s8119_s5 + $0x58] sm:$0xff] }
 0x148   :  { %4953 = vmatprep.subr.bf16.mxu1 %v5887_v52  ;;  %v884_v58 = vpop.f32.mrf.mxu0  ;;  %v958_v8 = vadd.f32 %v4864_v62, %v4840_v56  ;;  %v3891_v56 = vld [vmem:[%s8119_s5 + $0xc8] sm:$0xff] }
 0x149   :  { %v949_v0 = vpop.f32.mrf.mxu1  ;;  %v1520_v62 = vld [vmem:[%s8119_s5 + $0x28] sm:$0xff] }
 0x14a   :  { %v4843_v59 = vpop.f32.mrf.mxu0  ;;  %v950_v11 = vadd.f32 %v949_v0, %v884_v58  ;;  %v3890_v58 = vld [vmem:[%s8119_s5 + $0xc0] sm:$0xff]  ;;  %v1518_v0 = vld [vmem:[%s8119_s5 + $0x18] sm:$0xff] }
 0x14b   :  { %4954 = vmatpush3.bf16.msra.mxu1 %v5887_v52  ;;  %v4867_v1 = vpop.f32.mrf.mxu1  ;;  %v3893_v52 = vld [vmem:[%s8119_s5 + $0xd8] sm:$0xff] }
 0x14c   :  { %4955 = vmatprep.subr.bf16.mxu1 %v5888_v54  ;;  %v897_v61 = vpop.f32.mrf.mxu0  ;;  %v971_v28 = vadd.f32 %v4867_v1, %v4843_v59  ;;  %v1522_v59 = vld [vmem:[%s8119_s5 + $0x38] sm:$0xff]  ;;  %v3888_v1 = vld [vmem:[%s8119_s5 + $0xb0] sm:$0xff] }
 0x14d   :  { %v962_v5 = vpop.f32.mrf.mxu1 }
 0x14e   :  { %v4844_v63 = vpop.f32.mrf.mxu0  ;;  %v963_v22 = vadd.f32 %v962_v5, %v897_v61  ;;  %v1521_v61 = vld [vmem:[%s8119_s5 + $0x30] sm:$0xff]  ;;  %v1516_v5 = vld [vmem:[%s8119_s5 + $0x8] sm:$0xff] }
 0x14f   :  { %4956 = vmatpush3.bf16.msra.mxu1 %v5888_v54  ;;  %v4868_v14 = vpop.f32.mrf.mxu1  ;;  %v3892_v54 = vld [vmem:[%s8119_s5 + $0xd0] sm:$0xff] }
 0x150   :  { %v900_v2 = vpop.f32.mrf.mxu0  ;;  %v974_v26 = vadd.f32 %v4868_v14, %v4844_v63  ;;  %5012 = vmatprep.subr.mxu1 %v5889_v44  ;;  %v1519_v63 = vld [vmem:[%s8119_s5 + $0x20] sm:$0xff] }
 0x151   :  { %v965_v23 = vpop.f32.mrf.mxu1 }
 0x152   :  { %v966_v31 = vadd.f32 %v965_v23, %v900_v2  ;;  %v1517_v2 = vld [vmem:[%s8119_s5 + $0x10] sm:$0xff] }
 0x162   :  { %v4887_v3 = vpop.f32.mrf.mxu0 }
 0x163   :  { %v1077_v15 = vadd.f32 %v4887_v3, %v955_v9  ;;  %v3887_v3 = vld [vmem:[%s8119_s5 + $0xa8] sm:$0xff]  ;;  %v3884_v9 = vld [vmem:[%s8119_s5 + $0x90] sm:$0xff] }
 0x164   :  { %v1044_v6 = vpop.f32.mrf.mxu0 }
 0x165   :  { %v1075_v12 = vadd.f32 %v1044_v6, %v947_v7  ;;  %v1085_v24 = vadd.f32 %v6368_v34, %v1077_v15  ;;  %v3886_v6 = vld [vmem:[%s8119_s5 + $0xa0] sm:$0xff] }
 0x166   :  { %v4888_v10 = vpop.f32.mrf.mxu0  ;;  %v1515_v7 = vld [vmem:[%s8119_s5] sm:$0xff] }
 0x167   :  { %v1078_v13 = vadd.f32 %v4888_v10, %v958_v8  ;;  %v1083_v20 = vadd.f32 %v6368_v34, %v1075_v12  ;;  %v3885_v8 = vld [vmem:[%s8119_s5 + $0x98] sm:$0xff]  ;;  %v3883_v10 = vld [vmem:[%s8119_s5 + $0x88] sm:$0xff] }
 0x168   :  { %v1047_v16 = vpop.f32.mrf.mxu0 }
 0x169   :  { %v1076_v17 = vadd.f32 %v1047_v16, %v950_v11  ;;  %v1086_v18 = vadd.f32 %v6368_v34, %v1078_v13  ;;  %v3882_v11 = vld [vmem:[%s8119_s5 + $0x80] sm:$0xff] }
 0x16a   :  { %v4891_v19 = vpop.f32.mrf.mxu0 }
 0x16b   :  { %v1084_v21 = vadd.f32 %v6368_v34, %v1076_v17  ;;  %v1359_v29 = vpack.c.bf16 %v1086_v18, %v1085_v24  ;;  %v1081_v35 = vadd.f32 %v4891_v19, %v971_v28 }
 0x16c   :  { %v1060_v25 = vpop.f32.mrf.mxu0 }
 0x16d   :  { %v1358_v27 = vpack.c.bf16 %v1084_v21, %v1083_v20  ;;  %v1079_v32 = vadd.f32 %v1060_v25, %v963_v22  ;;  %v1089_v41 = vadd.f32 %v6368_v34, %v1081_v35 }
 0x16e   :  { %v4892_v30 = vpop.f32.mrf.mxu0 }
 0x16f   :  { %v1082_v33 = vadd.f32 %v4892_v30, %v974_v26  ;;  %4957 = vmatprep.mubr.bf16.mxu1 %v1358_v27  ;;  %v1087_v39 = vadd.f32 %v6368_v34, %v1079_v32 }
 0x170   :  { %v1063_v36 = vpop.f32.mrf.mxu0  ;;  %4958 = vmatmul.mubr.bf16.vlgmr.msra.gmra.mxu1 %v1359_v29 }
 0x171   :  { %v1080_v37 = vadd.f32 %v1063_v36, %v966_v31  ;;  %v1090_v38 = vadd.f32 %v6368_v34, %v1082_v33  ;;  %5013 = vmatpush3.msra.mxu1 %v1530_v45  ;;  %v6553_v33 = vld [vmem:[%s8120_s4] ss:$0 sm:$0xff] }
 0x172   :  { %5014 = vmatprep.subr.mxu1 %v5889_v44 }
 0x173   :  { %v1088_v40 = vadd.f32 %v6368_v34, %v1080_v37  ;;  %v1361_v43 = vpack.c.bf16 %v1090_v38, %v1089_v41  ;;  %v3897_v34 = vld [vmem:[%s8119_s5 + $0xf8] sm:$0xff]  ;;  %5015 = vmatpush3.msra.mxu1 %v1529_v46 }
 0x174   :  { %4966 = vmatpush3.msra.mxu0 %v3897_v34  ;;  %5016 = vmatprep.subr.mxu1 %v5889_v44  ;;  %v3929_v38 = vld [vmem:[%s8119_s5 + $0x1f8] sm:$0xff] }
 0x175   :  { %v1360_v42 = vpack.c.bf16 %v1088_v40, %v1087_v39  ;;  %4967 = vmatprep.subr.mxu0 %v5889_v44  ;;  %5017 = vmatpush3.msra.mxu1 %v1528_v47  ;;  %v3927_v47 = vld [vmem:[%s8119_s5 + $0x1e8] sm:$0xff] }
 0x176   :  { %4968 = vmatpush3.msra.mxu0 %v3896_v48  ;;  %5018 = vmatprep.subr.mxu1 %v5889_v44 }
 0x177   :  { %4961 = vmatprep.mubr.bf16.mxu1 %v1360_v42  ;;  %4969 = vmatprep.subr.mxu0 %v5889_v44  ;;  %v3928_v42 = vld [vmem:[%s8119_s5 + $0x1f0] sm:$0xff] }
 0x178   :  { %4962 = vmatmul.mubr.bf16.gmra.mxu1 %v1361_v43  ;;  %4970 = vmatpush3.msra.mxu0 %v3895_v49 }
 0x179   :  { %5019 = vmatpush3.msra.mxu1 %v1527_v50  ;;  %4971 = vmatprep.subr.mxu0 %v5889_v44 }
 0x17a   :  { %5020 = vmatprep.subr.mxu1 %v5889_v44  ;;  %4972 = vmatpush3.msra.mxu0 %v3894_v4  ;;  %v3926_v4 = vld [vmem:[%s8119_s5 + $0x1e0] sm:$0xff] }
 0x17b   :  { %5021 = vmatpush3.msra.mxu1 %v1526_v51  ;;  %4973 = vmatprep.subr.mxu0 %v5889_v44 }
 0x17c   :  { %5022 = vmatprep.subr.mxu1 %v5889_v44  ;;  %4974 = vmatpush3.msra.mxu0 %v3893_v52 }
 0x17d   :  { %5023 = vmatpush3.msra.mxu1 %v1525_v53  ;;  %4975 = vmatprep.subr.mxu0 %v5889_v44 }
 0x17e   :  { %5024 = vmatprep.subr.mxu1 %v5889_v44  ;;  %4976 = vmatpush3.msra.mxu0 %v3892_v54  ;;  %v3913_v54 = vld [vmem:[%s8119_s5 + $0x178] sm:$0xff] }
 0x17f   :  { %5025 = vmatpush3.msra.mxu1 %v1524_v55  ;;  %4977 = vmatprep.subr.mxu0 %v5889_v44 }
 0x180   :  { %5026 = vmatprep.subr.mxu1 %v5889_v44  ;;  %4978 = vmatpush3.msra.mxu0 %v3891_v56 }
 0x181   :  { %5027 = vmatpush3.msra.mxu1 %v1523_v57  ;;  %4979 = vmatprep.subr.mxu0 %v5889_v44 }
 0x182   :  { %5028 = vmatprep.subr.mxu1 %v5889_v44  ;;  %4980 = vmatpush3.msra.mxu0 %v3890_v58 }
 0x183   :  { %5029 = vmatpush3.msra.mxu1 %v1522_v59  ;;  %4981 = vmatprep.subr.mxu0 %v5889_v44 }
 0x184   :  { %5030 = vmatprep.subr.mxu1 %v5889_v44  ;;  %4982 = vmatpush3.msra.mxu0 %v3889_v60 }
 0x185   :  { %5031 = vmatpush3.msra.mxu1 %v1521_v61  ;;  %4983 = vmatprep.subr.mxu0 %v5889_v44  ;;  %v3925_v61 = vld [vmem:[%s8119_s5 + $0x1d8] sm:$0xff] }
 0x186   :  { %5032 = vmatprep.subr.mxu1 %v5889_v44  ;;  %4984 = vmatpush3.msra.mxu0 %v3888_v1 }
 0x187   :  { %5033 = vmatpush3.msra.mxu1 %v1520_v62  ;;  %4985 = vmatprep.subr.mxu0 %v5889_v44  ;;  %v3912_v62 = vld [vmem:[%s8119_s5 + $0x170] sm:$0xff] }
 0x188   :  { %5034 = vmatprep.subr.mxu1 %v5889_v44  ;;  %4986 = vmatpush3.msra.mxu0 %v3887_v3 }
 0x189   :  { %5035 = vmatpush3.msra.mxu1 %v1519_v63  ;;  %4987 = vmatprep.subr.mxu0 %v5889_v44 }
 0x18a   :  { %5036 = vmatprep.subr.mxu1 %v5889_v44  ;;  %4988 = vmatpush3.msra.mxu0 %v3886_v6 }
 0x18b   :  { %5037 = vmatpush3.msra.mxu1 %v1518_v0  ;;  %4989 = vmatprep.subr.mxu0 %v5889_v44 }
 0x18c   :  { %5038 = vmatprep.subr.mxu1 %v5889_v44  ;;  %4990 = vmatpush3.msra.mxu0 %v3885_v8  ;;  %v3911_v8 = vld [vmem:[%s8119_s5 + $0x168] sm:$0xff] }
 0x18d   :  { %5039 = vmatpush3.msra.mxu1 %v1517_v2  ;;  %5044 = vmatprep.mubr.msk.f32.mxu1 %vm5890_vm0, %v5889_v44  ;;  %v3924_v2 = vld [vmem:[%s8119_s5 + $0x1d0] sm:$0xff] }
 0x18e   :  { %5040 = vmatprep.subr.mxu1 %v5889_v44  ;;  %4991 = vmatprep.subr.mxu0 %v5889_v44 }
 0x18f   :  { %5041 = vmatpush3.msra.mxu1 %v1516_v5  ;;  %4992 = vmatpush3.msra.mxu0 %v3884_v9 }
 0x190   :  { %5042 = vmatprep.subr.mxu1 %v5889_v44  ;;  %4993 = vmatprep.subr.mxu0 %v5889_v44 }
 0x191   :  { %5043 = vmatpush3.msra.mxu1 %v1515_v7  ;;  %4994 = vmatpush3.msra.mxu0 %v3883_v10  ;;  %v3923_v10 = vld [vmem:[%s8119_s5 + $0x1c8] sm:$0xff] }
 0x192   :  { %5106 = vmatprep.subr.mxu1 %v5889_v44  ;;  %4995 = vmatprep.subr.mxu0 %v5889_v44 }
 0x193   :  { %4996 = vmatpush3.msra.mxu0 %v3882_v11  ;;  %v3910_v11 = vld [vmem:[%s8119_s5 + $0x160] sm:$0xff] }
 0x194   :  { %5059 = vmatprep.subr.mxu0 %v5889_v44 }
 0x1d0   :  { %v4935_v12 = vpop.f32.mrf.mxu0 }
 0x1d2   :  { %v1327_v13 = vpop.f32.mrf.mxu0 }
 0x1d4   :  { %v4936_v14 = vpop.f32.mrf.mxu0 }
 0x1d6   :  { %v1330_v15 = vpop.f32.mrf.mxu0 }
 0x1d8   :  { %v4939_v18 = vpop.f32.mrf.mxu0 }
 0x1da   :  { %v1343_v21 = vpop.f32.mrf.mxu0 }
 0x1dc   :  { %v4940_v22 = vpop.f32.mrf.mxu0 }
 0x1de   :  { %v1346_v59 = vpop.f32.mrf.mxu0 }
 0x1f2   :  { %v4911_v16 = vpop.f32.mrf.mxu1 }
 0x1f3   :  { %v1336_v40 = vadd.f32 %v4935_v12, %v4911_v16  ;;  %v3909_v16 = vld [vmem:[%s8119_s5 + $0x158] sm:$0xff] }
 0x1f4   :  { %v1214_v17 = vpop.f32.mrf.mxu1 }
 0x1f5   :  { %v1328_v30 = vadd.f32 %v1327_v13, %v1214_v17 }
 0x1f6   :  { %v4912_v19 = vpop.f32.mrf.mxu1 }
 0x1f7   :  { %v1339_v49 = vadd.f32 %v4936_v14, %v4912_v19 }
 0x1f8   :  { %v1217_v20 = vpop.f32.mrf.mxu1 }
 0x1f9   :  { %v1331_v36 = vadd.f32 %v1330_v15, %v1217_v20  ;;  %v3922_v15 = vld [vmem:[%s8119_s5 + $0x1c0] sm:$0xff] }
 0x1fa   :  { %v4915_v23 = vpop.f32.mrf.mxu1 }
 0x1fb   :  { %v1352_v24 = vadd.f32 %v4939_v18, %v4915_v23  ;;  %v3921_v23 = vld [vmem:[%s8119_s5 + $0x1b8] sm:$0xff] }
 0x1fc   :  { %v1230_v25 = vpop.f32.mrf.mxu1 }
 0x1fd   :  { %v1344_v1 = vadd.f32 %v1343_v21, %v1230_v25 }
 0x1fe   :  { %v4916_v26 = vpop.f32.mrf.mxu1 }
 0x1ff   :  { %v1355_v27 = vadd.f32 %v4940_v22, %v4916_v26 }
 0x200   :  { %v1233_v28 = vpop.f32.mrf.mxu1 }
 0x201   :  { %v1347_v63 = vadd.f32 %v1346_v59, %v1233_v28  ;;  %v3903_v59 = vld [vmem:[%s8119_s5 + $0x128] sm:$0xff] }
 0x230   :  { %v4959_v29 = vpop.f32.mrf.mxu1 }
 0x231   :  { %v1494_v45 = vadd.f32 %v4959_v29, %v1336_v40 }
 0x232   :  { %v1461_v31 = vpop.f32.mrf.mxu1 }
 0x233   :  { %v1492_v32 = vadd.f32 %v1461_v31, %v1328_v30  ;;  %v6590_v55 = vadd.f32 %v6553_v33, %v1494_v45  ;;  %v3920_v31 = vld [vmem:[%s8119_s5 + $0x1b0] sm:$0xff] }
 0x234   :  { %v4960_v35 = vpop.f32.mrf.mxu1 }
 0x235   :  { %v6556_v37 = vadd.f32 %v6553_v33, %v1492_v32  ;;  %v1495_v56 = vadd.f32 %v4960_v35, %v1339_v49  ;;  %v1558_v6 = vrot.slane %v6590_v55, 1 }
 0x236   :  { %v1464_v39 = vpop.f32.mrf.mxu1 }
 0x237   :  { %v1493_v41 = vadd.f32 %v1464_v39, %v1331_v36  ;;  %5045 = vmatmul.mubr.f32.vlgmr.msra.gmra.mxu1 %v6556_v37  ;;  %v1555_v51 = vrot.slane %v6556_v37, 1  ;;  %v6610_v3 = vadd.f32 %v6553_v33, %v1495_v56 }
 0x238   :  { %5107 = vmatpush3.msra.mxu1 %v3929_v38  ;;  %v4963_v43 = vpop.f32.mrf.mxu1  ;;  %5047 = vmatprep.mubr.msk.f32.mxu1 %vm5890_vm0, %v5889_v44 }
 0x239   :  { %v6568_v46 = vadd.f32 %v6553_v33, %v1493_v41  ;;  %v1498_v34 = vadd.f32 %v4963_v43, %v1352_v24  ;;  %5108 = vmatprep.subr.mxu1 %v5889_v44  ;;  %v1560_v13 = vrot.slane %v6610_v3, 1  ;;  %v3908_v24 = vld [vmem:[%s8119_s5 + $0x150] sm:$0xff]  ;;  %v3907_v41 = vld [vmem:[%s8119_s5 + $0x148] sm:$0xff] }
 0x23a   :  { %5109 = vmatpush3.msra.mxu1 %v3928_v42  ;;  %v1477_v48 = vpop.f32.mrf.mxu1  ;;  %v3919_v42 = vld [vmem:[%s8119_s5 + $0x1a8] sm:$0xff] }
 0x23b   :  { %v6575_v50 = vadd.f32 %v6553_v33, %v1498_v34  ;;  %5110 = vmatprep.subr.mxu1 %v5889_v44  ;;  %5048 = vmatmul.mubr.f32.gmra.mxu1 %v6568_v46  ;;  %v1556_v52 = vrot.slane %v6568_v46, 1  ;;  %v1496_v7 = vadd.f32 %v1477_v48, %v1344_v1  ;;  %v6653_v17 = vsel %vm1554_vm1, %v1558_v6, %v1560_v13 }
 0x23c   :  { %5111 = vmatpush3.msra.mxu1 %v3927_v47  ;;  %v4964_v53 = vpop.f32.mrf.mxu1  ;;  %5050 = vmatprep.mubr.msk.f32.mxu1 %vm5890_vm0, %v5889_v44  ;;  %v1898_v1 = vrot.slane %v6556_v37, 3 }
 0x23d   :  { %v1499_v57 = vadd.f32 %v4964_v53, %v1355_v27  ;;  %5112 = vmatprep.subr.mxu1 %v5889_v44  ;;  %v1557_v58 = vsel %vm1554_vm1, %v1555_v51, %v1556_v52  ;;  %v6621_v9 = vsel %vm1554_vm1, %v1556_v52, %v1558_v6  ;;  %v6638_v14 = vadd.f32 %v6553_v33, %v1496_v7  ;;  %v3918_v52 = vld [vmem:[%s8119_s5 + $0x1a0] sm:$0xff]  ;;  %v3905_v53 = vld [vmem:[%s8119_s5 + $0x138] sm:$0xff]  ;;  %v3900_v6 = vld [vmem:[%s8119_s5 + $0x110] sm:$0xff] }
 0x23e   :  { %5113 = vmatpush3.msra.mxu1 %v3926_v4  ;;  %v1480_v60 = vpop.f32.mrf.mxu1  ;;  %4998 = vmatmul.mubr.f32.vlgmr.msra.gmra.mxu0 %v1557_v58  ;;  %v2655_v28 = vrot.slane %v6575_v50, 1  ;;  %v2885_v29 = vrot.slane %v6575_v50, 3  ;;  %v2770_v30 = vrot.slane %v6575_v50, 2  ;;  %v3000_v35 = vrot.slane %v6575_v50, 4  ;;  %v3906_v4 = vld [vmem:[%s8119_s5 + $0x140] sm:$0xff]  ;;  %v3916_v58 = vld [vmem:[%s8119_s5 + $0x190] sm:$0xff] }
 0x23f   :  { %v6601_v0 = vadd.f32 %v6553_v33, %v1499_v57  ;;  %5060 = vmatpush3.msra.mxu0 %v3913_v54  ;;  %5114 = vmatprep.subr.mxu1 %v5889_v44  ;;  %v1497_v5 = vadd.f32 %v1480_v60, %v1347_v63  ;;  %v1562_v25 = vrot.slane %v6638_v14, 1  ;;  %v3345_v40 = vrot.slane %v6575_v50, 7  ;;  %v3917_v54 = vld [vmem:[%s8119_s5 + $0x198] sm:$0xff]  ;;  %v3904_v57 = vld [vmem:[%s8119_s5 + $0x130] sm:$0xff]  ;;  %v3915_v60 = vld [vmem:[%s8119_s5 + $0x188] sm:$0xff] }
 0x240   :  { %5051 = vmatmul.mubr.f32.gmra.mxu1 %v6590_v55  ;;  %5061 = vmatprep.subr.mxu0 %v5889_v44  ;;  %v3230_v34 = vrot.slane %v6575_v50, 6  ;;  %v1899_v63 = vrot.slane %v6568_v46, 3  ;;  %v3960_v7 = vld [vmem:[%s8119_s5 + $0x2f0] sm:$0xff] }
 0x241   :  { %5115 = vmatpush3.msra.mxu1 %v3925_v61  ;;  %5062 = vmatpush3.msra.mxu0 %v3912_v62  ;;  %v6633_v12 = vadd.f32 %v6553_v33, %v1497_v5  ;;  %v3573_v21 = vrot.slane %v6601_v0, 1  ;;  %v3115_v33 = vrot.slane %v6575_v50, 5  ;;  %v6723_v48 = vsel %vm1554_vm1, %v1560_v13, %v1562_v25  ;;  %v3902_v61 = vld [vmem:[%s8119_s5 + $0x120] sm:$0xff]  ;;  %v3901_v0 = vld [vmem:[%s8119_s5 + $0x118] sm:$0xff]  ;;  %v3959_v13 = vld [vmem:[%s8119_s5 + $0x2e8] sm:$0xff] }
 0x242   :  { %5116 = vmatprep.subr.mxu1 %v5889_v44  ;;  %5000 = vmatprep.mubr.msk.f32.mxu0 %vm5890_vm0, %v5889_v44  ;;  %v3914_v62 = vld [vmem:[%s8119_s5 + $0x180] sm:$0xff]  ;;  %v3961_v5 = vld [vmem:[%s8119_s5 + $0x2f8] sm:$0xff] }
 0x243   :  { %5063 = vmatprep.subr.mxu0 %v5889_v44  ;;  %5117 = vmatpush3.msra.mxu1 %v3924_v2  ;;  %v1564_v18 = vrot.slane %v6633_v12, 1  ;;  %v1907_v19 = vrot.slane %v6633_v12, 3  ;;  %v1778_v20 = vrot.slane %v6633_v12, 2  ;;  %v2165_v22 = vrot.slane %v6633_v12, 5 }
 0x244   :  { %5001 = vmatmul.mubr.f32.gmra.mxu0 %v6621_v9  ;;  %5053 = vmatprep.mubr.msk.f32.mxu1 %vm5890_vm0, %v5889_v44  ;;  %v2036_v26 = vrot.slane %v6633_v12, 4  ;;  %v2423_v27 = vrot.slane %v6633_v12, 7  ;;  %v2294_v32 = vrot.slane %v6633_v12, 6  ;;  %v6719_v47 = vsel %vm1554_vm1, %v2655_v28, %v3573_v21 }
 0x245   :  { %5064 = vmatpush3.msra.mxu0 %v3911_v8  ;;  %5118 = vmatprep.subr.mxu1 %v5889_v44  ;;  %v6685_v36 = vsel %vm1554_vm1, %v1564_v18, %v2655_v28  ;;  %v6690_v38 = vsel %vm1897_vm2, %v1907_v19, %v2885_v29  ;;  %v6695_v39 = vsel %vm1768_vm3, %v1778_v20, %v2770_v30  ;;  %v3899_v8 = vld [vmem:[%s8119_s5 + $0x108] sm:$0xff]  ;;  %v1903_v21 = vrot.slane %v6610_v3, 3  ;;  %v3957_v29 = vld [vmem:[%s8119_s5 + $0x2d8] sm:$0xff]  ;;  %v3944_v30 = vld [vmem:[%s8119_s5 + $0x270] sm:$0xff] }
 0x246   :  { %5054 = vmatmul.mubr.f32.gmra.mxu1 %v6610_v3  ;;  %5065 = vmatprep.subr.mxu0 %v5889_v44  ;;  %v6710_v43 = vsel %vm2155_vm4, %v2165_v22, %v3115_v33  ;;  %v6715_v45 = vsel %vm2026_vm5, %v2036_v26, %v3000_v35  ;;  %v6728_v49 = vsel %vm2413_vm6, %v2423_v27, %v3345_v40  ;;  %v1905_v33 = vrot.slane %v6638_v14, 3  ;;  %v3956_v35 = vld [vmem:[%s8119_s5 + $0x2d0] sm:$0xff] }
 0x247   :  { %5119 = vmatpush3.msra.mxu1 %v3923_v10  ;;  %5066 = vmatpush3.msra.mxu0 %v3910_v11  ;;  %v6738_v51 = vsel %vm2284_vm7, %v2294_v32, %v3230_v34  ;;  %v6755_v56 = vsel %vm1554_vm1, %v1562_v25, %v1564_v18  ;;  %v1900_v2 = vsel %vm1897_vm2, %v1898_v1, %v1899_v63  ;;  %v1901_v10 = vrot.slane %v6590_v55, 3  ;;  %v3945_v25 = vld [vmem:[%s8119_s5 + $0x278] sm:$0xff]  ;;  %v3955_v34 = vld [vmem:[%s8119_s5 + $0x2c8] sm:$0xff]  ;;  %v3938_v1 = vld [vmem:[%s8119_s5 + $0x240] sm:$0xff] }
 0x248   :  { %5120 = vmatprep.subr.mxu1 %v5889_v44  ;;  %5003 = vmatprep.mubr.msk.f32.mxu0 %vm5890_vm0, %v5889_v44  ;;  %v1769_v18 = vrot.slane %v6556_v37, 2 }
 0x249   :  { %5067 = vmatprep.subr.mxu0 %v5889_v44  ;;  %5121 = vmatpush3.msra.mxu1 %v3922_v15  ;;  %v6812_v11 = vsel %vm1897_vm2, %v1899_v63, %v1901_v10  ;;  %v3898_v15 = vld [vmem:[%s8119_s5 + $0x100] sm:$0xff]  ;;  %v6840_v28 = vsel %vm1897_vm2, %v1901_v10, %v1903_v21  ;;  %v3935_v10 = vld [vmem:[%s8119_s5 + $0x228] sm:$0xff] }
 0x24a   :  { %5004 = vmatmul.mubr.f32.gmra.mxu0 %v6653_v17  ;;  %5056 = vmatprep.mubr.msk.f32.mxu1 %vm5890_vm0, %v5889_v44 }
 0x24b   :  { %5068 = vmatpush3.msra.mxu0 %v3909_v16  ;;  %5122 = vmatprep.subr.mxu1 %v5889_v44  ;;  %v1770_v16 = vrot.slane %v6568_v46, 2 }
 0x24c   :  { %5057 = vmatmul.mubr.f32.gmra.mxu1 %v6638_v14  ;;  %5069 = vmatprep.subr.mxu0 %v5889_v44 }
 0x24d   :  { %5123 = vmatpush3.msra.mxu1 %v3921_v23  ;;  %5070 = vmatpush3.msra.mxu0 %v3908_v24  ;;  %v3958_v23 = vld [vmem:[%s8119_s5 + $0x2e0] sm:$0xff]  ;;  %v1771_v24 = vsel %vm1768_vm3, %v1769_v18, %v1770_v16 }
 0x24e   :  { %5124 = vmatprep.subr.mxu1 %v5889_v44  ;;  %5006 = vmatprep.mubr.msk.f32.mxu0 %vm5890_vm0, %v5889_v44  ;;  %v3946_v18 = vld [vmem:[%s8119_s5 + $0x280] sm:$0xff] }
 0x24f   :  { %5071 = vmatprep.subr.mxu0 %v5889_v44  ;;  %5125 = vmatpush3.msra.mxu1 %v3920_v31  ;;  %v1772_v31 = vrot.slane %v6590_v55, 2 }
 0x250   :  { %5007 = vmatmul.mubr.f32.gmra.mxu0 %v6723_v48  ;;  %5126 = vmatprep.subr.mxu1 %v5889_v44 }
 0x251   :  { %5072 = vmatpush3.msra.mxu0 %v3907_v41  ;;  %5127 = vmatpush3.msra.mxu1 %v3919_v42  ;;  %v6860_v40 = vsel %vm1768_vm3, %v1770_v16, %v1772_v31  ;;  %v3943_v41 = vld [vmem:[%s8119_s5 + $0x268] sm:$0xff]  ;;  %v6870_v42 = vsel %vm1897_vm2, %v1903_v21, %v1905_v33  ;;  %v2157_v16 = vrot.slane %v6568_v46, 5  ;;  %v3933_v21 = vld [vmem:[%s8119_s5 + $0x218] sm:$0xff] }
 0x252   :  { %5073 = vmatprep.subr.mxu0 %v5889_v44  ;;  %5128 = vmatprep.subr.mxu1 %v5889_v44 }
 0x253   :  { %5074 = vmatpush3.msra.mxu0 %v3906_v4  ;;  %5009 = vmatprep.mubr.msk.f32.mxu0 %vm5890_vm0, %v5889_v44  ;;  %v1774_v4 = vrot.slane %v6610_v3, 2 }
 0x254   :  { %5075 = vmatprep.subr.mxu0 %v5889_v44  ;;  %5129 = vmatpush3.msra.mxu1 %v3918_v52  ;;  %v3942_v52 = vld [vmem:[%s8119_s5 + $0x260] sm:$0xff] }
 0x255   :  { %5010 = vmatmul.mubr.f32.gmra.mxu0 %v6755_v56  ;;  %5130 = vmatprep.subr.mxu1 %v5889_v44 }
 0x256   :  { %5076 = vmatpush3.msra.mxu0 %v3905_v53  ;;  %5131 = vmatpush3.msra.mxu1 %v3917_v54  ;;  %v3954_v53 = vld [vmem:[%s8119_s5 + $0x2c0] sm:$0xff]  ;;  %v6889_v54 = vsel %vm1768_vm3, %v1772_v31, %v1774_v4  ;;  %v3931_v31 = vld [vmem:[%s8119_s5 + $0x208] sm:$0xff] }
 0x257   :  { %5077 = vmatprep.subr.mxu0 %v5889_v44  ;;  %5132 = vmatprep.subr.mxu1 %v5889_v44 }
 0x258   :  { %5078 = vmatpush3.msra.mxu0 %v3904_v57  ;;  %5133 = vmatpush3.msra.mxu1 %v3916_v58  ;;  %v3941_v57 = vld [vmem:[%s8119_s5 + $0x258] sm:$0xff]  ;;  %v6901_v58 = vsel %vm1897_vm2, %v1905_v33, %v1907_v19  ;;  %v3952_v19 = vld [vmem:[%s8119_s5 + $0x2b0] sm:$0xff]  ;;  %v2159_v33 = vrot.slane %v6590_v55, 5 }
 0x259   :  { %5079 = vmatprep.subr.mxu0 %v5889_v44  ;;  %5134 = vmatprep.subr.mxu1 %v5889_v44 }
 0x25a   :  { %5080 = vmatpush3.msra.mxu0 %v3903_v59  ;;  %5135 = vmatpush3.msra.mxu1 %v3915_v60  ;;  %v3953_v59 = vld [vmem:[%s8119_s5 + $0x2b8] sm:$0xff]  ;;  %v1776_v60 = vrot.slane %v6638_v14, 2 }
 0x25b   :  { %5081 = vmatprep.subr.mxu0 %v5889_v44  ;;  %5136 = vmatprep.subr.mxu1 %v5889_v44 }
 0x25c   :  { %5082 = vmatpush3.msra.mxu0 %v3902_v61  ;;  %5137 = vmatpush3.msra.mxu1 %v3914_v62  ;;  %v3940_v61 = vld [vmem:[%s8119_s5 + $0x250] sm:$0xff]  ;;  %v3939_v62 = vld [vmem:[%s8119_s5 + $0x248] sm:$0xff]  ;;  %v6923_v63 = vsel %vm1768_vm3, %v1774_v4, %v1776_v60  ;;  %v2028_v4 = vrot.slane %v6568_v46, 4 }
 0x25d   :  { %5083 = vmatprep.subr.mxu0 %v5889_v44  ;;  %5138 = vmatprep.mubr.msk.f32.mxu1 %vm5890_vm0, %v5889_v44 }
 0x25e   :  { %5084 = vmatpush3.msra.mxu0 %v3901_v0  ;;  %5139 = vmatmul.mubr.f32.vlgmr.msra.gmra.mxu1 %v1900_v2  ;;  %v3951_v0 = vld [vmem:[%s8119_s5 + $0x2a8] sm:$0xff]  ;;  %v3950_v2 = vld [vmem:[%s8119_s5 + $0x2a0] sm:$0xff] }
 0x25f   :  { %5200 = vmatprep.subr.mxu1 %v5889_v44  ;;  %5085 = vmatprep.subr.mxu0 %v5889_v44 }
 0x260   :  { %5201 = vmatpush3.msra.mxu1 %v3961_v5  ;;  %5086 = vmatpush3.msra.mxu0 %v3900_v6  ;;  %v3937_v5 = vld [vmem:[%s8119_s5 + $0x238] sm:$0xff]  ;;  %v6947_v6 = vsel %vm1768_vm3, %v1776_v60, %v1778_v20  ;;  %v3948_v20 = vld [vmem:[%s8119_s5 + $0x290] sm:$0xff] }
 0x261   :  { %5202 = vmatprep.subr.mxu1 %v5889_v44  ;;  %5087 = vmatprep.subr.mxu0 %v5889_v44  ;;  %v3977_v60 = vld [vmem:[%s8119_s5 + $0x378] sm:$0xff] }
 0x262   :  { %5141 = vmatprep.mubr.msk.f32.mxu1 %vm5890_vm0, %v5889_v44  ;;  %5203 = vmatpush3.msra.mxu1 %v3960_v7  ;;  %v3949_v7 = vld [vmem:[%s8119_s5 + $0x298] sm:$0xff] }
 0x263   :  { %5088 = vmatpush3.msra.mxu0 %v3899_v8  ;;  %5142 = vmatmul.mubr.f32.gmra.mxu1 %v6812_v11  ;;  %v3936_v8 = vld [vmem:[%s8119_s5 + $0x230] sm:$0xff] }
 0x264   :  { %5204 = vmatprep.subr.mxu1 %v5889_v44  ;;  %5089 = vmatprep.subr.mxu0 %v5889_v44 }
 0x265   :  { %5205 = vmatpush3.msra.mxu1 %v3959_v13  ;;  %5090 = vmatpush3.msra.mxu0 %v3898_v15  ;;  %v3947_v13 = vld [vmem:[%s8119_s5 + $0x288] sm:$0xff]  ;;  %v3934_v15 = vld [vmem:[%s8119_s5 + $0x220] sm:$0xff] }
 0x266   :  { %5091 = vmatprep.mubr.msk.f32.mxu0 %vm5890_vm0, %v5889_v44  ;;  %5206 = vmatprep.subr.mxu1 %v5889_v44 }
 0x267   :  { %5092 = vmatmul.mubr.f32.vlgmr.msra.gmra.mxu0 %v1771_v24  ;;  %5144 = vmatprep.mubr.msk.f32.mxu1 %vm5890_vm0, %v5889_v44 }
 0x268   :  { %5153 = vmatprep.subr.mxu0 %v5889_v44  ;;  %5207 = vmatpush3.msra.mxu1 %v3958_v23  ;;  %v2156_v23 = vrot.slane %v6556_v37, 5 }
 0x269   :  { %5145 = vmatmul.mubr.f32.gmra.mxu1 %v6840_v28  ;;  %5154 = vmatpush3.msra.mxu0 %v3945_v25  ;;  %v3993_v25 = vld [vmem:[%s8119_s5 + $0x3f8] sm:$0xff] }
 0x26a   :  { %5208 = vmatprep.subr.mxu1 %v5889_v44  ;;  %5155 = vmatprep.subr.mxu0 %v5889_v44  ;;  %v2158_v24 = vsel %vm2155_vm4, %v2156_v23, %v2157_v16  ;;  %v3985_v23 = vld [vmem:[%s8119_s5 + $0x3b8] sm:$0xff] }
 0x26b   :  { %5209 = vmatpush3.msra.mxu1 %v3957_v29  ;;  %5094 = vmatprep.mubr.msk.f32.mxu0 %vm5890_vm0, %v5889_v44  ;;  %v3932_v29 = vld [vmem:[%s8119_s5 + $0x210] sm:$0xff] }
 0x26c   :  { %5156 = vmatpush3.msra.mxu0 %v3944_v30  ;;  %5210 = vmatprep.subr.mxu1 %v5889_v44  ;;  %v3992_v30 = vld [vmem:[%s8119_s5 + $0x3f0] sm:$0xff] }
 0x26d   :  { %5095 = vmatmul.mubr.f32.gmra.mxu0 %v6860_v40  ;;  %5147 = vmatprep.mubr.msk.f32.mxu1 %vm5890_vm0, %v5889_v44 }
 0x26e   :  { %5157 = vmatprep.subr.mxu0 %v5889_v44  ;;  %5211 = vmatpush3.msra.mxu1 %v3956_v35  ;;  %v7008_v35 = vsel %vm2155_vm4, %v2157_v16, %v2159_v33 }
 0x26f   :  { %5148 = vmatmul.mubr.f32.gmra.mxu1 %v6870_v42  ;;  %5158 = vmatpush3.msra.mxu0 %v3943_v41  ;;  %v3991_v41 = vld [vmem:[%s8119_s5 + $0x3e8] sm:$0xff] }
 0x270   :  { %5212 = vmatprep.subr.mxu1 %v5889_v44  ;;  %5159 = vmatprep.subr.mxu0 %v5889_v44 }
 0x271   :  { %5213 = vmatpush3.msra.mxu1 %v3955_v34  ;;  %5097 = vmatprep.mubr.msk.f32.mxu0 %vm5890_vm0, %v5889_v44  ;;  %v3930_v34 = vld [vmem:[%s8119_s5 + $0x200] sm:$0xff] }
 0x272   :  { %5160 = vmatpush3.msra.mxu0 %v3942_v52  ;;  %5214 = vmatprep.subr.mxu1 %v5889_v44  ;;  %v2027_v52 = vrot.slane %v6556_v37, 4 }
 0x273   :  { %5098 = vmatmul.mubr.f32.gmra.mxu0 %v6889_v54  ;;  %5150 = vmatprep.mubr.msk.f32.mxu1 %vm5890_vm0, %v5889_v44 }
 0x274   :  { %5161 = vmatprep.subr.mxu0 %v5889_v44  ;;  %5215 = vmatpush3.msra.mxu1 %v3954_v53  ;;  %v2161_v53 = vrot.slane %v6610_v3, 5 }
 0x275   :  { %5151 = vmatmul.mubr.f32.gmra.mxu1 %v6901_v58  ;;  %5162 = vmatpush3.msra.mxu0 %v3941_v57  ;;  %v3990_v57 = vld [vmem:[%s8119_s5 + $0x3e0] sm:$0xff] }
 0x276   :  { %5216 = vmatprep.subr.mxu1 %v5889_v44  ;;  %5163 = vmatprep.subr.mxu0 %v5889_v44 }
 0x277   :  { %5217 = vmatpush3.msra.mxu1 %v3953_v59  ;;  %5100 = vmatprep.mubr.msk.f32.mxu0 %vm5890_vm0, %v5889_v44  ;;  %v2029_v59 = vsel %vm2026_vm5, %v2027_v52, %v2028_v4  ;;  %v3981_v52 = vld [vmem:[%s8119_s5 + $0x398] sm:$0xff] }
 0x278   :  { %5164 = vmatpush3.msra.mxu0 %v3940_v61  ;;  %5218 = vmatprep.subr.mxu1 %v5889_v44  ;;  %v7036_v61 = vsel %vm2155_vm4, %v2159_v33, %v2161_v53  ;;  %v3970_v33 = vld [vmem:[%s8119_s5 + $0x340] sm:$0xff] }
 0x279   :  { %5101 = vmatmul.mubr.f32.gmra.mxu0 %v6923_v63  ;;  %5165 = vmatprep.subr.mxu0 %v5889_v44 }
 0x27a   :  { %5219 = vmatpush3.msra.mxu1 %v3952_v19  ;;  %5166 = vmatpush3.msra.mxu0 %v3939_v62  ;;  %v3989_v19 = vld [vmem:[%s8119_s5 + $0x3d8] sm:$0xff]  ;;  %v3976_v62 = vld [vmem:[%s8119_s5 + $0x370] sm:$0xff] }
 0x27b   :  { %5220 = vmatprep.subr.mxu1 %v5889_v44  ;;  %5167 = vmatprep.subr.mxu0 %v5889_v44 }
 0x27c   :  { %5221 = vmatpush3.msra.mxu1 %v3951_v0  ;;  %5103 = vmatprep.mubr.msk.f32.mxu0 %vm5890_vm0, %v5889_v44  ;;  %v2030_v0 = vrot.slane %v6590_v55, 4 }
 0x27d   :  { %5168 = vmatpush3.msra.mxu0 %v3938_v1  ;;  %5222 = vmatprep.subr.mxu1 %v5889_v44  ;;  %v2163_v1 = vrot.slane %v6638_v14, 5 }
 0x27e   :  { %5104 = vmatmul.mubr.f32.gmra.mxu0 %v6947_v6  ;;  %5169 = vmatprep.subr.mxu0 %v5889_v44 }
 0x27f   :  { %5223 = vmatpush3.msra.mxu1 %v3950_v2  ;;  %5170 = vmatpush3.msra.mxu0 %v3937_v5  ;;  %v3988_v2 = vld [vmem:[%s8119_s5 + $0x3d0] sm:$0xff]  ;;  %v7056_v5 = vsel %vm2026_vm5, %v2028_v4, %v2030_v0 }
 0x280   :  { %5224 = vmatprep.subr.mxu1 %v5889_v44  ;;  %5171 = vmatprep.subr.mxu0 %v5889_v44 }
 0x281   :  { %5225 = vmatpush3.msra.mxu1 %v3949_v7  ;;  %5172 = vmatpush3.msra.mxu0 %v3936_v8  ;;  %v3975_v7 = vld [vmem:[%s8119_s5 + $0x368] sm:$0xff]  ;;  %v7066_v8 = vsel %vm2155_vm4, %v2161_v53, %v2163_v1  ;;  %v3968_v53 = vld [vmem:[%s8119_s5 + $0x330] sm:$0xff] }
 0x282   :  { %5226 = vmatprep.subr.mxu1 %v5889_v44  ;;  %5173 = vmatprep.subr.mxu0 %v5889_v44 }
 0x283   :  { %5227 = vmatpush3.msra.mxu1 %v3948_v20  ;;  %5174 = vmatpush3.msra.mxu0 %v3935_v10  ;;  %v3987_v20 = vld [vmem:[%s8119_s5 + $0x3c8] sm:$0xff]  ;;  %v2032_v10 = vrot.slane %v6610_v3, 4 }
 0x284   :  { %5228 = vmatprep.subr.mxu1 %v5889_v44  ;;  %5175 = vmatprep.subr.mxu0 %v5889_v44 }
 0x285   :  { %5229 = vmatpush3.msra.mxu1 %v3947_v13  ;;  %5176 = vmatpush3.msra.mxu0 %v3934_v15  ;;  %v3974_v13 = vld [vmem:[%s8119_s5 + $0x360] sm:$0xff]  ;;  %v7085_v16 = vsel %vm2026_vm5, %v2030_v0, %v2032_v10  ;;  %v3965_v0 = vld [vmem:[%s8119_s5 + $0x318] sm:$0xff] }
 0x286   :  { %5230 = vmatprep.subr.mxu1 %v5889_v44  ;;  %5177 = vmatprep.subr.mxu0 %v5889_v44  ;;  %v3986_v15 = vld [vmem:[%s8119_s5 + $0x3c0] sm:$0xff] }
 0x287   :  { %5231 = vmatpush3.msra.mxu1 %v3946_v18  ;;  %5232 = vmatprep.mubr.msk.f32.mxu1 %vm5890_vm0, %v5889_v44  ;;  %v3973_v18 = vld [vmem:[%s8119_s5 + $0x358] sm:$0xff] }
 0x288   :  { %5178 = vmatpush3.msra.mxu0 %v3933_v21  ;;  %5233 = vmatmul.mubr.f32.vlgmr.msra.gmra.mxu1 %v2158_v24  ;;  %v7097_v21 = vsel %vm2155_vm4, %v2163_v1, %v2165_v22  ;;  %v2034_v24 = vrot.slane %v6638_v14, 4  ;;  %v3984_v22 = vld [vmem:[%s8119_s5 + $0x3b0] sm:$0xff]  ;;  %v2414_v1 = vrot.slane %v6556_v37, 7 }
 0x289   :  { %5294 = vmatprep.subr.mxu1 %v5889_v44  ;;  %5179 = vmatprep.subr.mxu0 %v5889_v44 }
 0x28a   :  { %5295 = vmatpush3.msra.mxu1 %v3993_v25  ;;  %5180 = vmatpush3.msra.mxu0 %v3932_v29  ;;  %v3972_v25 = vld [vmem:[%s8119_s5 + $0x350] sm:$0xff]  ;;  %v3971_v29 = vld [vmem:[%s8119_s5 + $0x348] sm:$0xff]  ;;  %v7143_v4 = vsel %vm2026_vm5, %v2034_v24, %v2036_v26 }
 0x28b   :  { %5296 = vmatprep.subr.mxu1 %v5889_v44  ;;  %5181 = vmatprep.subr.mxu0 %v5889_v44  ;;  %v3980_v26 = vld [vmem:[%s8119_s5 + $0x390] sm:$0xff] }
 0x28c   :  { %5235 = vmatprep.mubr.msk.f32.mxu1 %vm5890_vm0, %v5889_v44  ;;  %5297 = vmatpush3.msra.mxu1 %v3992_v30  ;;  %v7119_v30 = vsel %vm2026_vm5, %v2032_v10, %v2034_v24  ;;  %v4024_v10 = vld [vmem:[%s8119_s5 + $0x4f0] sm:$0xff]  ;;  %v3962_v24 = vld [vmem:[%s8119_s5 + $0x300] sm:$0xff] }
 0x28d   :  { %5182 = vmatpush3.msra.mxu0 %v3931_v31  ;;  %5236 = vmatmul.mubr.f32.gmra.mxu1 %v7008_v35  ;;  %v3983_v31 = vld [vmem:[%s8119_s5 + $0x3a8] sm:$0xff] }
 0x28e   :  { %5298 = vmatprep.subr.mxu1 %v5889_v44  ;;  %5183 = vmatprep.subr.mxu0 %v5889_v44 }
 0x28f   :  { %5299 = vmatpush3.msra.mxu1 %v3991_v41  ;;  %5184 = vmatpush3.msra.mxu0 %v3930_v34  ;;  %v3982_v41 = vld [vmem:[%s8119_s5 + $0x3a0] sm:$0xff]  ;;  %v3969_v34 = vld [vmem:[%s8119_s5 + $0x338] sm:$0xff] }
 0x290   :  { %5185 = vmatprep.mubr.msk.f32.mxu0 %vm5890_vm0, %v5889_v44  ;;  %5300 = vmatprep.subr.mxu1 %v5889_v44 }
 0x291   :  { %5186 = vmatmul.mubr.f32.vlgmr.msra.gmra.mxu0 %v2029_v59  ;;  %5238 = vmatprep.mubr.msk.f32.mxu1 %vm5890_vm0, %v5889_v44  ;;  %v3979_v59 = vld [vmem:[%s8119_s5 + $0x388] sm:$0xff] }
 0x292   :  { %5247 = vmatprep.subr.mxu0 %v5889_v44  ;;  %5301 = vmatpush3.msra.mxu1 %v3990_v57  ;;  %v3967_v57 = vld [vmem:[%s8119_s5 + $0x328] sm:$0xff] }
 0x293   :  { %5239 = vmatmul.mubr.f32.gmra.mxu1 %v7036_v61  ;;  %5248 = vmatpush3.msra.mxu0 %v3977_v60  ;;  %v3966_v60 = vld [vmem:[%s8119_s5 + $0x320] sm:$0xff] }
 0x294   :  { %5302 = vmatprep.subr.mxu1 %v5889_v44  ;;  %5249 = vmatprep.subr.mxu0 %v5889_v44 }
 0x295   :  { %5303 = vmatpush3.msra.mxu1 %v3989_v19  ;;  %5188 = vmatprep.mubr.msk.f32.mxu0 %vm5890_vm0, %v5889_v44  ;;  %v2415_v19 = vrot.slane %v6568_v46, 7 }
 0x296   :  { %5250 = vmatpush3.msra.mxu0 %v3976_v62  ;;  %5304 = vmatprep.subr.mxu1 %v5889_v44  ;;  %v3978_v62 = vld [vmem:[%s8119_s5 + $0x380] sm:$0xff] }
 0x297   :  { %5189 = vmatmul.mubr.f32.gmra.mxu0 %v7056_v5  ;;  %5241 = vmatprep.mubr.msk.f32.mxu1 %vm5890_vm0, %v5889_v44 }
 0x298   :  { %5251 = vmatprep.subr.mxu0 %v5889_v44  ;;  %5305 = vmatpush3.msra.mxu1 %v3988_v2  ;;  %v2416_v2 = vsel %vm2413_vm6, %v2414_v1, %v2415_v19  ;;  %v4006_v1 = vld [vmem:[%s8119_s5 + $0x460] sm:$0xff] }
 0x299   :  { %5242 = vmatmul.mubr.f32.gmra.mxu1 %v7066_v8  ;;  %5252 = vmatpush3.msra.mxu0 %v3975_v7  ;;  %v4025_v7 = vld [vmem:[%s8119_s5 + $0x4f8] sm:$0xff] }
 0x29a   :  { %5306 = vmatprep.subr.mxu1 %v5889_v44  ;;  %5253 = vmatprep.subr.mxu0 %v5889_v44 }
 0x29b   :  { %5307 = vmatpush3.msra.mxu1 %v3987_v20  ;;  %5191 = vmatprep.mubr.msk.f32.mxu0 %vm5890_vm0, %v5889_v44  ;;  %v3964_v20 = vld [vmem:[%s8119_s5 + $0x310] sm:$0xff] }
 0x29c   :  { %5254 = vmatpush3.msra.mxu0 %v3974_v13  ;;  %5308 = vmatprep.subr.mxu1 %v5889_v44  ;;  %v3963_v13 = vld [vmem:[%s8119_s5 + $0x308] sm:$0xff] }
 0x29d   :  { %5192 = vmatmul.mubr.f32.gmra.mxu0 %v7085_v16  ;;  %5244 = vmatprep.mubr.msk.f32.mxu1 %vm5890_vm0, %v5889_v44 }
 0x29e   :  { %5255 = vmatprep.subr.mxu0 %v5889_v44  ;;  %5309 = vmatpush3.msra.mxu1 %v3986_v15  ;;  %v2417_v15 = vrot.slane %v6590_v55, 7 }
 0x29f   :  { %5245 = vmatmul.mubr.f32.gmra.mxu1 %v7097_v21  ;;  %5256 = vmatpush3.msra.mxu0 %v3973_v18 }
 0x2a0   :  { %5310 = vmatprep.subr.mxu1 %v5889_v44  ;;  %5257 = vmatprep.subr.mxu0 %v5889_v44  ;;  %v7204_v18 = vsel %vm2413_vm6, %v2415_v19, %v2417_v15 }
 0x2a1   :  { %5311 = vmatpush3.msra.mxu1 %v3985_v23  ;;  %5194 = vmatprep.mubr.msk.f32.mxu0 %vm5890_vm0, %v5889_v44  ;;  %v4023_v23 = vld [vmem:[%s8119_s5 + $0x4e8] sm:$0xff] }
 0x2a2   :  { %5258 = vmatpush3.msra.mxu0 %v3972_v25  ;;  %5312 = vmatprep.subr.mxu1 %v5889_v44  ;;  %v2286_v25 = vrot.slane %v6568_v46, 6 }
 0x2a3   :  { %5195 = vmatmul.mubr.f32.gmra.mxu0 %v7119_v30  ;;  %5259 = vmatprep.subr.mxu0 %v5889_v44 }
 0x2a4   :  { %5313 = vmatpush3.msra.mxu1 %v3984_v22  ;;  %5260 = vmatpush3.msra.mxu0 %v3971_v29  ;;  %v2285_v22 = vrot.slane %v6556_v37, 6  ;;  %v2419_v29 = vrot.slane %v6610_v3, 7 }
 0x2a5   :  { %5314 = vmatprep.subr.mxu1 %v5889_v44  ;;  %5261 = vmatprep.subr.mxu0 %v5889_v44 }
 0x2a6   :  { %5315 = vmatpush3.msra.mxu1 %v3983_v31  ;;  %5197 = vmatprep.mubr.msk.f32.mxu0 %vm5890_vm0, %v5889_v44  ;;  %v4022_v31 = vld [vmem:[%s8119_s5 + $0x4e0] sm:$0xff]  ;;  %v7232_v37 = vsel %vm2413_vm6, %v2417_v15, %v2419_v29  ;;  %v2292_v15 = vrot.slane %v6638_v14, 6 }
 0x2a7   :  { %5262 = vmatpush3.msra.mxu0 %v3970_v33  ;;  %5316 = vmatprep.subr.mxu1 %v5889_v44  ;;  %v2287_v33 = vsel %vm2284_vm7, %v2285_v22, %v2286_v25  ;;  %v4015_v22 = vld [vmem:[%s8119_s5 + $0x4a8] sm:$0xff] }
 0x2a8   :  { %5198 = vmatmul.mubr.f32.gmra.mxu0 %v7143_v4  ;;  %5263 = vmatprep.subr.mxu0 %v5889_v44 }
 0x2a9   :  { %5317 = vmatpush3.msra.mxu1 %v3982_v41  ;;  %5264 = vmatpush3.msra.mxu0 %v3969_v34  ;;  %v4009_v41 = vld [vmem:[%s8119_s5 + $0x478] sm:$0xff] }
 0x2aa   :  { %5318 = vmatprep.subr.mxu1 %v5889_v44  ;;  %5265 = vmatprep.subr.mxu0 %v5889_v44  ;;  %v4021_v34 = vld [vmem:[%s8119_s5 + $0x4d8] sm:$0xff] }
 0x2ab   :  { %5319 = vmatpush3.msra.mxu1 %v3981_v52  ;;  %5266 = vmatpush3.msra.mxu0 %v3968_v53  ;;  %v4008_v52 = vld [vmem:[%s8119_s5 + $0x470] sm:$0xff]  ;;  %v2288_v53 = vrot.slane %v6590_v55, 6 }
 0x2ac   :  { %5320 = vmatprep.subr.mxu1 %v5889_v44  ;;  %5267 = vmatprep.subr.mxu0 %v5889_v44 }
 0x2ad   :  { %5321 = vmatpush3.msra.mxu1 %v3980_v26  ;;  %5268 = vmatpush3.msra.mxu0 %v3967_v57  ;;  %v2421_v26 = vrot.slane %v6638_v14, 7  ;;  %v4020_v57 = vld [vmem:[%s8119_s5 + $0x4d0] sm:$0xff] }
 0x2ae   :  { %5322 = vmatprep.subr.mxu1 %v5889_v44  ;;  %5269 = vmatprep.subr.mxu0 %v5889_v44 }
 0x2af   :  { %5323 = vmatpush3.msra.mxu1 %v3979_v59  ;;  %5270 = vmatpush3.msra.mxu0 %v3966_v60  ;;  %v7252_v59 = vsel %vm2284_vm7, %v2286_v25, %v2288_v53  ;;  %v4007_v60 = vld [vmem:[%s8119_s5 + $0x468] sm:$0xff]  ;;  %v7262_v19 = vsel %vm2413_vm6, %v2419_v29, %v2421_v26  ;;  %v4002_v29 = vld [vmem:[%s8119_s5 + $0x440] sm:$0xff] }
 0x2b0   :  { %5324 = vmatprep.subr.mxu1 %v5889_v44  ;;  %5271 = vmatprep.subr.mxu0 %v5889_v44 }
 0x2b1   :  { %5325 = vmatpush3.msra.mxu1 %v3978_v62  ;;  %5326 = vmatprep.mubr.msk.f32.mxu1 %vm5890_vm0, %v5889_v44  ;;  %v4019_v62 = vld [vmem:[%s8119_s5 + $0x4c8] sm:$0xff] }
 0x2b2   :  { %5272 = vmatpush3.msra.mxu0 %v3965_v0  ;;  %5327 = vmatmul.mubr.f32.vlgmr.msra.gmra.mxu1 %v2416_v2  ;;  %v2290_v0 = vrot.slane %v6610_v3, 6  ;;  %v4018_v2 = vld [vmem:[%s8119_s5 + $0x4c0] sm:$0xff] }
 0x2b3   :  { %5388 = vmatprep.subr.mxu1 %v5889_v44  ;;  %5273 = vmatprep.subr.mxu0 %v5889_v44 }
 0x2b4   :  { %5389 = vmatpush3.msra.mxu1 %v4025_v7  ;;  %5274 = vmatpush3.msra.mxu0 %v3964_v20  ;;  %v7281_v7 = vsel %vm2284_vm7, %v2288_v53, %v2290_v0  ;;  %v4005_v20 = vld [vmem:[%s8119_s5 + $0x458] sm:$0xff]  ;;  %v7315_v25 = vsel %vm2284_vm7, %v2290_v0, %v2292_v15  ;;  %v3999_v53 = vld [vmem:[%s8119_s5 + $0x428] sm:$0xff] }
 0x2b5   :  { %5390 = vmatprep.subr.mxu1 %v5889_v44  ;;  %5275 = vmatprep.subr.mxu0 %v5889_v44  ;;  %v4057_v0 = vld [vmem:[%s8119_s5 + $0x5f8] sm:$0xff] }
 0x2b6   :  { %5329 = vmatprep.mubr.msk.f32.mxu1 %vm5890_vm0, %v5889_v44  ;;  %5391 = vmatpush3.msra.mxu1 %v4024_v10  ;;  %v7293_v10 = vsel %vm2413_vm6, %v2421_v26, %v2423_v27  ;;  %v4016_v27 = vld [vmem:[%s8119_s5 + $0x4b0] sm:$0xff]  ;;  %v4011_v26 = vld [vmem:[%s8119_s5 + $0x488] sm:$0xff] }
 0x2b7   :  { %5276 = vmatpush3.msra.mxu0 %v3963_v13  ;;  %5330 = vmatmul.mubr.f32.gmra.mxu1 %v7204_v18  ;;  %v4017_v13 = vld [vmem:[%s8119_s5 + $0x4b8] sm:$0xff] }
 0x2b8   :  { %5392 = vmatprep.subr.mxu1 %v5889_v44  ;;  %5277 = vmatprep.subr.mxu0 %v5889_v44 }
 0x2b9   :  { %5393 = vmatpush3.msra.mxu1 %v4023_v23  ;;  %5278 = vmatpush3.msra.mxu0 %v3962_v24  ;;  %v4004_v23 = vld [vmem:[%s8119_s5 + $0x450] sm:$0xff]  ;;  %v4003_v24 = vld [vmem:[%s8119_s5 + $0x448] sm:$0xff] }
 0x2ba   :  { %5279 = vmatprep.mubr.msk.f32.mxu0 %vm5890_vm0, %v5889_v44  ;;  %5394 = vmatprep.subr.mxu1 %v5889_v44 }
 0x2bb   :  { %5280 = vmatmul.mubr.f32.vlgmr.msra.gmra.mxu0 %v2287_v33  ;;  %5332 = vmatprep.mubr.msk.f32.mxu1 %vm5890_vm0, %v5889_v44  ;;  %v4001_v33 = vld [vmem:[%s8119_s5 + $0x438] sm:$0xff] }
 0x2bc   :  { %5341 = vmatprep.subr.mxu0 %v5889_v44  ;;  %5395 = vmatpush3.msra.mxu1 %v4022_v31  ;;  %v4014_v31 = vld [vmem:[%s8119_s5 + $0x4a0] sm:$0xff] }
 0x2bd   :  { %5333 = vmatmul.mubr.f32.gmra.mxu1 %v7232_v37  ;;  %5342 = vmatpush3.msra.mxu0 %v4009_v41  ;;  %v7339_v41 = vsel %vm2284_vm7, %v2292_v15, %v2294_v32  ;;  %v4012_v32 = vld [vmem:[%s8119_s5 + $0x490] sm:$0xff]  ;;  %v4054_v15 = vld [vmem:[%s8119_s5 + $0x5e0] sm:$0xff] }
 0x2be   :  { %5396 = vmatprep.subr.mxu1 %v5889_v44  ;;  %5343 = vmatprep.subr.mxu0 %v5889_v44 }
 0x2bf   :  { %5397 = vmatpush3.msra.mxu1 %v4021_v34  ;;  %5282 = vmatprep.mubr.msk.f32.mxu0 %vm5890_vm0, %v5889_v44  ;;  %v4013_v34 = vld [vmem:[%s8119_s5 + $0x498] sm:$0xff] }
 0x2c0   :  { %5344 = vmatpush3.msra.mxu0 %v4008_v52  ;;  %5398 = vmatprep.subr.mxu1 %v5889_v44  ;;  %v4000_v52 = vld [vmem:[%s8119_s5 + $0x430] sm:$0xff] }
 0x2c1   :  { %5283 = vmatmul.mubr.f32.gmra.mxu0 %v7252_v59  ;;  %5335 = vmatprep.mubr.msk.f32.mxu1 %vm5890_vm0, %v5889_v44 }
 0x2c2   :  { %5345 = vmatprep.subr.mxu0 %v5889_v44  ;;  %5399 = vmatpush3.msra.mxu1 %v4020_v57  ;;  %v3998_v57 = vld [vmem:[%s8119_s5 + $0x420] sm:$0xff] }
 0x2c3   :  { %5336 = vmatmul.mubr.f32.gmra.mxu1 %v7262_v19  ;;  %5346 = vmatpush3.msra.mxu0 %v4007_v60  ;;  %v4010_v60 = vld [vmem:[%s8119_s5 + $0x480] sm:$0xff] }
 0x2c4   :  { %5400 = vmatprep.subr.mxu1 %v5889_v44  ;;  %5347 = vmatprep.subr.mxu0 %v5889_v44 }
 0x2c5   :  { %5401 = vmatpush3.msra.mxu1 %v4019_v62  ;;  %5285 = vmatprep.mubr.msk.f32.mxu0 %vm5890_vm0, %v5889_v44  ;;  %v3997_v62 = vld [vmem:[%s8119_s5 + $0x418] sm:$0xff] }
 0x2c6   :  { %5348 = vmatpush3.msra.mxu0 %v4006_v1  ;;  %5402 = vmatprep.subr.mxu1 %v5889_v44  ;;  %v3996_v1 = vld [vmem:[%s8119_s5 + $0x410] sm:$0xff] }
 0x2c7   :  { %5286 = vmatmul.mubr.f32.gmra.mxu0 %v7281_v7  ;;  %5338 = vmatprep.mubr.msk.f32.mxu1 %vm5890_vm0, %v5889_v44 }
 0x2c8   :  { %5349 = vmatprep.subr.mxu0 %v5889_v44  ;;  %5403 = vmatpush3.msra.mxu1 %v4018_v2  ;;  %v4056_v2 = vld [vmem:[%s8119_s5 + $0x5f0] sm:$0xff] }
 0x2c9   :  { %5339 = vmatmul.mubr.f32.gmra.mxu1 %v7293_v10  ;;  %5350 = vmatpush3.msra.mxu0 %v4005_v20  ;;  %v3995_v20 = vld [vmem:[%s8119_s5 + $0x408] sm:$0xff] }
 0x2ca   :  { %5404 = vmatprep.subr.mxu1 %v5889_v44  ;;  %5351 = vmatprep.subr.mxu0 %v5889_v44 }
 0x2cb   :  { %5405 = vmatpush3.msra.mxu1 %v4017_v13  ;;  %5288 = vmatprep.mubr.msk.f32.mxu0 %vm5890_vm0, %v5889_v44  ;;  %v3994_v13 = vld [vmem:[%s8119_s5 + $0x400] sm:$0xff] }
 0x2cc   :  { %5352 = vmatpush3.msra.mxu0 %v4004_v23  ;;  %5406 = vmatprep.subr.mxu1 %v5889_v44  ;;  %v4041_v23 = vld [vmem:[%s8119_s5 + $0x578] sm:$0xff] }
 0x2cd   :  { %5289 = vmatmul.mubr.f32.gmra.mxu0 %v7315_v25  ;;  %5353 = vmatprep.subr.mxu0 %v5889_v44 }
 0x2ce   :  { %5407 = vmatpush3.msra.mxu1 %v4016_v27  ;;  %5354 = vmatpush3.msra.mxu0 %v4003_v24  ;;  %v4053_v27 = vld [vmem:[%s8119_s5 + $0x5d8] sm:$0xff]  ;;  %v4040_v24 = vld [vmem:[%s8119_s5 + $0x570] sm:$0xff] }
 0x2cf   :  { %5408 = vmatprep.subr.mxu1 %v5889_v44  ;;  %5355 = vmatprep.subr.mxu0 %v5889_v44 }
 0x2d0   :  { %5409 = vmatpush3.msra.mxu1 %v4015_v22  ;;  %5291 = vmatprep.mubr.msk.f32.mxu0 %vm5890_vm0, %v5889_v44  ;;  %v4039_v22 = vld [vmem:[%s8119_s5 + $0x568] sm:$0xff] }
 0x2d1   :  { %5356 = vmatpush3.msra.mxu0 %v4002_v29  ;;  %5410 = vmatprep.subr.mxu1 %v5889_v44  ;;  %v4051_v29 = vld [vmem:[%s8119_s5 + $0x5c8] sm:$0xff] }
 0x2d2   :  { %5292 = vmatmul.mubr.f32.gmra.mxu0 %v7339_v41  ;;  %5357 = vmatprep.subr.mxu0 %v5889_v44 }
 0x2d3   :  { %5411 = vmatpush3.msra.mxu1 %v4014_v31  ;;  %5358 = vmatpush3.msra.mxu0 %v4001_v33  ;;  %v4038_v31 = vld [vmem:[%s8119_s5 + $0x560] sm:$0xff] }
 0x2d4   :  { %5412 = vmatprep.subr.mxu1 %v5889_v44  ;;  %5359 = vmatprep.subr.mxu0 %v5889_v44  ;;  %v4050_v33 = vld [vmem:[%s8119_s5 + $0x5c0] sm:$0xff] }
 0x2d5   :  { %5413 = vmatpush3.msra.mxu1 %v4013_v34  ;;  %5360 = vmatpush3.msra.mxu0 %v4000_v52  ;;  %v4037_v34 = vld [vmem:[%s8119_s5 + $0x558] sm:$0xff] }
 0x2d6   :  { %5414 = vmatprep.subr.mxu1 %v5889_v44  ;;  %5361 = vmatprep.subr.mxu0 %v5889_v44  ;;  %v4049_v52 = vld [vmem:[%s8119_s5 + $0x5b8] sm:$0xff] }
 0x2d7   :  { %5415 = vmatpush3.msra.mxu1 %v4012_v32  ;;  %5362 = vmatpush3.msra.mxu0 %v3999_v53  ;;  %v4036_v32 = vld [vmem:[%s8119_s5 + $0x550] sm:$0xff] }
 0x2d8   :  { %5416 = vmatprep.subr.mxu1 %v5889_v44  ;;  %5363 = vmatprep.subr.mxu0 %v5889_v44  ;;  %v4048_v53 = vld [vmem:[%s8119_s5 + $0x5b0] sm:$0xff] }
 0x2d9   :  { %5417 = vmatpush3.msra.mxu1 %v4011_v26  ;;  %5364 = vmatpush3.msra.mxu0 %v3998_v57  ;;  %v4035_v26 = vld [vmem:[%s8119_s5 + $0x548] sm:$0xff] }
 0x2da   :  { %5418 = vmatprep.subr.mxu1 %v5889_v44  ;;  %5365 = vmatprep.subr.mxu0 %v5889_v44  ;;  %v4047_v57 = vld [vmem:[%s8119_s5 + $0x5a8] sm:$0xff] }
 0x2db   :  { %5419 = vmatpush3.msra.mxu1 %v4010_v60  ;;  %5420 = vmatprep.mubr.msk.f32.mxu1 %vm5890_vm0, %v5889_v44 }
 0x2dc   :  { %5366 = vmatpush3.msra.mxu0 %v3997_v62  ;;  %5421 = vmatmul.mubr.f32.vlgmr.msra.gmra.mxu1 %v6621_v9  ;;  %v4055_v9 = vld [vmem:[%s8119_s5 + $0x5e8] sm:$0xff]  ;;  %v4034_v62 = vld [vmem:[%s8119_s5 + $0x540] sm:$0xff] }
 0x2dd   :  { %5482 = vmatprep.subr.mxu1 %v5889_v44  ;;  %5367 = vmatprep.subr.mxu0 %v5889_v44 }
 0x2de   :  { %5483 = vmatpush3.msra.mxu1 %v4057_v0  ;;  %5368 = vmatpush3.msra.mxu0 %v3996_v1  ;;  %v4046_v1 = vld [vmem:[%s8119_s5 + $0x5a0] sm:$0xff] }
 0x2df   :  { %5484 = vmatprep.subr.mxu1 %v5889_v44  ;;  %5369 = vmatprep.subr.mxu0 %v5889_v44 }
 0x2e0   :  { %5423 = vmatprep.mubr.msk.f32.mxu1 %vm5890_vm0, %v5889_v44  ;;  %5485 = vmatpush3.msra.mxu1 %v4056_v2  ;;  %v4033_v2 = vld [vmem:[%s8119_s5 + $0x538] sm:$0xff] }
 0x2e1   :  { %5370 = vmatpush3.msra.mxu0 %v3995_v20  ;;  %5424 = vmatmul.mubr.f32.gmra.mxu1 %v6653_v17 }
 0x2e2   :  { %5486 = vmatprep.subr.mxu1 %v5889_v44  ;;  %5371 = vmatprep.subr.mxu0 %v5889_v44 }
 0x2e3   :  { %5487 = vmatpush3.msra.mxu1 %v4055_v9  ;;  %5372 = vmatpush3.msra.mxu0 %v3994_v13  ;;  %v4045_v9 = vld [vmem:[%s8119_s5 + $0x598] sm:$0xff]  ;;  %v4032_v13 = vld [vmem:[%s8119_s5 + $0x530] sm:$0xff] }
 0x2e4   :  { %5373 = vmatprep.mubr.msk.f32.mxu0 %vm5890_vm0, %v5889_v44  ;;  %5488 = vmatprep.subr.mxu1 %v5889_v44 }
 0x2e5   :  { %5374 = vmatmul.mubr.f32.vlgmr.msra.gmra.mxu0 %v6568_v46  ;;  %5426 = vmatprep.mubr.msk.f32.mxu1 %vm5890_vm0, %v5889_v44  ;;  %v4052_v46 = vld [vmem:[%s8119_s5 + $0x5d0] sm:$0xff] }
 0x2e6   :  { %5435 = vmatprep.subr.mxu0 %v5889_v44  ;;  %5489 = vmatpush3.msra.mxu1 %v4054_v15 }
 0x2e7   :  { %5427 = vmatmul.mubr.f32.gmra.mxu1 %v6723_v48  ;;  %5436 = vmatpush3.msra.mxu0 %v4041_v23  ;;  %v4044_v23 = vld [vmem:[%s8119_s5 + $0x590] sm:$0xff] }
 0x2e8   :  { %5490 = vmatprep.subr.mxu1 %v5889_v44  ;;  %5437 = vmatprep.subr.mxu0 %v5889_v44 }
 0x2e9   :  { %5491 = vmatpush3.msra.mxu1 %v4053_v27  ;;  %5376 = vmatprep.mubr.msk.f32.mxu0 %vm5890_vm0, %v5889_v44  ;;  %v4031_v27 = vld [vmem:[%s8119_s5 + $0x528] sm:$0xff] }
 0x2ea   :  { %5438 = vmatpush3.msra.mxu0 %v4040_v24  ;;  %5492 = vmatprep.subr.mxu1 %v5889_v44 }
 0x2eb   :  { %5377 = vmatmul.mubr.f32.gmra.mxu0 %v6590_v55  ;;  %5429 = vmatprep.mubr.msk.f32.mxu1 %vm5890_vm0, %v5889_v44 }
 0x2ec   :  { %5439 = vmatprep.subr.mxu0 %v5889_v44  ;;  %5493 = vmatpush3.msra.mxu1 %v4052_v46 }
 0x2ed   :  { %5430 = vmatmul.mubr.f32.gmra.mxu1 %v6755_v56  ;;  %5440 = vmatpush3.msra.mxu0 %v4039_v22  ;;  %v4043_v22 = vld [vmem:[%s8119_s5 + $0x588] sm:$0xff] }
 0x2ee   :  { %5494 = vmatprep.subr.mxu1 %v5889_v44  ;;  %5441 = vmatprep.subr.mxu0 %v5889_v44 }
 0x2ef   :  { %5495 = vmatpush3.msra.mxu1 %v4051_v29  ;;  %5379 = vmatprep.mubr.msk.f32.mxu0 %vm5890_vm0, %v5889_v44  ;;  %v4030_v29 = vld [vmem:[%s8119_s5 + $0x520] sm:$0xff] }
 0x2f0   :  { %5442 = vmatpush3.msra.mxu0 %v4038_v31  ;;  %5496 = vmatprep.subr.mxu1 %v5889_v44 }
 0x2f1   :  { %5380 = vmatmul.mubr.f32.gmra.mxu0 %v6610_v3  ;;  %5432 = vmatprep.mubr.msk.f32.mxu1 %vm5890_vm0, %v5889_v44 }
 0x2f2   :  { %5443 = vmatprep.subr.mxu0 %v5889_v44  ;;  %5497 = vmatpush3.msra.mxu1 %v4050_v33 }
 0x2f3   :  { %5433 = vmatmul.mubr.f32.gmra.mxu1 %v6685_v36  ;;  %5444 = vmatpush3.msra.mxu0 %v4037_v34  ;;  %v4042_v34 = vld [vmem:[%s8119_s5 + $0x580] sm:$0xff] }
 0x2f4   :  { %5498 = vmatprep.subr.mxu1 %v5889_v44  ;;  %5445 = vmatprep.subr.mxu0 %v5889_v44 }
 0x2f5   :  { %5499 = vmatpush3.msra.mxu1 %v4049_v52  ;;  %5382 = vmatprep.mubr.msk.f32.mxu0 %vm5890_vm0, %v5889_v44 }
 0x2f6   :  { %5446 = vmatpush3.msra.mxu0 %v4036_v32  ;;  %5500 = vmatprep.subr.mxu1 %v5889_v44  ;;  %v4029_v32 = vld [vmem:[%s8119_s5 + $0x518] sm:$0xff] }
 0x2f7   :  { %5383 = vmatmul.mubr.f32.gmra.mxu0 %v6638_v14  ;;  %5447 = vmatprep.subr.mxu0 %v5889_v44  ;;  %v1727_v60 = vpop.f32.mrf.mxu1 }
 0x2f8   :  { %5501 = vmatpush3.msra.mxu1 %v4048_v53  ;;  %5448 = vmatpush3.msra.mxu0 %v4035_v26  ;;  %v4089_v26 = vld [vmem:[%s8119_s5 + $0x6f8] sm:$0xff] }
 0x2f9   :  { %5502 = vmatprep.subr.mxu1 %v5889_v44  ;;  %5449 = vmatprep.subr.mxu0 %v5889_v44  ;;  %v5046_v0 = vpop.f32.mrf.mxu1 }
 0x2fa   :  { %5503 = vmatpush3.msra.mxu1 %v4047_v57  ;;  %5385 = vmatprep.mubr.msk.f32.mxu0 %vm5890_vm0, %v5889_v44  ;;  %v4028_v57 = vld [vmem:[%s8119_s5 + $0x510] sm:$0xff] }
 0x2fb   :  { %5450 = vmatpush3.msra.mxu0 %v4034_v62  ;;  %5504 = vmatprep.subr.mxu1 %v5889_v44  ;;  %v1732_v20 = vpop.f32.mrf.mxu1 }
 0x2fc   :  { %5386 = vmatmul.mubr.f32.gmra.mxu0 %v6633_v12  ;;  %5451 = vmatprep.subr.mxu0 %v5889_v44 }
 0x2fd   :  { %5505 = vmatpush3.msra.mxu1 %v4046_v1  ;;  %5452 = vmatpush3.msra.mxu0 %v4033_v2  ;;  %v5049_v15 = vpop.f32.mrf.mxu1  ;;  %v4088_v1 = vld [vmem:[%s8119_s5 + $0x6f0] sm:$0xff]  ;;  %v4027_v2 = vld [vmem:[%s8119_s5 + $0x508] sm:$0xff] }
 0x2fe   :  { %5506 = vmatprep.subr.mxu1 %v5889_v44  ;;  %5453 = vmatprep.subr.mxu0 %v5889_v44  ;;  %v1637_v24 = vpop.f32.mrf.mxu0 }
 0x2ff   :  { %5507 = vmatpush3.msra.mxu1 %v4045_v9  ;;  %5454 = vmatpush3.msra.mxu0 %v4032_v13  ;;  %v7515_v46 = vadd.f32 %v1727_v60, %v1637_v24  ;;  %v4026_v9 = vld [vmem:[%s8119_s5 + $0x500] sm:$0xff] }
 0x300   :  { %5508 = vmatprep.subr.mxu1 %v5889_v44  ;;  %5455 = vmatprep.subr.mxu0 %v5889_v44  ;;  %v1737_v31 = vpop.f32.mrf.mxu1  ;;  %v4999_v33 = vpop.f32.mrf.mxu0  ;;  %v4086_v24 = vld [vmem:[%s8119_s5 + $0x6e0] sm:$0xff] }
 0x301   :  { %5509 = vmatpush3.msra.mxu1 %v4044_v23  ;;  %5456 = vmatpush3.msra.mxu0 %v4031_v27  ;;  %v4072_v33 = vld [vmem:[%s8119_s5 + $0x670] sm:$0xff] }
 0x302   :  { %5510 = vmatprep.subr.mxu1 %v5889_v44  ;;  %5457 = vmatprep.subr.mxu0 %v5889_v44  ;;  %v5052_v52 = vpop.f32.mrf.mxu1 }
 0x303   :  { %5511 = vmatpush3.msra.mxu1 %v4043_v22  ;;  %5458 = vmatpush3.msra.mxu0 %v4030_v29  ;;  %v4085_v29 = vld [vmem:[%s8119_s5 + $0x6d8] sm:$0xff]  ;;  %v4071_v52 = vld [vmem:[%s8119_s5 + $0x668] sm:$0xff] }
 0x304   :  { %5512 = vmatprep.subr.mxu1 %v5889_v44  ;;  %5459 = vmatprep.subr.mxu0 %v5889_v44  ;;  %v1642_v53 = vpop.f32.mrf.mxu0 }
 0x305   :  { %5513 = vmatpush3.msra.mxu1 %v4042_v34  ;;  %5514 = vmatprep.mubr.msk.f32.mxu1 %vm5890_vm0, %v5889_v44  ;;  %v7543_v60 = vadd.f32 %v1732_v20, %v1642_v53  ;;  %v4083_v53 = vld [vmem:[%s8119_s5 + $0x6c8] sm:$0xff] }
 0x306   :  { %5460 = vmatpush3.msra.mxu0 %v4029_v32  ;;  %5515 = vmatmul.mubr.f32.vlgmr.msra.gmra.mxu1 %v6812_v11  ;;  %v1742_v62 = vpop.f32.mrf.mxu1  ;;  %v5002_v0 = vpop.f32.mrf.mxu0  ;;  %v4087_v11 = vld [vmem:[%s8119_s5 + $0x6e8] sm:$0xff] }
 0x307   :  { %5576 = vmatprep.subr.mxu1 %v5889_v44  ;;  %5461 = vmatprep.subr.mxu0 %v5889_v44  ;;  %v4081_v0 = vld [vmem:[%s8119_s5 + $0x6b8] sm:$0xff] }
 0x308   :  { %5577 = vmatpush3.msra.mxu1 %v4089_v26  ;;  %5462 = vmatpush3.msra.mxu0 %v4028_v57  ;;  %v5055_v20 = vpop.f32.mrf.mxu1 }
 0x309   :  { %5578 = vmatprep.subr.mxu1 %v5889_v44  ;;  %5463 = vmatprep.subr.mxu0 %v5889_v44 }
 0x30a   :  { %5517 = vmatprep.mubr.msk.f32.mxu1 %vm5890_vm0, %v5889_v44  ;;  %5579 = vmatpush3.msra.mxu1 %v4088_v1  ;;  %v1647_v13 = vpop.f32.mrf.mxu0  ;;  %v4068_v1 = vld [vmem:[%s8119_s5 + $0x650] sm:$0xff] }
 0x30b   :  { %5464 = vmatpush3.msra.mxu0 %v4027_v2  ;;  %5518 = vmatmul.mubr.f32.gmra.mxu1 %v6840_v28  ;;  %v7565_v15 = vadd.f32 %v1737_v31, %v1647_v13  ;;  %v4073_v28 = vld [vmem:[%s8119_s5 + $0x678] sm:$0xff]  ;;  %v4080_v2 = vld [vmem:[%s8119_s5 + $0x6b0] sm:$0xff] }
 0x30c   :  { %5580 = vmatprep.subr.mxu1 %v5889_v44  ;;  %5465 = vmatprep.subr.mxu0 %v5889_v44  ;;  %v1747_v23 = vpop.f32.mrf.mxu1  ;;  %v5005_v27 = vpop.f32.mrf.mxu0 }
 0x30d   :  { %5581 = vmatpush3.msra.mxu1 %v4087_v11  ;;  %5466 = vmatpush3.msra.mxu0 %v4026_v9  ;;  %v4079_v11 = vld [vmem:[%s8119_s5 + $0x6a8] sm:$0xff]  ;;  %v4066_v9 = vld [vmem:[%s8119_s5 + $0x640] sm:$0xff] }
 0x30e   :  { %5467 = vmatprep.mubr.msk.f32.mxu0 %vm5890_vm0, %v5889_v44  ;;  %5582 = vmatprep.subr.mxu1 %v5889_v44  ;;  %v5058_v22 = vpop.f32.mrf.mxu1 }
 0x30f   :  { %5468 = vmatmul.mubr.f32.vlgmr.msra.gmra.mxu0 %v6860_v40  ;;  %5520 = vmatprep.mubr.msk.f32.mxu1 %vm5890_vm0, %v5889_v44 }
 0x310   :  { %5529 = vmatprep.subr.mxu0 %v5889_v44  ;;  %5583 = vmatpush3.msra.mxu1 %v4086_v24  ;;  %v1652_v31 = vpop.f32.mrf.mxu0  ;;  %v4077_v24 = vld [vmem:[%s8119_s5 + $0x698] sm:$0xff] }
 0x311   :  { %5521 = vmatmul.mubr.f32.gmra.mxu1 %v6870_v42  ;;  %5530 = vmatpush3.msra.mxu0 %v4073_v28  ;;  %v7589_v34 = vadd.f32 %v1742_v62, %v1652_v31  ;;  %v4084_v42 = vld [vmem:[%s8119_s5 + $0x6d0] sm:$0xff]  ;;  %v4082_v62 = vld [vmem:[%s8119_s5 + $0x6c0] sm:$0xff] }
 0x312   :  { %5584 = vmatprep.subr.mxu1 %v5889_v44  ;;  %5531 = vmatprep.subr.mxu0 %v5889_v44  ;;  %v5008_v40 = vpop.f32.mrf.mxu0  ;;  %v4064_v28 = vld [vmem:[%s8119_s5 + $0x630] sm:$0xff] }
 0x313   :  { %5585 = vmatpush3.msra.mxu1 %v4085_v29  ;;  %5470 = vmatprep.mubr.msk.f32.mxu0 %vm5890_vm0, %v5889_v44  ;;  %v4063_v29 = vld [vmem:[%s8119_s5 + $0x628] sm:$0xff] }
 0x314   :  { %5532 = vmatpush3.msra.mxu0 %v4072_v33  ;;  %5586 = vmatprep.subr.mxu1 %v5889_v44 }
 0x315   :  { %5471 = vmatmul.mubr.f32.gmra.mxu0 %v6889_v54  ;;  %5523 = vmatprep.mubr.msk.f32.mxu1 %vm5890_vm0, %v5889_v44  ;;  %v1657_v32 = vpop.f32.mrf.mxu0  ;;  %v4070_v54 = vld [vmem:[%s8119_s5 + $0x660] sm:$0xff] }
 0x316   :  { %5533 = vmatprep.subr.mxu0 %v5889_v44  ;;  %5587 = vmatpush3.msra.mxu1 %v4084_v42  ;;  %v7609_v26 = vadd.f32 %v1747_v23, %v1657_v32  ;;  %v4065_v23 = vld [vmem:[%s8119_s5 + $0x638] sm:$0xff]  ;;  %v4075_v42 = vld [vmem:[%s8119_s5 + $0x688] sm:$0xff] }
 0x317   :  { %5524 = vmatmul.mubr.f32.gmra.mxu1 %v6901_v58  ;;  %5534 = vmatpush3.msra.mxu0 %v4071_v52  ;;  %v5011_v57 = vpop.f32.mrf.mxu0  ;;  %v4069_v58 = vld [vmem:[%s8119_s5 + $0x658] sm:$0xff]  ;;  %v4062_v52 = vld [vmem:[%s8119_s5 + $0x620] sm:$0xff] }
 0x318   :  { %5588 = vmatprep.subr.mxu1 %v5889_v44  ;;  %5535 = vmatprep.subr.mxu0 %v5889_v44 }
 0x319   :  { %5589 = vmatpush3.msra.mxu1 %v4083_v53  ;;  %5473 = vmatprep.mubr.msk.f32.mxu0 %vm5890_vm0, %v5889_v44  ;;  %v4074_v53 = vld [vmem:[%s8119_s5 + $0x680] sm:$0xff] }
 0x31a   :  { %5536 = vmatpush3.msra.mxu0 %v4070_v54  ;;  %5590 = vmatprep.subr.mxu1 %v5889_v44  ;;  %v4061_v54 = vld [vmem:[%s8119_s5 + $0x618] sm:$0xff] }
 0x31b   :  { %5474 = vmatmul.mubr.f32.gmra.mxu0 %v6923_v63  ;;  %5526 = vmatprep.mubr.msk.f32.mxu1 %vm5890_vm0, %v5889_v44 }
 0x31c   :  { %5537 = vmatprep.subr.mxu0 %v5889_v44  ;;  %5591 = vmatpush3.msra.mxu1 %v4082_v62 }
 0x31d   :  { %5527 = vmatmul.mubr.f32.gmra.mxu1 %v6690_v38  ;;  %5538 = vmatpush3.msra.mxu0 %v4069_v58  ;;  %v4067_v38 = vld [vmem:[%s8119_s5 + $0x648] sm:$0xff]  ;;  %v4121_v58 = vld [vmem:[%s8119_s5 + $0x7f8] sm:$0xff] }
 0x31e   :  { %5592 = vmatprep.subr.mxu1 %v5889_v44  ;;  %5539 = vmatprep.subr.mxu0 %v5889_v44  ;;  %v1980_v63 = vpop.f32.mrf.mxu1 }
 0x31f   :  { %5593 = vmatpush3.msra.mxu1 %v4081_v0  ;;  %5476 = vmatprep.mubr.msk.f32.mxu0 %vm5890_vm0, %v5889_v44  ;;  %v4060_v0 = vld [vmem:[%s8119_s5 + $0x610] sm:$0xff] }
 0x320   :  { %5540 = vmatpush3.msra.mxu0 %v4068_v1  ;;  %5594 = vmatprep.subr.mxu1 %v5889_v44  ;;  %v5140_v20 = vpop.f32.mrf.mxu1 }
 0x321   :  { %5477 = vmatmul.mubr.f32.gmra.mxu0 %v6947_v6  ;;  %5541 = vmatprep.subr.mxu0 %v5889_v44  ;;  %v4078_v6 = vld [vmem:[%s8119_s5 + $0x6a0] sm:$0xff]  ;;  %v4059_v20 = vld [vmem:[%s8119_s5 + $0x608] sm:$0xff] }
 0x322   :  { %5595 = vmatpush3.msra.mxu1 %v4080_v2  ;;  %5542 = vmatpush3.msra.mxu0 %v4067_v38 }
 0x323   :  { %5596 = vmatprep.subr.mxu1 %v5889_v44  ;;  %5543 = vmatprep.subr.mxu0 %v5889_v44  ;;  %v1985_v13 = vpop.f32.mrf.mxu1 }
 0x324   :  { %5597 = vmatpush3.msra.mxu1 %v4079_v11  ;;  %5479 = vmatprep.mubr.msk.f32.mxu0 %vm5890_vm0, %v5889_v44  ;;  %v4119_v11 = vld [vmem:[%s8119_s5 + $0x7e8] sm:$0xff] }
 0x325   :  { %5544 = vmatpush3.msra.mxu0 %v4066_v9  ;;  %5598 = vmatprep.subr.mxu1 %v5889_v44  ;;  %v5143_v27 = vpop.f32.mrf.mxu1  ;;  %v4058_v9 = vld [vmem:[%s8119_s5 + $0x600] sm:$0xff] }
 0x326   :  { %5480 = vmatmul.mubr.f32.gmra.mxu0 %v6695_v39  ;;  %5545 = vmatprep.subr.mxu0 %v5889_v44  ;;  %v4076_v39 = vld [vmem:[%s8119_s5 + $0x690] sm:$0xff] }
 0x327   :  { %5599 = vmatpush3.msra.mxu1 %v4078_v6  ;;  %5546 = vmatpush3.msra.mxu0 %v4065_v23  ;;  %v1851_v22 = vpop.f32.mrf.mxu0 }
 0x328   :  { %5600 = vmatprep.subr.mxu1 %v5889_v44  ;;  %5547 = vmatprep.subr.mxu0 %v5889_v44  ;;  %v1875_v31 = vadd.f32 %v1851_v22, %v7515_v46  ;;  %v4117_v22 = vld [vmem:[%s8119_s5 + $0x7d8] sm:$0xff] }
 0x329   :  { %5601 = vmatpush3.msra.mxu1 %v4077_v24  ;;  %5548 = vmatpush3.msra.mxu0 %v4064_v28  ;;  %v1990_v33 = vpop.f32.mrf.mxu1  ;;  %v5093_v40 = vpop.f32.mrf.mxu0  ;;  %v4118_v24 = vld [vmem:[%s8119_s5 + $0x7e0] sm:$0xff] }
 0x32a   :  { %5602 = vmatprep.subr.mxu1 %v5889_v44  ;;  %5549 = vmatprep.subr.mxu0 %v5889_v44  ;;  %v7692_v32 = vadd.f32 %v1980_v63, %v1875_v31 }
 0x32b   :  { %5603 = vmatpush3.msra.mxu1 %v4076_v39  ;;  %5550 = vmatpush3.msra.mxu0 %v4063_v29  ;;  %v5146_v46 = vpop.f32.mrf.mxu1 }
 0x32c   :  { %5604 = vmatprep.subr.mxu1 %v5889_v44  ;;  %5551 = vmatprep.subr.mxu0 %v5889_v44 }
 0x32d   :  { %5605 = vmatpush3.msra.mxu1 %v4075_v42  ;;  %5552 = vmatpush3.msra.mxu0 %v4062_v52  ;;  %v1856_v57 = vpop.f32.mrf.mxu0  ;;  %v4115_v42 = vld [vmem:[%s8119_s5 + $0x7c8] sm:$0xff] }
 0x32e   :  { %5606 = vmatprep.subr.mxu1 %v5889_v44  ;;  %5553 = vmatprep.subr.mxu0 %v5889_v44  ;;  %v1876_v62 = vadd.f32 %v1856_v57, %v7543_v60  ;;  %v4120_v60 = vld [vmem:[%s8119_s5 + $0x7f0] sm:$0xff] }
 0x32f   :  { %5607 = vmatpush3.msra.mxu1 %v4074_v53  ;;  %5608 = vmatprep.mubr.msk.f32.mxu1 %vm5890_vm0, %v5889_v44  ;;  %v1995_v1 = vpop.f32.mrf.mxu1  ;;  %v5096_v63 = vpop.f32.mrf.mxu0  ;;  %v4113_v53 = vld [vmem:[%s8119_s5 + $0x7b8] sm:$0xff]  ;;  %v4112_v57 = vld [vmem:[%s8119_s5 + $0x7b0] sm:$0xff] }
 0x330   :  { %5554 = vmatpush3.msra.mxu0 %v4061_v54  ;;  %5609 = vmatmul.mubr.f32.vlgmr.msra.gmra.mxu1 %v7008_v35  ;;  %v7714_v2 = vadd.f32 %v1985_v13, %v1876_v62  ;;  %v4100_v54 = vld [vmem:[%s8119_s5 + $0x750] sm:$0xff]  ;;  %v4097_v63 = vld [vmem:[%s8119_s5 + $0x738] sm:$0xff] }
 0x331   :  { %5670 = vmatprep.subr.mxu1 %v5889_v44  ;;  %5555 = vmatprep.subr.mxu0 %v5889_v44  ;;  %v5149_v38 = vpop.f32.mrf.mxu1 }
 0x332   :  { %5671 = vmatpush3.msra.mxu1 %v4121_v58  ;;  %5556 = vmatpush3.msra.mxu0 %v4060_v0  ;;  %v4111_v58 = vld [vmem:[%s8119_s5 + $0x7a8] sm:$0xff]  ;;  %v4098_v0 = vld [vmem:[%s8119_s5 + $0x740] sm:$0xff]  ;;  %v4109_v38 = vld [vmem:[%s8119_s5 + $0x798] sm:$0xff] }
 0x333   :  { %5672 = vmatprep.subr.mxu1 %v5889_v44  ;;  %5557 = vmatprep.subr.mxu0 %v5889_v44  ;;  %v1861_v35 = vpop.f32.mrf.mxu0 }
 0x334   :  { %5611 = vmatprep.mubr.msk.f32.mxu1 %vm5890_vm0, %v5889_v44  ;;  %5673 = vmatpush3.msra.mxu1 %v4120_v60  ;;  %v1877_v13 = vadd.f32 %v1861_v35, %v7565_v15 }
 0x335   :  { %5558 = vmatpush3.msra.mxu0 %v4059_v20  ;;  %5612 = vmatmul.mubr.f32.gmra.mxu1 %v7036_v61  ;;  %v2000_v6 = vpop.f32.mrf.mxu1  ;;  %v5099_v23 = vpop.f32.mrf.mxu0  ;;  %v4105_v61 = vld [vmem:[%s8119_s5 + $0x778] sm:$0xff]  ;;  %v4096_v20 = vld [vmem:[%s8119_s5 + $0x730] sm:$0xff] }
 0x336   :  { %5674 = vmatprep.subr.mxu1 %v5889_v44  ;;  %5559 = vmatprep.subr.mxu0 %v5889_v44  ;;  %v7738_v27 = vadd.f32 %v1990_v33, %v1877_v13  ;;  %v4107_v23 = vld [vmem:[%s8119_s5 + $0x788] sm:$0xff] }
 0x337   :  { %5675 = vmatpush3.msra.mxu1 %v4119_v11  ;;  %5560 = vmatpush3.msra.mxu0 %v4058_v9  ;;  %v5152_v28 = vpop.f32.mrf.mxu1  ;;  %v4095_v11 = vld [vmem:[%s8119_s5 + $0x728] sm:$0xff] }
 0x338   :  { %5561 = vmatprep.mubr.msk.f32.mxu0 %vm5890_vm0, %v5889_v44  ;;  %5676 = vmatprep.subr.mxu1 %v5889_v44 }
 0x339   :  { %5562 = vmatmul.mubr.f32.vlgmr.msra.gmra.mxu0 %v7056_v5  ;;  %5614 = vmatprep.mubr.msk.f32.mxu1 %vm5890_vm0, %v5889_v44  ;;  %v1866_v15 = vpop.f32.mrf.mxu0  ;;  %v4104_v5 = vld [vmem:[%s8119_s5 + $0x770] sm:$0xff] }
 0x33a   :  { %5623 = vmatprep.subr.mxu0 %v5889_v44  ;;  %5677 = vmatpush3.msra.mxu1 %v4118_v24  ;;  %v1878_v39 = vadd.f32 %v1866_v15, %v7589_v34  ;;  %v4103_v34 = vld [vmem:[%s8119_s5 + $0x768] sm:$0xff]  ;;  %v4094_v24 = vld [vmem:[%s8119_s5 + $0x720] sm:$0xff]  ;;  %v4093_v15 = vld [vmem:[%s8119_s5 + $0x718] sm:$0xff] }
 0x33b   :  { %5615 = vmatmul.mubr.f32.gmra.mxu1 %v7066_v8  ;;  %5624 = vmatpush3.msra.mxu0 %v4105_v61  ;;  %v5102_v29 = vpop.f32.mrf.mxu0  ;;  %v4116_v8 = vld [vmem:[%s8119_s5 + $0x7d0] sm:$0xff]  ;;  %v4106_v61 = vld [vmem:[%s8119_s5 + $0x780] sm:$0xff] }
 0x33c   :  { %5678 = vmatprep.subr.mxu1 %v5889_v44  ;;  %5625 = vmatprep.subr.mxu0 %v5889_v44  ;;  %v7763_v31 = vadd.f32 %v1995_v1, %v1878_v39  ;;  %v4092_v29 = vld [vmem:[%s8119_s5 + $0x710] sm:$0xff] }
 0x33d   :  { %5679 = vmatpush3.msra.mxu1 %v4117_v22  ;;  %5564 = vmatprep.mubr.msk.f32.mxu0 %vm5890_vm0, %v5889_v44 }
 0x33e   :  { %5626 = vmatpush3.msra.mxu0 %v4104_v5  ;;  %5680 = vmatprep.subr.mxu1 %v5889_v44  ;;  %v1871_v33 = vpop.f32.mrf.mxu0  ;;  %v4153_v5 = vld [vmem:[%s8119_s5 + $0x8f8] sm:$0xff] }
 0x33f   :  { %5565 = vmatmul.mubr.f32.gmra.mxu0 %v7085_v16  ;;  %5617 = vmatprep.mubr.msk.f32.mxu1 %vm5890_vm0, %v5889_v44  ;;  %v1879_v40 = vadd.f32 %v1871_v33, %v7609_v26  ;;  %v4102_v16 = vld [vmem:[%s8119_s5 + $0x760] sm:$0xff] }
 0x340   :  { %5627 = vmatprep.subr.mxu0 %v5889_v44  ;;  %5681 = vmatpush3.msra.mxu1 %v4116_v8  ;;  %v5105_v52 = vpop.f32.mrf.mxu0  ;;  %v4114_v26 = vld [vmem:[%s8119_s5 + $0x7c0] sm:$0xff] }
 0x341   :  { %5618 = vmatmul.mubr.f32.gmra.mxu1 %v7097_v21  ;;  %5628 = vmatpush3.msra.mxu0 %v4103_v34  ;;  %v7786_v46 = vadd.f32 %v2000_v6, %v1879_v40  ;;  %v4101_v21 = vld [vmem:[%s8119_s5 + $0x758] sm:$0xff]  ;;  %v4151_v52 = vld [vmem:[%s8119_s5 + $0x8e8] sm:$0xff] }
 0x342   :  { %5682 = vmatprep.subr.mxu1 %v5889_v44  ;;  %5629 = vmatprep.subr.mxu0 %v5889_v44 }
 0x343   :  { %5683 = vmatpush3.msra.mxu1 %v4115_v42  ;;  %5567 = vmatprep.mubr.msk.f32.mxu0 %vm5890_vm0, %v5889_v44  ;;  %v4091_v42 = vld [vmem:[%s8119_s5 + $0x708] sm:$0xff] }
 0x344   :  { %5630 = vmatpush3.msra.mxu0 %v4102_v16  ;;  %5684 = vmatprep.subr.mxu1 %v5889_v44  ;;  %v4090_v16 = vld [vmem:[%s8119_s5 + $0x700] sm:$0xff] }
 0x345   :  { %5568 = vmatmul.mubr.f32.gmra.mxu0 %v7119_v30  ;;  %5620 = vmatprep.mubr.msk.f32.mxu1 %vm5890_vm0, %v5889_v44 }
 0x346   :  { %5631 = vmatprep.subr.mxu0 %v5889_v44  ;;  %5685 = vmatpush3.msra.mxu1 %v4114_v26 }
 0x347   :  { %5621 = vmatmul.mubr.f32.gmra.mxu1 %v6710_v43  ;;  %5632 = vmatpush3.msra.mxu0 %v4101_v21  ;;  %v4099_v43 = vld [vmem:[%s8119_s5 + $0x748] sm:$0xff] }
 0x348   :  { %5686 = vmatprep.subr.mxu1 %v5889_v44  ;;  %5633 = vmatprep.subr.mxu0 %v5889_v44  ;;  %v2238_v30 = vpop.f32.mrf.mxu1 }
 0x349   :  { %5687 = vmatpush3.msra.mxu1 %v4113_v53  ;;  %5570 = vmatprep.mubr.msk.f32.mxu0 %vm5890_vm0, %v5889_v44 }
 0x34a   :  { %5634 = vmatpush3.msra.mxu0 %v4100_v54  ;;  %5688 = vmatprep.subr.mxu1 %v5889_v44  ;;  %v5234_v62 = vpop.f32.mrf.mxu1 }
 0x34b   :  { %5571 = vmatmul.mubr.f32.gmra.mxu0 %v7143_v4  ;;  %5635 = vmatprep.subr.mxu0 %v5889_v44  ;;  %v4110_v4 = vld [vmem:[%s8119_s5 + $0x7a0] sm:$0xff] }
 0x34c   :  { %5689 = vmatpush3.msra.mxu1 %v4112_v57  ;;  %5636 = vmatpush3.msra.mxu0 %v4099_v43  ;;  %v4149_v43 = vld [vmem:[%s8119_s5 + $0x8d8] sm:$0xff] }
 0x34d   :  { %5690 = vmatprep.subr.mxu1 %v5889_v44  ;;  %5637 = vmatprep.subr.mxu0 %v5889_v44  ;;  %v2243_v1 = vpop.f32.mrf.mxu1 }
 0x34e   :  { %5691 = vmatpush3.msra.mxu1 %v4111_v58  ;;  %5573 = vmatprep.mubr.msk.f32.mxu0 %vm5890_vm0, %v5889_v44 }
 0x34f   :  { %5638 = vmatpush3.msra.mxu0 %v4098_v0  ;;  %5692 = vmatprep.subr.mxu1 %v5889_v44  ;;  %v5237_v60 = vpop.f32.mrf.mxu1 }
 0x350   :  { %5574 = vmatmul.mubr.f32.gmra.mxu0 %v6715_v45  ;;  %5639 = vmatprep.subr.mxu0 %v5889_v44  ;;  %v4108_v45 = vld [vmem:[%s8119_s5 + $0x790] sm:$0xff] }
 0x351   :  { %5693 = vmatpush3.msra.mxu1 %v4110_v4  ;;  %5640 = vmatpush3.msra.mxu0 %v4097_v63  ;;  %v2109_v35 = vpop.f32.mrf.mxu0  ;;  %v4147_v63 = vld [vmem:[%s8119_s5 + $0x8c8] sm:$0xff] }
 0x352   :  { %5694 = vmatprep.subr.mxu1 %v5889_v44  ;;  %5641 = vmatprep.subr.mxu0 %v5889_v44  ;;  %v2133_v9 = vadd.f32 %v2109_v35, %v7692_v32  ;;  %v4132_v35 = vld [vmem:[%s8119_s5 + $0x850] sm:$0xff] }
 0x353   :  { %5695 = vmatpush3.msra.mxu1 %v4109_v38  ;;  %5642 = vmatpush3.msra.mxu0 %v4096_v20  ;;  %v2248_v13 = vpop.f32.mrf.mxu1  ;;  %v5187_v6 = vpop.f32.mrf.mxu0  ;;  %v4145_v20 = vld [vmem:[%s8119_s5 + $0x8b8] sm:$0xff] }
 0x354   :  { %5696 = vmatprep.subr.mxu1 %v5889_v44  ;;  %5643 = vmatprep.subr.mxu0 %v5889_v44  ;;  %v7865_v28 = vadd.f32 %v2238_v30, %v2133_v9  ;;  %v4150_v30 = vld [vmem:[%s8119_s5 + $0x8e0] sm:$0xff]  ;;  %v4143_v9 = vld [vmem:[%s8119_s5 + $0x8a8] sm:$0xff] }
 0x355   :  { %5697 = vmatpush3.msra.mxu1 %v4108_v45  ;;  %5644 = vmatpush3.msra.mxu0 %v4095_v11  ;;  %v5240_v32 = vpop.f32.mrf.mxu1  ;;  %v4144_v45 = vld [vmem:[%s8119_s5 + $0x8b0] sm:$0xff] }
 0x356   :  { %5698 = vmatprep.subr.mxu1 %v5889_v44  ;;  %5645 = vmatprep.subr.mxu0 %v5889_v44  ;;  %v4141_v32 = vld [vmem:[%s8119_s5 + $0x898] sm:$0xff] }
 0x357   :  { %5699 = vmatpush3.msra.mxu1 %v4107_v23  ;;  %5646 = vmatpush3.msra.mxu0 %v4094_v24  ;;  %v2114_v22 = vpop.f32.mrf.mxu0  ;;  %v4129_v23 = vld [vmem:[%s8119_s5 + $0x838] sm:$0xff] }
 0x358   :  { %5700 = vmatprep.subr.mxu1 %v5889_v44  ;;  %5647 = vmatprep.subr.mxu0 %v5889_v44  ;;  %v2134_v39 = vadd.f32 %v2114_v22, %v7714_v2  ;;  %v4152_v2 = vld [vmem:[%s8119_s5 + $0x8f0] sm:$0xff]  ;;  %v4127_v22 = vld [vmem:[%s8119_s5 + $0x828] sm:$0xff] }
 0x359   :  { %5701 = vmatpush3.msra.mxu1 %v4106_v61  ;;  %5702 = vmatprep.mubr.msk.f32.mxu1 %vm5890_vm0, %v5889_v44  ;;  %v2253_v8 = vpop.f32.mrf.mxu1  ;;  %v5190_v34 = vpop.f32.mrf.mxu0  ;;  %v4128_v61 = vld [vmem:[%s8119_s5 + $0x830] sm:$0xff] }
 0x35a   :  { %5648 = vmatpush3.msra.mxu0 %v4093_v15  ;;  %5703 = vmatmul.mubr.f32.vlgmr.msra.gmra.mxu1 %v7204_v18  ;;  %v7887_v33 = vadd.f32 %v2243_v1, %v2134_v39  ;;  %v4126_v34 = vld [vmem:[%s8119_s5 + $0x820] sm:$0xff] }
 0x35b   :  { %5764 = vmatprep.subr.mxu1 %v5889_v44  ;;  %5649 = vmatprep.subr.mxu0 %v5889_v44  ;;  %v5243_v40 = vpop.f32.mrf.mxu1 }
 0x35c   :  { %5765 = vmatpush3.msra.mxu1 %v4153_v5  ;;  %5650 = vmatpush3.msra.mxu0 %v4092_v29  ;;  %v4138_v40 = vld [vmem:[%s8119_s5 + $0x880] sm:$0xff] }
 0x35d   :  { %5766 = vmatprep.subr.mxu1 %v5889_v44  ;;  %5651 = vmatprep.subr.mxu0 %v5889_v44  ;;  %v2119_v18 = vpop.f32.mrf.mxu0 }
 0x35e   :  { %5705 = vmatprep.mubr.msk.f32.mxu1 %vm5890_vm0, %v5889_v44  ;;  %5767 = vmatpush3.msra.mxu1 %v4152_v2  ;;  %v2135_v26 = vadd.f32 %v2119_v18, %v7738_v27 }
 0x35f   :  { %5652 = vmatpush3.msra.mxu0 %v4091_v42  ;;  %5706 = vmatmul.mubr.f32.gmra.mxu1 %v7232_v37  ;;  %v2258_v21 = vpop.f32.mrf.mxu1  ;;  %v5193_v53 = vpop.f32.mrf.mxu0  ;;  %v4137_v37 = vld [vmem:[%s8119_s5 + $0x878] sm:$0xff] }
 0x360   :  { %5768 = vmatprep.subr.mxu1 %v5889_v44  ;;  %5653 = vmatprep.subr.mxu0 %v5889_v44  ;;  %v7911_v54 = vadd.f32 %v2248_v13, %v2135_v26  ;;  %v4130_v13 = vld [vmem:[%s8119_s5 + $0x840] sm:$0xff]  ;;  %v4125_v42 = vld [vmem:[%s8119_s5 + $0x818] sm:$0xff] }
 0x361   :  { %5769 = vmatpush3.msra.mxu1 %v4151_v52  ;;  %5654 = vmatpush3.msra.mxu0 %v4090_v16  ;;  %v5246_v57 = vpop.f32.mrf.mxu1  ;;  %v4124_v16 = vld [vmem:[%s8119_s5 + $0x810] sm:$0xff] }
 0x362   :  { %5655 = vmatprep.mubr.msk.f32.mxu0 %vm5890_vm0, %v5889_v44  ;;  %5770 = vmatprep.subr.mxu1 %v5889_v44 }
 0x363   :  { %5656 = vmatmul.mubr.f32.vlgmr.msra.gmra.mxu0 %v7252_v59  ;;  %5708 = vmatprep.mubr.msk.f32.mxu1 %vm5890_vm0, %v5889_v44  ;;  %v2124_v27 = vpop.f32.mrf.mxu0  ;;  %v4136_v59 = vld [vmem:[%s8119_s5 + $0x870] sm:$0xff] }
 0x364   :  { %5717 = vmatprep.subr.mxu0 %v5889_v44  ;;  %5771 = vmatpush3.msra.mxu1 %v4150_v30  ;;  %v2136_v62 = vadd.f32 %v2124_v27, %v7763_v31  ;;  %v4135_v31 = vld [vmem:[%s8119_s5 + $0x868] sm:$0xff] }
 0x365   :  { %5709 = vmatmul.mubr.f32.gmra.mxu1 %v7262_v19  ;;  %5718 = vmatpush3.msra.mxu0 %v4137_v37  ;;  %v5196_v58 = vpop.f32.mrf.mxu0  ;;  %v4148_v19 = vld [vmem:[%s8119_s5 + $0x8d0] sm:$0xff] }
 0x366   :  { %5772 = vmatprep.subr.mxu1 %v5889_v44  ;;  %5719 = vmatprep.subr.mxu0 %v5889_v44  ;;  %v7936_v0 = vadd.f32 %v2253_v8, %v2136_v62  ;;  %v4139_v8 = vld [vmem:[%s8119_s5 + $0x888] sm:$0xff] }
 0x367   :  { %5773 = vmatpush3.msra.mxu1 %v4149_v43  ;;  %5658 = vmatprep.mubr.msk.f32.mxu0 %vm5890_vm0, %v5889_v44 }
 0x368   :  { %5720 = vmatpush3.msra.mxu0 %v4136_v59  ;;  %5774 = vmatprep.subr.mxu1 %v5889_v44  ;;  %v2129_v1 = vpop.f32.mrf.mxu0 }
 0x369   :  { %5659 = vmatmul.mubr.f32.gmra.mxu0 %v7281_v7  ;;  %5711 = vmatprep.mubr.msk.f32.mxu1 %vm5890_vm0, %v5889_v44  ;;  %v2137_v4 = vadd.f32 %v2129_v1, %v7786_v46  ;;  %v4134_v7 = vld [vmem:[%s8119_s5 + $0x860] sm:$0xff] }
 0x36a   :  { %5721 = vmatprep.subr.mxu0 %v5889_v44  ;;  %5775 = vmatpush3.msra.mxu1 %v4148_v19  ;;  %v5199_v60 = vpop.f32.mrf.mxu0  ;;  %v4146_v46 = vld [vmem:[%s8119_s5 + $0x8c0] sm:$0xff] }
 0x36b   :  { %5712 = vmatmul.mubr.f32.gmra.mxu1 %v7293_v10  ;;  %5722 = vmatpush3.msra.mxu0 %v4135_v31  ;;  %v7959_v38 = vadd.f32 %v2258_v21, %v2137_v4  ;;  %v4133_v10 = vld [vmem:[%s8119_s5 + $0x858] sm:$0xff] }
 0x36c   :  { %5776 = vmatprep.subr.mxu1 %v5889_v44  ;;  %5723 = vmatprep.subr.mxu0 %v5889_v44 }
 0x36d   :  { %5777 = vmatpush3.msra.mxu1 %v4147_v63  ;;  %5661 = vmatprep.mubr.msk.f32.mxu0 %vm5890_vm0, %v5889_v44 }
 0x36e   :  { %5724 = vmatpush3.msra.mxu0 %v4134_v7  ;;  %5778 = vmatprep.subr.mxu1 %v5889_v44 }
 0x36f   :  { %5662 = vmatmul.mubr.f32.gmra.mxu0 %v7315_v25  ;;  %5714 = vmatprep.mubr.msk.f32.mxu1 %vm5890_vm0, %v5889_v44 }
 0x370   :  { %5725 = vmatprep.subr.mxu0 %v5889_v44  ;;  %5779 = vmatpush3.msra.mxu1 %v4146_v46 }
 0x371   :  { %5715 = vmatmul.mubr.f32.gmra.mxu1 %v6728_v49  ;;  %5726 = vmatpush3.msra.mxu0 %v4133_v10  ;;  %v4131_v49 = vld [vmem:[%s8119_s5 + $0x848] sm:$0xff] }
 0x372   :  { %5780 = vmatprep.subr.mxu1 %v5889_v44  ;;  %5727 = vmatprep.subr.mxu0 %v5889_v44  ;;  %v2496_v25 = vpop.f32.mrf.mxu1 }
 0x373   :  { %5781 = vmatpush3.msra.mxu1 %v4145_v20  ;;  %5664 = vmatprep.mubr.msk.f32.mxu0 %vm5890_vm0, %v5889_v44 }
 0x374   :  { %5728 = vmatpush3.msra.mxu0 %v4132_v35  ;;  %5782 = vmatprep.subr.mxu1 %v5889_v44  ;;  %v5328_v11 = vpop.f32.mrf.mxu1 }
 0x375   :  { %5665 = vmatmul.mubr.f32.gmra.mxu0 %v7339_v41  ;;  %5729 = vmatprep.subr.mxu0 %v5889_v44  ;;  %v4142_v41 = vld [vmem:[%s8119_s5 + $0x8a0] sm:$0xff] }
 0x376   :  { %5783 = vmatpush3.msra.mxu1 %v4144_v45  ;;  %5730 = vmatpush3.msra.mxu0 %v4131_v49 }
 0x377   :  { %5784 = vmatprep.subr.mxu1 %v5889_v44  ;;  %5731 = vmatprep.subr.mxu0 %v5889_v44  ;;  %v2501_v6 = vpop.f32.mrf.mxu1 }
 0x378   :  { %5785 = vmatpush3.msra.mxu1 %v4143_v9  ;;  %5667 = vmatprep.mubr.msk.f32.mxu0 %vm5890_vm0, %v5889_v44 }
 0x379   :  { %5732 = vmatpush3.msra.mxu0 %v4130_v13  ;;  %5786 = vmatprep.subr.mxu1 %v5889_v44  ;;  %v5331_v24 = vpop.f32.mrf.mxu1 }
 0x37a   :  { %5668 = vmatmul.mubr.f32.gmra.mxu0 %v6738_v51  ;;  %5733 = vmatprep.subr.mxu0 %v5889_v44  ;;  %v4140_v51 = vld [vmem:[%s8119_s5 + $0x890] sm:$0xff] }
 0x37b   :  { %5787 = vmatpush3.msra.mxu1 %v4142_v41  ;;  %5734 = vmatpush3.msra.mxu0 %v4129_v23  ;;  %v2367_v15 = vpop.f32.mrf.mxu0 }
 0x37c   :  { %5788 = vmatprep.subr.mxu1 %v5889_v44  ;;  %5735 = vmatprep.subr.mxu0 %v5889_v44  ;;  %v2391_v39 = vadd.f32 %v2367_v15, %v7865_v28 }
 0x37d   :  { %5789 = vmatpush3.msra.mxu1 %v4141_v32  ;;  %5736 = vmatpush3.msra.mxu0 %v4128_v61  ;;  %v2506_v5 = vpop.f32.mrf.mxu1  ;;  %v5281_v29 = vpop.f32.mrf.mxu0 }
 0x37e   :  { %5790 = vmatprep.subr.mxu1 %v5889_v44  ;;  %5737 = vmatprep.subr.mxu0 %v5889_v44  ;;  %v8038_v2 = vadd.f32 %v2496_v25, %v2391_v39 }
 0x37f   :  { %5791 = vmatpush3.msra.mxu1 %v4140_v51  ;;  %5738 = vmatpush3.msra.mxu0 %v4127_v22  ;;  %v5334_v28 = vpop.f32.mrf.mxu1 }
 0x380   :  { %5792 = vmatprep.subr.mxu1 %v5889_v44  ;;  %5739 = vmatprep.subr.mxu0 %v5889_v44 }
 0x381   :  { %5793 = vmatpush3.msra.mxu1 %v4139_v8  ;;  %5740 = vmatpush3.msra.mxu0 %v4126_v34  ;;  %v2372_v18 = vpop.f32.mrf.mxu0 }
 0x382   :  { %5794 = vmatprep.subr.mxu1 %v5889_v44  ;;  %5741 = vmatprep.subr.mxu0 %v5889_v44  ;;  %v2392_v52 = vadd.f32 %v2372_v18, %v7887_v33  ;;  %v4123_v33 = vld [vmem:[%s8119_s5 + $0x808] sm:$0xff] }
 0x383   :  { %5795 = vmatpush3.msra.mxu1 %v4138_v40  ;;  %5796 = vmatprep.mubr.msk.f32.mxu1 %vm5890_vm0, %v5889_v44  ;;  %v2511_v26 = vpop.f32.mrf.mxu1  ;;  %v5284_v21 = vpop.f32.mrf.mxu0 }
 0x384   :  { %5742 = vmatpush3.msra.mxu0 %v4125_v42  ;;  %5797 = vmatmul.mubr.f32.vlgmr.msra.gmra.mxu1 %v6653_v17  ;;  %v2521_v53 = vadd.f32 %v2501_v6, %v2392_v52  ;;  %v4122_v17 = vld [vmem:[%s8119_s5 + $0x800] sm:$0xff] }
 0x385   :  { %5743 = vmatprep.subr.mxu0 %v5889_v44  ;;  %5799 = vmatprep.mubr.msk.f32.mxu1 %vm5890_vm0, %v5889_v44  ;;  %v5337_v30 = vpop.f32.mrf.mxu1 }
 0x386   :  { %5744 = vmatpush3.msra.mxu0 %v4124_v16  ;;  %5749 = vmatprep.mubr.msk.f32.mxu0 %vm5890_vm0, %v5889_v44 }
 0x387   :  { %5745 = vmatprep.subr.mxu0 %v5889_v44  ;;  %v2377_v57 = vpop.f32.mrf.mxu0 }
 0x388   :  { %5746 = vmatpush3.msra.mxu0 %v4123_v33  ;;  %5800 = vmatmul.mubr.f32.gmra.mxu1 %v6723_v48  ;;  %v2393_v37 = vadd.f32 %v2377_v57, %v7911_v54 }
 0x389   :  { %5747 = vmatprep.subr.mxu0 %v5889_v44  ;;  %5802 = vmatprep.mubr.msk.f32.mxu1 %vm5890_vm0, %v5889_v44  ;;  %v2516_v27 = vpop.f32.mrf.mxu1  ;;  %v5287_v43 = vpop.f32.mrf.mxu0 }
 0x38a   :  { %5748 = vmatpush3.msra.mxu0 %v4122_v17  ;;  %v2522_v62 = vadd.f32 %v2506_v5, %v2393_v37 }
 0x38b   :  { %5750 = vmatmul.mubr.f32.vlgmr.msra.gmra.mxu0 %v6590_v55  ;;  %v5340_v59 = vpop.f32.mrf.mxu1 }
 0x38c   :  { %5803 = vmatmul.mubr.f32.gmra.mxu1 %v6755_v56  ;;  %5752 = vmatprep.mubr.msk.f32.mxu0 %vm5890_vm0, %v5889_v44 }
 0x38d   :  { %5805 = vmatprep.mubr.msk.f32.mxu1 %vm5890_vm0, %v5889_v44  ;;  %v2382_v48 = vpop.f32.mrf.mxu0 }
 0x38e   :  { %v2394_v54 = vadd.f32 %v2382_v48, %v7936_v0 }
 0x38f   :  { %5753 = vmatmul.mubr.f32.gmra.mxu0 %v6610_v3  ;;  %v5290_v58 = vpop.f32.mrf.mxu0 }
 0x390   :  { %5806 = vmatmul.mubr.f32.gmra.mxu1 %v6685_v36  ;;  %5755 = vmatprep.mubr.msk.f32.mxu0 %vm5890_vm0, %v5889_v44  ;;  %v2523_v55 = vadd.f32 %v2511_v26, %v2394_v54 }
 0x391   :  { %5808 = vmatprep.mubr.msk.f32.mxu1 %vm5890_vm0, %v5889_v44 }
 0x392   :  { %v2387_v56 = vpop.f32.mrf.mxu0 }
 0x393   :  { %5756 = vmatmul.mubr.f32.gmra.mxu0 %v6638_v14  ;;  %v2395_v19 = vadd.f32 %v2387_v56, %v7959_v38 }
 0x394   :  { %5809 = vmatmul.mubr.f32.gmra.mxu1 %v6719_v47  ;;  %5758 = vmatprep.mubr.msk.f32.mxu0 %vm5890_vm0, %v5889_v44  ;;  %v5293_v3 = vpop.f32.mrf.mxu0 }
 0x395   :  { %v2524_v0 = vadd.f32 %v2516_v27, %v2395_v19 }
 0x397   :  { %5759 = vmatmul.mubr.f32.gmra.mxu0 %v6633_v12 }
 0x398   :  { %5761 = vmatprep.mubr.msk.f32.mxu0 %vm5890_vm0, %v5889_v44 }
 0x39b   :  { %5762 = vmatmul.mubr.f32.gmra.mxu0 %v6575_v50 }
 0x39c   :  { %v2724_v36 = vpop.f32.mrf.mxu1 }
 0x39e   :  { %v5422_v31 = vpop.f32.mrf.mxu1 }
 0x3a1   :  { %v2729_v1 = vpop.f32.mrf.mxu1 }
 0x3a3   :  { %v5425_v14 = vpop.f32.mrf.mxu1 }
 0x3a5   :  { %v2608_v4 = vpop.f32.mrf.mxu0 }
 0x3a6   :  { %v2632_v63 = vadd.f32 %v2608_v4, %v8038_v2 }
 0x3a7   :  { %v2734_v47 = vpop.f32.mrf.mxu1  ;;  %v5375_v60 = vpop.f32.mrf.mxu0 }
 0x3a8   :  { %v2748_v7 = vadd.f32 %v2724_v36, %v2632_v63 }
 0x3a9   :  { %v5428_v38 = vpop.f32.mrf.mxu1 }
 0x3ab   :  { %v2613_v46 = vpop.f32.mrf.mxu0 }
 0x3ac   :  { %v2633_v10 = vadd.f32 %v2613_v46, %v2521_v53 }
 0x3ad   :  { %v2739_v20 = vpop.f32.mrf.mxu1  ;;  %v5378_v12 = vpop.f32.mrf.mxu0 }
 0x3ae   :  { %v2749_v35 = vadd.f32 %v2729_v1, %v2633_v10 }
 0x3af   :  { %v5431_v25 = vpop.f32.mrf.mxu1 }
 0x3b1   :  { %v2618_v44 = vpop.f32.mrf.mxu0 }
 0x3b2   :  { %v2634_v45 = vadd.f32 %v2618_v44, %v2522_v62 }
 0x3b3   :  { %v2744_v50 = vpop.f32.mrf.mxu1  ;;  %v5381_v49 = vpop.f32.mrf.mxu0 }
 0x3b4   :  { %v2750_v11 = vadd.f32 %v2734_v47, %v2634_v45 }
 0x3b5   :  { %v5434_v9 = vpop.f32.mrf.mxu1 }
 0x3b7   :  { %v2623_v13 = vpop.f32.mrf.mxu0 }
 0x3b8   :  { %v2635_v6 = vadd.f32 %v2623_v13, %v2523_v55 }
 0x3b9   :  { %v5384_v41 = vpop.f32.mrf.mxu0 }
 0x3ba   :  { %v2751_v23 = vadd.f32 %v2739_v20, %v2635_v6 }
 0x3bc   :  { %v2628_v24 = vpop.f32.mrf.mxu0 }
 0x3bd   :  { %v2636_v32 = vadd.f32 %v2628_v24, %v2524_v0 }
 0x3be   :  { %v5387_v61 = vpop.f32.mrf.mxu0 }
 0x3bf   :  { %v2752_v15 = vadd.f32 %v2744_v50, %v2636_v32 }
 0x3c6   :  { %v2954_v51 = vpop.f32.mrf.mxu1 }
 0x3c8   :  { %v5516_v22 = vpop.f32.mrf.mxu1 }
 0x3cb   :  { %v2959_v39 = vpop.f32.mrf.mxu1 }
 0x3cd   :  { %v5519_v5 = vpop.f32.mrf.mxu1 }
 0x3cf   :  { %v2839_v29 = vpop.f32.mrf.mxu0 }
 0x3d0   :  { %v2863_v8 = vadd.f32 %v2839_v29, %v2748_v7 }
 0x3d1   :  { %v2964_v34 = vpop.f32.mrf.mxu1  ;;  %v5469_v2 = vpop.f32.mrf.mxu0 }
 0x3d2   :  { %v2978_v28 = vadd.f32 %v2954_v51, %v2863_v8 }
 0x3d3   :  { %v5522_v40 = vpop.f32.mrf.mxu1 }
 0x3d5   :  { %v2844_v42 = vpop.f32.mrf.mxu0 }
 0x3d6   :  { %v2864_v18 = vadd.f32 %v2844_v42, %v2749_v35 }
 0x3d7   :  { %v2969_v52 = vpop.f32.mrf.mxu1  ;;  %v5472_v16 = vpop.f32.mrf.mxu0 }
 0x3d8   :  { %v2979_v26 = vadd.f32 %v2959_v39, %v2864_v18 }
 0x3d9   :  { %v5525_v21 = vpop.f32.mrf.mxu1 }
 0x3db   :  { %v2849_v53 = vpop.f32.mrf.mxu0 }
 0x3dc   :  { %v2865_v33 = vadd.f32 %v2849_v53, %v2750_v11 }
 0x3dd   :  { %v2974_v30 = vpop.f32.mrf.mxu1  ;;  %v5475_v17 = vpop.f32.mrf.mxu0 }
 0x3de   :  { %v2980_v57 = vadd.f32 %v2964_v34, %v2865_v33 }
 0x3df   :  { %v5528_v37 = vpop.f32.mrf.mxu1 }
 0x3e1   :  { %v2854_v27 = vpop.f32.mrf.mxu0 }
 0x3e2   :  { %v2866_v43 = vadd.f32 %v2854_v27, %v2751_v23 }
 0x3e3   :  { %v5478_v62 = vpop.f32.mrf.mxu0 }
 0x3e4   :  { %v2981_v59 = vadd.f32 %v2969_v52, %v2866_v43 }
 0x3e6   :  { %v2859_v48 = vpop.f32.mrf.mxu0 }
 0x3e7   :  { %v2867_v54 = vadd.f32 %v2859_v48, %v2752_v15  ;;  %v4154_v48 = vld [vmem:[%s8121_s6] ss:$0 sm:$0xff] }
 0x3e8   :  { %v5481_v58 = vpop.f32.mrf.mxu0 }
 0x3e9   :  { %v2982_v55 = vadd.f32 %v2974_v30, %v2867_v54 }
 0x3f0   :  { %v3184_v56 = vpop.f32.mrf.mxu1 }
 0x3f2   :  { %v5610_v19 = vpop.f32.mrf.mxu1 }
 0x3f5   :  { %v3189_v3 = vpop.f32.mrf.mxu1 }
 0x3f7   :  { %v5613_v0 = vpop.f32.mrf.mxu1 }
 0x3f9   :  { %v3069_v36 = vpop.f32.mrf.mxu0 }
 0x3fa   :  { %v3093_v31 = vadd.f32 %v3069_v36, %v2978_v28 }
 0x3fb   :  { %v3194_v1 = vpop.f32.mrf.mxu1  ;;  %v5563_v14 = vpop.f32.mrf.mxu0 }
 0x3fc   :  { %v3208_v4 = vadd.f32 %v3184_v56, %v3093_v31 }
 0x3fd   :  { %v5616_v63 = vpop.f32.mrf.mxu1 }
 0x3ff   :  { %v3074_v47 = vpop.f32.mrf.mxu0 }
 0x400   :  { %v3094_v60 = vadd.f32 %v3074_v47, %v2979_v26 }
 0x401   :  { %v3199_v7 = vpop.f32.mrf.mxu1  ;;  %v5566_v38 = vpop.f32.mrf.mxu0 }
 0x402   :  { %v3209_v46 = vadd.f32 %v3189_v3, %v3094_v60 }
 0x403   :  { %v5619_v10 = vpop.f32.mrf.mxu1 }
 0x405   :  { %v3079_v20 = vpop.f32.mrf.mxu0 }
 0x406   :  { %v3095_v12 = vadd.f32 %v3079_v20, %v2980_v57 }
 0x407   :  { %v3204_v35 = vpop.f32.mrf.mxu1  ;;  %v5569_v25 = vpop.f32.mrf.mxu0 }
 0x408   :  { %v3210_v44 = vadd.f32 %v3194_v1, %v3095_v12 }
 0x409   :  { %v5622_v45 = vpop.f32.mrf.mxu1 }
 0x40b   :  { %v3084_v50 = vpop.f32.mrf.mxu0 }
 0x40c   :  { %v3096_v49 = vadd.f32 %v3084_v50, %v2981_v59 }
 0x40d   :  { %v5572_v11 = vpop.f32.mrf.mxu0 }
 0x40e   :  { %v3211_v9 = vadd.f32 %v3199_v7, %v3096_v49 }
 0x410   :  { %v3089_v13 = vpop.f32.mrf.mxu0 }
 0x411   :  { %v3097_v6 = vadd.f32 %v3089_v13, %v2982_v55 }
 0x412   :  { %v5575_v41 = vpop.f32.mrf.mxu0 }
 0x413   :  { %v3212_v23 = vadd.f32 %v3204_v35, %v3097_v6 }
 0x41a   :  { %v3414_v24 = vpop.f32.mrf.mxu1 }
 0x41c   :  { %v5704_v32 = vpop.f32.mrf.mxu1 }
 0x41f   :  { %v3419_v61 = vpop.f32.mrf.mxu1 }
 0x421   :  { %v5707_v15 = vpop.f32.mrf.mxu1 }
 0x423   :  { %v3299_v51 = vpop.f32.mrf.mxu0 }
 0x424   :  { %v3323_v33 = vadd.f32 %v3299_v51, %v3208_v4 }
 0x425   :  { %v3424_v22 = vpop.f32.mrf.mxu1  ;;  %v5657_v39 = vpop.f32.mrf.mxu0 }
 0x426   :  { %v3438_v27 = vadd.f32 %v3414_v24, %v3323_v33 }
 0x427   :  { %v5710_v5 = vpop.f32.mrf.mxu1 }
 0x429   :  { %v3304_v29 = vpop.f32.mrf.mxu0 }
 0x42a   :  { %v3324_v57 = vadd.f32 %v3304_v29, %v3209_v46 }
 0x42b   :  { %v3429_v8 = vpop.f32.mrf.mxu1  ;;  %v5660_v34 = vpop.f32.mrf.mxu0 }
 0x42c   :  { %v3439_v19 = vadd.f32 %v3419_v61, %v3324_v57 }
 0x42d   :  { %v5713_v2 = vpop.f32.mrf.mxu1 }
 0x42f   :  { %v3309_v28 = vpop.f32.mrf.mxu0 }
 0x430   :  { %v3325_v58 = vadd.f32 %v3309_v28, %v3210_v44 }
 0x431   :  { %v3434_v40 = vpop.f32.mrf.mxu1  ;;  %v5663_v42 = vpop.f32.mrf.mxu0 }
 0x432   :  { %v3440_v47 = vadd.f32 %v3424_v22, %v3325_v58 }
 0x433   :  { %v5716_v18 = vpop.f32.mrf.mxu1 }
 0x435   :  { %v3314_v52 = vpop.f32.mrf.mxu0 }
 0x436   :  { %v3326_v14 = vadd.f32 %v3314_v52, %v3211_v9 }
 0x437   :  { %v5666_v16 = vpop.f32.mrf.mxu0 }
 0x438   :  { %v3441_v25 = vadd.f32 %v3429_v8, %v3326_v14 }
 0x43a   :  { %v3319_v26 = vpop.f32.mrf.mxu0 }
 0x43b   :  { %v3327_v20 = vadd.f32 %v3319_v26, %v3212_v23 }
 0x43c   :  { %v5669_v21 = vpop.f32.mrf.mxu0 }
 0x43d   :  { %v3442_v9 = vadd.f32 %v3434_v40, %v3327_v20 }
 0x444   :  { %v3642_v53 = vpop.f32.mrf.mxu1 }
 0x446   :  { %v5798_v30 = vpop.f32.mrf.mxu1 }
 0x448   :  { %v3647_v17 = vpop.f32.mrf.mxu1 }
 0x44a   :  { %v5801_v37 = vpop.f32.mrf.mxu1 }
 0x44b   :  { %v3526_v43 = vpop.f32.mrf.mxu0 }
 0x44c   :  { %v3550_v62 = vadd.f32 %v3526_v43, %v3438_v27  ;;  %v3652_v59 = vpop.f32.mrf.mxu1 }
 0x44d   :  { %v5751_v54 = vpop.f32.mrf.mxu0 }
 0x44e   :  { %v3666_v55 = vadd.f32 %v3642_v53, %v3550_v62  ;;  %v5804_v56 = vpop.f32.mrf.mxu1 }
 0x44f   :  { %v3531_v3 = vpop.f32.mrf.mxu0 }
 0x450   :  { %v3678_v0 = vadd.f32 %v4154_v48, %v3666_v55  ;;  %v3551_v36 = vadd.f32 %v3531_v3, %v3439_v19  ;;  %v3657_v31 = vpop.f32.mrf.mxu1 }
 0x451   :  { %v5754_v1 = vpop.f32.mrf.mxu0 }
 0x452   :  { %3683 = vst [vmem:[%s8122_s7] sm:$0xff] %v3678_v0  ;;  %v3667_v4 = vadd.f32 %v3647_v17, %v3551_v36  ;;  %v5807_v63 = vpop.f32.mrf.mxu1 }
 0x453   :  { %v3536_v60 = vpop.f32.mrf.mxu0 }
 0x454   :  { %v3679_v7 = vadd.f32 %v4154_v48, %v3667_v4  ;;  %v3552_v38 = vadd.f32 %v3536_v60, %v3440_v47  ;;  %v3662_v46 = vpop.f32.mrf.mxu1 }
 0x455   :  { %v5757_v10 = vpop.f32.mrf.mxu0 }
 0x456   :  { %3684 = vst [vmem:[%s8122_s7 + $0x8] sm:$0xff] %v3679_v7  ;;  %v3668_v12 = vadd.f32 %v3652_v59, %v3552_v38  ;;  %v5810_v35 = vpop.f32.mrf.mxu1 }
 0x457   :  { %v3541_v44 = vpop.f32.mrf.mxu0 }
 0x458   :  { %v3680_v45 = vadd.f32 %v4154_v48, %v3668_v12  ;;  %v3553_v50 = vadd.f32 %v3541_v44, %v3441_v25 }
 0x459   :  { %v5760_v49 = vpop.f32.mrf.mxu0 }
 0x45a   :  { %3685 = vst [vmem:[%s8122_s7 + $0x10] sm:$0xff] %v3680_v45  ;;  %v3669_v11 = vadd.f32 %v3657_v31, %v3553_v50 }
 0x45b   :  { %v3546_v13 = vpop.f32.mrf.mxu0 }
 0x45c   :  { %v3681_v6 = vadd.f32 %v4154_v48, %v3669_v11  ;;  %v3554_v41 = vadd.f32 %v3546_v13, %v3442_v9 }
 0x45d   :  { %v5763_v23 = vpop.f32.mrf.mxu0 }
 0x45e   :  { %3686 = vst [vmem:[%s8122_s7 + $0x18] sm:$0xff] %v3681_v6  ;;  %v3670_v24 = vadd.f32 %v3662_v46, %v3554_v41 }
 0x460   :  { %v3682_v32 = vadd.f32 %v4154_v48, %v3670_v24 }
 0x462   :  { %3687 = vst [vmem:[%s8122_s7 + $0x20] sm:$0xff] %v3682_v32 }

</bundles_post_ra>
